<compile_context>
chip_gen: v7x
topology: tpu7x:2x2x1
jax: 0.10.0
libtpu: 0.0.40
codegen_flags: <defaults>
</compile_context>

<pallas_src>
import jax
import jax.numpy as jnp
from jax.experimental import pallas as pl
from jax.experimental.pallas import tpu as pltpu

CHUNK = 8  # timesteps per grid step


def _gru_recurrence_kernel(gi_ref,    # (CHUNK, 3H) f32: precomputed input gates (+ folded biases)
                           h0_ref,    # (1, H)      f32: initial hidden
                           whh_ref,   # (H, 3H)     bf16: hidden->gates weights (transposed)
                           bhn_ref,   # (1, H)      f32: b_hn (hidden bias, "new" gate only)
                           out_ref,   # (CHUNK, H)  f32: GRU outputs for this chunk
                           h_carry):  # VMEM scratch (1, H) f32: hidden carried across grid steps
    c = pl.program_id(0)
    H = h0_ref.shape[1]
    C = gi_ref.shape[0]

    @pl.when(c == 0)
    def _():
        h_carry[...] = h0_ref[...]

    h = h_carry[...]            # (1, H) f32
    whh = whh_ref[...]          # (H, 3H) bf16, resident in VMEM across the grid
    bhn = bhn_ref[...]          # (1, H)  f32

    # Statically unrolled inner time loop (CHUNK small, state tiny).
    for i in range(C):
        gi = gi_ref[i:i + 1, :]                       # (1, 3H), static slice
        gh = jnp.dot(h.astype(whh.dtype), whh,
                     preferred_element_type=jnp.float32)   # (1, 3H)

        # PyTorch GRU gate order: reset, update, new.  b_ir+b_hr / b_iz+b_hz /
        # b_in are already folded into gi; only b_hn lives inside r * (...).
        r = jax.nn.sigmoid(gi[:, 0:H] + gh[:, 0:H])
        z = jax.nn.sigmoid(gi[:, H:2 * H] + gh[:, H:2 * H])
        n = jnp.tanh(gi[:, 2 * H:3 * H] + r * (gh[:, 2 * H:3 * H] + bhn))
        h = (1.0 - z) * n + z * h

        out_ref[i:i + 1, :] = h   # VMEM store; (CHUNK, H) block flushed once per grid step

    h_carry[...] = h


def encoder_rnn_sequence(tokens, hidden0, params):
    """Run the encoder GRU over a whole token sequence.

    tokens : int32 (T,)
    hidden0: f32   (1, 1, H)
    returns (outputs (T, H), final_hidden (1, H))
    """
    emb = params["embedding"]            # (V, H)  bf16
    wih = params["w_ih_t"]               # (H, 3H) bf16
    whh = params["w_hh_t"]               # (H, 3H) bf16
    b_ih = params["b_ih"]                # (1, 3H) f32
    b_hh = params["b_hh"]                # (1, 3H) f32

    V, H = emb.shape
    T = tokens.shape[0]
    T_pad = ((T + CHUNK - 1) // CHUNK) * CHUNK
    h0 = hidden0.reshape(1, H).astype(jnp.float32)

    # ---- Pre-pass (plain XLA, MXU-efficient M=T matmul): embedding gather +
    # input-gate pre-activations for the whole (padded) sequence.  Pad steps
    # only produce output rows that are discarded below. ----
    toks_p = jnp.pad(tokens, (0, T_pad - T))                      # pad with token 0
    x_all = jnp.take(emb, toks_p, axis=0)                         # (T_pad, H) bf16
    bias_pre = b_ih + jnp.concatenate(
        [b_hh[:, :2 * H], jnp.zeros((1, H), jnp.float32)], axis=1)
    gi_all = jnp.dot(x_all, wih,
                     preferred_element_type=jnp.float32) + bias_pre   # (T_pad, 3H) f32
    b_hn = b_hh[:, 2 * H:3 * H]                                   # (1, H) f32

    # Constant index_map -> block fetched once, resident across the grid.
    def const(shape):
        return pl.BlockSpec(shape, lambda c: (0,) * len(shape))

    outputs = pl.pallas_call(
        _gru_recurrence_kernel,
        out_shape=jax.ShapeDtypeStruct((T_pad, H), jnp.float32),
        grid_spec=pltpu.PrefetchScalarGridSpec(
            num_scalar_prefetch=0,
            grid=(T_pad // CHUNK,),
            in_specs=[
                pl.BlockSpec((CHUNK, 3 * H), lambda c: (c, 0)),   # gi chunk
                const((1, H)),                                    # initial hidden
                const((H, 3 * H)),                                # W_hh^T (resident)
                const((1, H)),                                    # b_hn
            ],
            out_specs=pl.BlockSpec((CHUNK, H), lambda c: (c, 0)),
            scratch_shapes=[pltpu.VMEM((1, H), jnp.float32)],
        ),
        # Sequential recurrence through the hidden state -> "arbitrary".
        compiler_params=pltpu.CompilerParams(
            dimension_semantics=("arbitrary",)),
    )(gi_all, h0, whh, b_hn)

    outputs = outputs[:T]
    h_final = outputs[T - 1:T]          # final hidden == last output row
    return outputs, h_final


def encoder_rnn_forward(token, hidden, params):
    """Equivalent of EncoderRNN.forward(input, hidden) for a single token.

    token:  int32 (1,);  hidden: f32 (1, 1, H)
    returns (output, hidden), both (1, 1, H)
    """
    outputs, h_final = encoder_rnn_sequence(token.reshape(1), hidden, params)
    H = outputs.shape[1]
    return outputs.reshape(1, 1, H), h_final.reshape(1, 1, H)


def init_params(key, vocab_size, hidden_size, wdtype=jnp.bfloat16):
    k1, k2, k3, k4, k5 = jax.random.split(key, 5)
    scale = 1.0 / jnp.sqrt(hidden_size)
    return {
        # Embedding + matmul weights in bf16; biases / gate math stay f32.
        "embedding": jax.random.normal(
            k1, (vocab_size, hidden_size), jnp.float32).astype(wdtype),
        # stored transposed relative to PyTorch's (3H, H) so we compute x @ W
        "w_ih_t": (scale * jax.random.normal(
            k2, (hidden_size, 3 * hidden_size), jnp.float32)).astype(wdtype),
        "w_hh_t": (scale * jax.random.normal(
            k3, (hidden_size, 3 * hidden_size), jnp.float32)).astype(wdtype),
        "b_ih": scale * jax.random.normal(k4, (1, 3 * hidden_size), jnp.float32),
        "b_hh": scale * jax.random.normal(k5, (1, 3 * hidden_size), jnp.float32),
    }


def _reference_encoder(tokens, hidden0, params):
    """Pure-JAX reference with the same numerics (bf16 matmuls, f32 gates)."""
    H = hidden0.shape[-1]
    h = hidden0.reshape(1, H).astype(jnp.float32)
    outs = []
    for t in range(tokens.shape[0]):
        x = params["embedding"][tokens[t]][None, :]
        gi = jnp.dot(x, params["w_ih_t"],
                     preferred_element_type=jnp.float32) + params["b_ih"]
        gh = jnp.dot(h.astype(params["w_hh_t"].dtype), params["w_hh_t"],
                     preferred_element_type=jnp.float32) + params["b_hh"]
        r = jax.nn.sigmoid(gi[:, 0:H] + gh[:, 0:H])
        z = jax.nn.sigmoid(gi[:, H:2 * H] + gh[:, H:2 * H])
        n = jnp.tanh(gi[:, 2 * H:3 * H] + r * gh[:, 2 * H:3 * H])
        h = (1.0 - z) * n + z * h
        outs.append(h)
    return jnp.concatenate(outs, axis=0), h


if __name__ == "__main__":
    vocab_size = 32
    hidden_size = 256   # matches the original module's hidden_size
    seq_len = 8

    key = jax.random.PRNGKey(0)
    kp, kt = jax.random.split(key)
    params = init_params(kp, vocab_size, hidden_size)

    tokens = jax.random.randint(kt, (seq_len,), 0, vocab_size, dtype=jnp.int32)
    hidden0 = jnp.zeros((1, 1, hidden_size), jnp.float32)  # initHidden()

    # --- single-step path (exact EncoderRNN.forward semantics) ---
    out1, hid1 = encoder_rnn_forward(tokens[:1], hidden0, params)
    jax.block_until_ready((out1, hid1))

    # --- full-sequence path (time loop internalized in the kernel) ---
    seq_fn = jax.jit(encoder_rnn_sequence)
    outs, h_final = seq_fn(tokens, hidden0, params)
    jax.block_until_ready((outs, h_final))

    # correctness check vs pure-JAX reference of the same math
    ref_outs, ref_h = _reference_encoder(tokens, hidden0, params)
    assert jnp.allclose(out1.reshape(1, -1), ref_outs[:1], atol=2e-3), \
        "single-step mismatch vs reference"
    assert jnp.allclose(outs, ref_outs, atol=2e-3), "sequence outputs mismatch"
    assert jnp.allclose(h_final, ref_h, atol=2e-3), "final hidden mismatch"
    assert out1.shape == (1, 1, hidden_size) and hid1.shape == (1, 1, hidden_size)

    print("KERNEL_OK")
</pallas_src>

<mosaic_0001>
module attributes {stable_mosaic.version = 11 : i64} {
  func.func @_gru_recurrence_kernel(%arg0: i32, %arg1: memref<8x768xf32, #tpu.memory_space<vmem>>, %arg2: memref<1x256xf32, #tpu.memory_space<vmem>>, %arg3: memref<256x768xbf16, #tpu.memory_space<vmem>>, %arg4: memref<1x256xf32, #tpu.memory_space<vmem>>, %arg5: memref<8x256xf32, #tpu.memory_space<vmem>>, %arg6: memref<1x256xf32, #tpu.memory_space<vmem>>) attributes {dimension_semantics = [#tpu.dimension_semantics<arbitrary>], iteration_bounds = array<i64: 1>, scalar_prefetch = 0 : i64, scratch_operands = 1 : i64, tpu.core_type = #tpu.core_type<tc>, window_params = [{transform_indices = @transform_0, window_bounds = array<i64: 8, 768>}, {pipeline_mode = #tpu.pipeline_mode<synchronous>, transform_indices = @transform_1, window_bounds = array<i64: 1, 256>}, {pipeline_mode = #tpu.pipeline_mode<synchronous>, transform_indices = @transform_2, window_bounds = array<i64: 256, 768>}, {pipeline_mode = #tpu.pipeline_mode<synchronous>, transform_indices = @transform_3, window_bounds = array<i64: 1, 256>}, {transform_indices = @transform_4, window_bounds = array<i64: 8, 256>}]} {
    %c0_i32 = arith.constant 0 : i32
    %0 = arith.cmpi eq, %arg0, %c0_i32 : i32
    %1 = arith.extui %0 : i1 to i32
    %c0_i32_0 = arith.constant 0 : i32
    %2 = arith.cmpi ne, %1, %c0_i32_0 : i32
    scf.if %2 {
      %c0_64 = arith.constant 0 : index
      %c0_65 = arith.constant 0 : index
      %255 = vector.load %arg2[%c0_64, %c0_65] : memref<1x256xf32, #tpu.memory_space<vmem>>, vector<1x256xf32>
      %c0_66 = arith.constant 0 : index
      %c0_67 = arith.constant 0 : index
      %256 = vector.load %arg6[%c0_66, %c0_67] : memref<1x256xf32, #tpu.memory_space<vmem>>, vector<1x256xf32>
      tpu.vector_store %arg6[%c0_66, %c0_67], %255 {strides = array<i32>} : memref<1x256xf32, #tpu.memory_space<vmem>>, vector<1x256xf32>,
    } else {
    }
    %c0 = arith.constant 0 : index
    %c0_1 = arith.constant 0 : index
    %3 = vector.load %arg6[%c0, %c0_1] : memref<1x256xf32, #tpu.memory_space<vmem>>, vector<1x256xf32>
    %c0_2 = arith.constant 0 : index
    %c0_3 = arith.constant 0 : index
    %4 = vector.load %arg3[%c0_2, %c0_3] : memref<256x768xbf16, #tpu.memory_space<vmem>>, vector<256x768xbf16>
    %c0_4 = arith.constant 0 : index
    %c0_5 = arith.constant 0 : index
    %5 = vector.load %arg4[%c0_4, %c0_5] : memref<1x256xf32, #tpu.memory_space<vmem>>, vector<1x256xf32>
    %c0_6 = arith.constant 0 : index
    %c0_7 = arith.constant 0 : index
    %6 = vector.load %arg1[%c0_6, %c0_7] : memref<8x768xf32, #tpu.memory_space<vmem>>, vector<1x768xf32>
    %7 = arith.truncf %3 : vector<1x256xf32> to vector<1x256xbf16>
    %cst = arith.constant dense<0.000000e+00> : vector<1x768xf32>
    %8 = tpu.matmul %7, %4, %cst {dimension_numbers = #tpu.dot_dimension_numbers<[1], [0], [0], [1], [0, 0, 1, 1], [], []>} : vector<1x256xbf16>, vector<256x768xbf16>, vector<1x768xf32> -> vector<1x768xf32>
    %9 = vector.extract_strided_slice %6 {offsets = [0, 0], sizes = [1, 256], strides = [1, 1]} : vector<1x768xf32> to vector<1x256xf32>
    %10 = vector.extract_strided_slice %8 {offsets = [0, 0], sizes = [1, 256], strides = [1, 1]} : vector<1x768xf32> to vector<1x256xf32>
    %11 = arith.addf %9, %10 : vector<1x256xf32>
    %12 = arith.negf %11 : vector<1x256xf32>
    %13 = math.exp %12 : vector<1x256xf32>
    %cst_8 = arith.constant 1.000000e+00 : f32
    %14 = vector.broadcast %cst_8 : f32 to vector<1x256xf32>
    %15 = arith.addf %14, %13 : vector<1x256xf32>
    %16 = arith.divf %14, %15 : vector<1x256xf32>
    %17 = vector.extract_strided_slice %6 {offsets = [0, 256], sizes = [1, 256], strides = [1, 1]} : vector<1x768xf32> to vector<1x256xf32>
    %18 = vector.extract_strided_slice %8 {offsets = [0, 256], sizes = [1, 256], strides = [1, 1]} : vector<1x768xf32> to vector<1x256xf32>
    %19 = arith.addf %17, %18 : vector<1x256xf32>
    %20 = arith.negf %19 : vector<1x256xf32>
    %21 = math.exp %20 : vector<1x256xf32>
    %cst_9 = arith.constant 1.000000e+00 : f32
    %22 = vector.broadcast %cst_9 : f32 to vector<1x256xf32>
    %23 = arith.addf %22, %21 : vector<1x256xf32>
    %24 = arith.divf %22, %23 : vector<1x256xf32>
    %25 = vector.extract_strided_slice %6 {offsets = [0, 512], sizes = [1, 256], strides = [1, 1]} : vector<1x768xf32> to vector<1x256xf32>
    %26 = vector.extract_strided_slice %8 {offsets = [0, 512], sizes = [1, 256], strides = [1, 1]} : vector<1x768xf32> to vector<1x256xf32>
    %27 = arith.addf %26, %5 : vector<1x256xf32>
    %28 = arith.mulf %16, %27 : vector<1x256xf32>
    %29 = arith.addf %25, %28 : vector<1x256xf32>
    %30 = math.tanh %29 : vector<1x256xf32>
    %cst_10 = arith.constant 1.000000e+00 : f32
    %31 = vector.broadcast %cst_10 : f32 to vector<1x256xf32>
    %32 = arith.subf %31, %24 : vector<1x256xf32>
    %33 = arith.mulf %32, %30 : vector<1x256xf32>
    %34 = arith.mulf %24, %3 : vector<1x256xf32>
    %35 = arith.addf %33, %34 : vector<1x256xf32>
    %c0_11 = arith.constant 0 : index
    %c0_12 = arith.constant 0 : index
    %36 = vector.load %arg5[%c0_11, %c0_12] : memref<8x256xf32, #tpu.memory_space<vmem>>, vector<1x256xf32>
    tpu.vector_store %arg5[%c0_11, %c0_12], %35 {strides = array<i32>} : memref<8x256xf32, #tpu.memory_space<vmem>>, vector<1x256xf32>,
    %c1 = arith.constant 1 : index
    %c0_13 = arith.constant 0 : index
    %37 = vector.load %arg1[%c1, %c0_13] : memref<8x768xf32, #tpu.memory_space<vmem>>, vector<1x768xf32>
    %38 = arith.truncf %35 : vector<1x256xf32> to vector<1x256xbf16>
    %cst_14 = arith.constant dense<0.000000e+00> : vector<1x768xf32>
    %39 = tpu.matmul %38, %4, %cst_14 {dimension_numbers = #tpu.dot_dimension_numbers<[1], [0], [0], [1], [0, 0, 1, 1], [], []>} : vector<1x256xbf16>, vector<256x768xbf16>, vector<1x768xf32> -> vector<1x768xf32>
    %40 = vector.extract_strided_slice %37 {offsets = [0, 0], sizes = [1, 256], strides = [1, 1]} : vector<1x768xf32> to vector<1x256xf32>
    %41 = vector.extract_strided_slice %39 {offsets = [0, 0], sizes = [1, 256], strides = [1, 1]} : vector<1x768xf32> to vector<1x256xf32>
    %42 = arith.addf %40, %41 : vector<1x256xf32>
    %43 = arith.negf %42 : vector<1x256xf32>
    %44 = math.exp %43 : vector<1x256xf32>
    %cst_15 = arith.constant 1.000000e+00 : f32
    %45 = vector.broadcast %cst_15 : f32 to vector<1x256xf32>
    %46 = arith.addf %45, %44 : vector<1x256xf32>
    %47 = arith.divf %45, %46 : vector<1x256xf32>
    %48 = vector.extract_strided_slice %37 {offsets = [0, 256], sizes = [1, 256], strides = [1, 1]} : vector<1x768xf32> to vector<1x256xf32>
    %49 = vector.extract_strided_slice %39 {offsets = [0, 256], sizes = [1, 256], strides = [1, 1]} : vector<1x768xf32> to vector<1x256xf32>
    %50 = arith.addf %48, %49 : vector<1x256xf32>
    %51 = arith.negf %50 : vector<1x256xf32>
    %52 = math.exp %51 : vector<1x256xf32>
    %cst_16 = arith.constant 1.000000e+00 : f32
    %53 = vector.broadcast %cst_16 : f32 to vector<1x256xf32>
    %54 = arith.addf %53, %52 : vector<1x256xf32>
    %55 = arith.divf %53, %54 : vector<1x256xf32>
    %56 = vector.extract_strided_slice %37 {offsets = [0, 512], sizes = [1, 256], strides = [1, 1]} : vector<1x768xf32> to vector<1x256xf32>
    %57 = vector.extract_strided_slice %39 {offsets = [0, 512], sizes = [1, 256], strides = [1, 1]} : vector<1x768xf32> to vector<1x256xf32>
    %58 = arith.addf %57, %5 : vector<1x256xf32>
    %59 = arith.mulf %47, %58 : vector<1x256xf32>
    %60 = arith.addf %56, %59 : vector<1x256xf32>
    %61 = math.tanh %60 : vector<1x256xf32>
    %cst_17 = arith.constant 1.000000e+00 : f32
    %62 = vector.broadcast %cst_17 : f32 to vector<1x256xf32>
    %63 = arith.subf %62, %55 : vector<1x256xf32>
    %64 = arith.mulf %63, %61 : vector<1x256xf32>
    %65 = arith.mulf %55, %35 : vector<1x256xf32>
    %66 = arith.addf %64, %65 : vector<1x256xf32>
    %c1_18 = arith.constant 1 : index
    %c0_19 = arith.constant 0 : index
    %67 = vector.load %arg5[%c1_18, %c0_19] : memref<8x256xf32, #tpu.memory_space<vmem>>, vector<1x256xf32>
    tpu.vector_store %arg5[%c1_18, %c0_19], %66 {strides = array<i32>} : memref<8x256xf32, #tpu.memory_space<vmem>>, vector<1x256xf32>,
    %c2 = arith.constant 2 : index
    %c0_20 = arith.constant 0 : index
    %68 = vector.load %arg1[%c2, %c0_20] : memref<8x768xf32, #tpu.memory_space<vmem>>, vector<1x768xf32>
    %69 = arith.truncf %66 : vector<1x256xf32> to vector<1x256xbf16>
    %cst_21 = arith.constant dense<0.000000e+00> : vector<1x768xf32>
    %70 = tpu.matmul %69, %4, %cst_21 {dimension_numbers = #tpu.dot_dimension_numbers<[1], [0], [0], [1], [0, 0, 1, 1], [], []>} : vector<1x256xbf16>, vector<256x768xbf16>, vector<1x768xf32> -> vector<1x768xf32>
    %71 = vector.extract_strided_slice %68 {offsets = [0, 0], sizes = [1, 256], strides = [1, 1]} : vector<1x768xf32> to vector<1x256xf32>
    %72 = vector.extract_strided_slice %70 {offsets = [0, 0], sizes = [1, 256], strides = [1, 1]} : vector<1x768xf32> to vector<1x256xf32>
    %73 = arith.addf %71, %72 : vector<1x256xf32>
    %74 = arith.negf %73 : vector<1x256xf32>
    %75 = math.exp %74 : vector<1x256xf32>
    %cst_22 = arith.constant 1.000000e+00 : f32
    %76 = vector.broadcast %cst_22 : f32 to vector<1x256xf32>
    %77 = arith.addf %76, %75 : vector<1x256xf32>
    %78 = arith.divf %76, %77 : vector<1x256xf32>
    %79 = vector.extract_strided_slice %68 {offsets = [0, 256], sizes = [1, 256], strides = [1, 1]} : vector<1x768xf32> to vector<1x256xf32>
    %80 = vector.extract_strided_slice %70 {offsets = [0, 256], sizes = [1, 256], strides = [1, 1]} : vector<1x768xf32> to vector<1x256xf32>
    %81 = arith.addf %79, %80 : vector<1x256xf32>
    %82 = arith.negf %81 : vector<1x256xf32>
    %83 = math.exp %82 : vector<1x256xf32>
    %cst_23 = arith.constant 1.000000e+00 : f32
    %84 = vector.broadcast %cst_23 : f32 to vector<1x256xf32>
    %85 = arith.addf %84, %83 : vector<1x256xf32>
    %86 = arith.divf %84, %85 : vector<1x256xf32>
    %87 = vector.extract_strided_slice %68 {offsets = [0, 512], sizes = [1, 256], strides = [1, 1]} : vector<1x768xf32> to vector<1x256xf32>
    %88 = vector.extract_strided_slice %70 {offsets = [0, 512], sizes = [1, 256], strides = [1, 1]} : vector<1x768xf32> to vector<1x256xf32>
    %89 = arith.addf %88, %5 : vector<1x256xf32>
    %90 = arith.mulf %78, %89 : vector<1x256xf32>
    %91 = arith.addf %87, %90 : vector<1x256xf32>
    %92 = math.tanh %91 : vector<1x256xf32>
    %cst_24 = arith.constant 1.000000e+00 : f32
    %93 = vector.broadcast %cst_24 : f32 to vector<1x256xf32>
    %94 = arith.subf %93, %86 : vector<1x256xf32>
    %95 = arith.mulf %94, %92 : vector<1x256xf32>
    %96 = arith.mulf %86, %66 : vector<1x256xf32>
    %97 = arith.addf %95, %96 : vector<1x256xf32>
    %c2_25 = arith.constant 2 : index
    %c0_26 = arith.constant 0 : index
    %98 = vector.load %arg5[%c2_25, %c0_26] : memref<8x256xf32, #tpu.memory_space<vmem>>, vector<1x256xf32>
    tpu.vector_store %arg5[%c2_25, %c0_26], %97 {strides = array<i32>} : memref<8x256xf32, #tpu.memory_space<vmem>>, vector<1x256xf32>,
    %c3 = arith.constant 3 : index
    %c0_27 = arith.constant 0 : index
    %99 = vector.load %arg1[%c3, %c0_27] : memref<8x768xf32, #tpu.memory_space<vmem>>, vector<1x768xf32>
    %100 = arith.truncf %97 : vector<1x256xf32> to vector<1x256xbf16>
    %cst_28 = arith.constant dense<0.000000e+00> : vector<1x768xf32>
    %101 = tpu.matmul %100, %4, %cst_28 {dimension_numbers = #tpu.dot_dimension_numbers<[1], [0], [0], [1], [0, 0, 1, 1], [], []>} : vector<1x256xbf16>, vector<256x768xbf16>, vector<1x768xf32> -> vector<1x768xf32>
    %102 = vector.extract_strided_slice %99 {offsets = [0, 0], sizes = [1, 256], strides = [1, 1]} : vector<1x768xf32> to vector<1x256xf32>
    %103 = vector.extract_strided_slice %101 {offsets = [0, 0], sizes = [1, 256], strides = [1, 1]} : vector<1x768xf32> to vector<1x256xf32>
    %104 = arith.addf %102, %103 : vector<1x256xf32>
    %105 = arith.negf %104 : vector<1x256xf32>
    %106 = math.exp %105 : vector<1x256xf32>
    %cst_29 = arith.constant 1.000000e+00 : f32
    %107 = vector.broadcast %cst_29 : f32 to vector<1x256xf32>
    %108 = arith.addf %107, %106 : vector<1x256xf32>
    %109 = arith.divf %107, %108 : vector<1x256xf32>
    %110 = vector.extract_strided_slice %99 {offsets = [0, 256], sizes = [1, 256], strides = [1, 1]} : vector<1x768xf32> to vector<1x256xf32>
    %111 = vector.extract_strided_slice %101 {offsets = [0, 256], sizes = [1, 256], strides = [1, 1]} : vector<1x768xf32> to vector<1x256xf32>
    %112 = arith.addf %110, %111 : vector<1x256xf32>
    %113 = arith.negf %112 : vector<1x256xf32>
    %114 = math.exp %113 : vector<1x256xf32>
    %cst_30 = arith.constant 1.000000e+00 : f32
    %115 = vector.broadcast %cst_30 : f32 to vector<1x256xf32>
    %116 = arith.addf %115, %114 : vector<1x256xf32>
    %117 = arith.divf %115, %116 : vector<1x256xf32>
    %118 = vector.extract_strided_slice %99 {offsets = [0, 512], sizes = [1, 256], strides = [1, 1]} : vector<1x768xf32> to vector<1x256xf32>
    %119 = vector.extract_strided_slice %101 {offsets = [0, 512], sizes = [1, 256], strides = [1, 1]} : vector<1x768xf32> to vector<1x256xf32>
    %120 = arith.addf %119, %5 : vector<1x256xf32>
    %121 = arith.mulf %109, %120 : vector<1x256xf32>
    %122 = arith.addf %118, %121 : vector<1x256xf32>
    %123 = math.tanh %122 : vector<1x256xf32>
    %cst_31 = arith.constant 1.000000e+00 : f32
    %124 = vector.broadcast %cst_31 : f32 to vector<1x256xf32>
    %125 = arith.subf %124, %117 : vector<1x256xf32>
    %126 = arith.mulf %125, %123 : vector<1x256xf32>
    %127 = arith.mulf %117, %97 : vector<1x256xf32>
    %128 = arith.addf %126, %127 : vector<1x256xf32>
    %c3_32 = arith.constant 3 : index
    %c0_33 = arith.constant 0 : index
    %129 = vector.load %arg5[%c3_32, %c0_33] : memref<8x256xf32, #tpu.memory_space<vmem>>, vector<1x256xf32>
    tpu.vector_store %arg5[%c3_32, %c0_33], %128 {strides = array<i32>} : memref<8x256xf32, #tpu.memory_space<vmem>>, vector<1x256xf32>,
    %c4 = arith.constant 4 : index
    %c0_34 = arith.constant 0 : index
    %130 = vector.load %arg1[%c4, %c0_34] : memref<8x768xf32, #tpu.memory_space<vmem>>, vector<1x768xf32>
    %131 = arith.truncf %128 : vector<1x256xf32> to vector<1x256xbf16>
    %cst_35 = arith.constant dense<0.000000e+00> : vector<1x768xf32>
    %132 = tpu.matmul %131, %4, %cst_35 {dimension_numbers = #tpu.dot_dimension_numbers<[1], [0], [0], [1], [0, 0, 1, 1], [], []>} : vector<1x256xbf16>, vector<256x768xbf16>, vector<1x768xf32> -> vector<1x768xf32>
    %133 = vector.extract_strided_slice %130 {offsets = [0, 0], sizes = [1, 256], strides = [1, 1]} : vector<1x768xf32> to vector<1x256xf32>
    %134 = vector.extract_strided_slice %132 {offsets = [0, 0], sizes = [1, 256], strides = [1, 1]} : vector<1x768xf32> to vector<1x256xf32>
    %135 = arith.addf %133, %134 : vector<1x256xf32>
    %136 = arith.negf %135 : vector<1x256xf32>
    %137 = math.exp %136 : vector<1x256xf32>
    %cst_36 = arith.constant 1.000000e+00 : f32
    %138 = vector.broadcast %cst_36 : f32 to vector<1x256xf32>
    %139 = arith.addf %138, %137 : vector<1x256xf32>
    %140 = arith.divf %138, %139 : vector<1x256xf32>
    %141 = vector.extract_strided_slice %130 {offsets = [0, 256], sizes = [1, 256], strides = [1, 1]} : vector<1x768xf32> to vector<1x256xf32>
    %142 = vector.extract_strided_slice %132 {offsets = [0, 256], sizes = [1, 256], strides = [1, 1]} : vector<1x768xf32> to vector<1x256xf32>
    %143 = arith.addf %141, %142 : vector<1x256xf32>
    %144 = arith.negf %143 : vector<1x256xf32>
    %145 = math.exp %144 : vector<1x256xf32>
    %cst_37 = arith.constant 1.000000e+00 : f32
    %146 = vector.broadcast %cst_37 : f32 to vector<1x256xf32>
    %147 = arith.addf %146, %145 : vector<1x256xf32>
    %148 = arith.divf %146, %147 : vector<1x256xf32>
    %149 = vector.extract_strided_slice %130 {offsets = [0, 512], sizes = [1, 256], strides = [1, 1]} : vector<1x768xf32> to vector<1x256xf32>
    %150 = vector.extract_strided_slice %132 {offsets = [0, 512], sizes = [1, 256], strides = [1, 1]} : vector<1x768xf32> to vector<1x256xf32>
    %151 = arith.addf %150, %5 : vector<1x256xf32>
    %152 = arith.mulf %140, %151 : vector<1x256xf32>
    %153 = arith.addf %149, %152 : vector<1x256xf32>
    %154 = math.tanh %153 : vector<1x256xf32>
    %cst_38 = arith.constant 1.000000e+00 : f32
    %155 = vector.broadcast %cst_38 : f32 to vector<1x256xf32>
    %156 = arith.subf %155, %148 : vector<1x256xf32>
    %157 = arith.mulf %156, %154 : vector<1x256xf32>
    %158 = arith.mulf %148, %128 : vector<1x256xf32>
    %159 = arith.addf %157, %158 : vector<1x256xf32>
    %c4_39 = arith.constant 4 : index
    %c0_40 = arith.constant 0 : index
    %160 = vector.load %arg5[%c4_39, %c0_40] : memref<8x256xf32, #tpu.memory_space<vmem>>, vector<1x256xf32>
    tpu.vector_store %arg5[%c4_39, %c0_40], %159 {strides = array<i32>} : memref<8x256xf32, #tpu.memory_space<vmem>>, vector<1x256xf32>,
    %c5 = arith.constant 5 : index
    %c0_41 = arith.constant 0 : index
    %161 = vector.load %arg1[%c5, %c0_41] : memref<8x768xf32, #tpu.memory_space<vmem>>, vector<1x768xf32>
    %162 = arith.truncf %159 : vector<1x256xf32> to vector<1x256xbf16>
    %cst_42 = arith.constant dense<0.000000e+00> : vector<1x768xf32>
    %163 = tpu.matmul %162, %4, %cst_42 {dimension_numbers = #tpu.dot_dimension_numbers<[1], [0], [0], [1], [0, 0, 1, 1], [], []>} : vector<1x256xbf16>, vector<256x768xbf16>, vector<1x768xf32> -> vector<1x768xf32>
    %164 = vector.extract_strided_slice %161 {offsets = [0, 0], sizes = [1, 256], strides = [1, 1]} : vector<1x768xf32> to vector<1x256xf32>
    %165 = vector.extract_strided_slice %163 {offsets = [0, 0], sizes = [1, 256], strides = [1, 1]} : vector<1x768xf32> to vector<1x256xf32>
    %166 = arith.addf %164, %165 : vector<1x256xf32>
    %167 = arith.negf %166 : vector<1x256xf32>
    %168 = math.exp %167 : vector<1x256xf32>
    %cst_43 = arith.constant 1.000000e+00 : f32
    %169 = vector.broadcast %cst_43 : f32 to vector<1x256xf32>
    %170 = arith.addf %169, %168 : vector<1x256xf32>
    %171 = arith.divf %169, %170 : vector<1x256xf32>
    %172 = vector.extract_strided_slice %161 {offsets = [0, 256], sizes = [1, 256], strides = [1, 1]} : vector<1x768xf32> to vector<1x256xf32>
    %173 = vector.extract_strided_slice %163 {offsets = [0, 256], sizes = [1, 256], strides = [1, 1]} : vector<1x768xf32> to vector<1x256xf32>
    %174 = arith.addf %172, %173 : vector<1x256xf32>
    %175 = arith.negf %174 : vector<1x256xf32>
    %176 = math.exp %175 : vector<1x256xf32>
    %cst_44 = arith.constant 1.000000e+00 : f32
    %177 = vector.broadcast %cst_44 : f32 to vector<1x256xf32>
    %178 = arith.addf %177, %176 : vector<1x256xf32>
    %179 = arith.divf %177, %178 : vector<1x256xf32>
    %180 = vector.extract_strided_slice %161 {offsets = [0, 512], sizes = [1, 256], strides = [1, 1]} : vector<1x768xf32> to vector<1x256xf32>
    %181 = vector.extract_strided_slice %163 {offsets = [0, 512], sizes = [1, 256], strides = [1, 1]} : vector<1x768xf32> to vector<1x256xf32>
    %182 = arith.addf %181, %5 : vector<1x256xf32>
    %183 = arith.mulf %171, %182 : vector<1x256xf32>
    %184 = arith.addf %180, %183 : vector<1x256xf32>
    %185 = math.tanh %184 : vector<1x256xf32>
    %cst_45 = arith.constant 1.000000e+00 : f32
    %186 = vector.broadcast %cst_45 : f32 to vector<1x256xf32>
    %187 = arith.subf %186, %179 : vector<1x256xf32>
    %188 = arith.mulf %187, %185 : vector<1x256xf32>
    %189 = arith.mulf %179, %159 : vector<1x256xf32>
    %190 = arith.addf %188, %189 : vector<1x256xf32>
    %c5_46 = arith.constant 5 : index
    %c0_47 = arith.constant 0 : index
    %191 = vector.load %arg5[%c5_46, %c0_47] : memref<8x256xf32, #tpu.memory_space<vmem>>, vector<1x256xf32>
    tpu.vector_store %arg5[%c5_46, %c0_47], %190 {strides = array<i32>} : memref<8x256xf32, #tpu.memory_space<vmem>>, vector<1x256xf32>,
    %c6 = arith.constant 6 : index
    %c0_48 = arith.constant 0 : index
    %192 = vector.load %arg1[%c6, %c0_48] : memref<8x768xf32, #tpu.memory_space<vmem>>, vector<1x768xf32>
    %193 = arith.truncf %190 : vector<1x256xf32> to vector<1x256xbf16>
    %cst_49 = arith.constant dense<0.000000e+00> : vector<1x768xf32>
    %194 = tpu.matmul %193, %4, %cst_49 {dimension_numbers = #tpu.dot_dimension_numbers<[1], [0], [0], [1], [0, 0, 1, 1], [], []>} : vector<1x256xbf16>, vector<256x768xbf16>, vector<1x768xf32> -> vector<1x768xf32>
    %195 = vector.extract_strided_slice %192 {offsets = [0, 0], sizes = [1, 256], strides = [1, 1]} : vector<1x768xf32> to vector<1x256xf32>
    %196 = vector.extract_strided_slice %194 {offsets = [0, 0], sizes = [1, 256], strides = [1, 1]} : vector<1x768xf32> to vector<1x256xf32>
    %197 = arith.addf %195, %196 : vector<1x256xf32>
    %198 = arith.negf %197 : vector<1x256xf32>
    %199 = math.exp %198 : vector<1x256xf32>
    %cst_50 = arith.constant 1.000000e+00 : f32
    %200 = vector.broadcast %cst_50 : f32 to vector<1x256xf32>
    %201 = arith.addf %200, %199 : vector<1x256xf32>
    %202 = arith.divf %200, %201 : vector<1x256xf32>
    %203 = vector.extract_strided_slice %192 {offsets = [0, 256], sizes = [1, 256], strides = [1, 1]} : vector<1x768xf32> to vector<1x256xf32>
    %204 = vector.extract_strided_slice %194 {offsets = [0, 256], sizes = [1, 256], strides = [1, 1]} : vector<1x768xf32> to vector<1x256xf32>
    %205 = arith.addf %203, %204 : vector<1x256xf32>
    %206 = arith.negf %205 : vector<1x256xf32>
    %207 = math.exp %206 : vector<1x256xf32>
    %cst_51 = arith.constant 1.000000e+00 : f32
    %208 = vector.broadcast %cst_51 : f32 to vector<1x256xf32>
    %209 = arith.addf %208, %207 : vector<1x256xf32>
    %210 = arith.divf %208, %209 : vector<1x256xf32>
    %211 = vector.extract_strided_slice %192 {offsets = [0, 512], sizes = [1, 256], strides = [1, 1]} : vector<1x768xf32> to vector<1x256xf32>
    %212 = vector.extract_strided_slice %194 {offsets = [0, 512], sizes = [1, 256], strides = [1, 1]} : vector<1x768xf32> to vector<1x256xf32>
    %213 = arith.addf %212, %5 : vector<1x256xf32>
    %214 = arith.mulf %202, %213 : vector<1x256xf32>
    %215 = arith.addf %211, %214 : vector<1x256xf32>
    %216 = math.tanh %215 : vector<1x256xf32>
    %cst_52 = arith.constant 1.000000e+00 : f32
    %217 = vector.broadcast %cst_52 : f32 to vector<1x256xf32>
    %218 = arith.subf %217, %210 : vector<1x256xf32>
    %219 = arith.mulf %218, %216 : vector<1x256xf32>
    %220 = arith.mulf %210, %190 : vector<1x256xf32>
    %221 = arith.addf %219, %220 : vector<1x256xf32>
    %c6_53 = arith.constant 6 : index
    %c0_54 = arith.constant 0 : index
    %222 = vector.load %arg5[%c6_53, %c0_54] : memref<8x256xf32, #tpu.memory_space<vmem>>, vector<1x256xf32>
    tpu.vector_store %arg5[%c6_53, %c0_54], %221 {strides = array<i32>} : memref<8x256xf32, #tpu.memory_space<vmem>>, vector<1x256xf32>,
    %c7 = arith.constant 7 : index
    %c0_55 = arith.constant 0 : index
    %223 = vector.load %arg1[%c7, %c0_55] : memref<8x768xf32, #tpu.memory_space<vmem>>, vector<1x768xf32>
    %224 = arith.truncf %221 : vector<1x256xf32> to vector<1x256xbf16>
    %cst_56 = arith.constant dense<0.000000e+00> : vector<1x768xf32>
    %225 = tpu.matmul %224, %4, %cst_56 {dimension_numbers = #tpu.dot_dimension_numbers<[1], [0], [0], [1], [0, 0, 1, 1], [], []>} : vector<1x256xbf16>, vector<256x768xbf16>, vector<1x768xf32> -> vector<1x768xf32>
    %226 = vector.extract_strided_slice %223 {offsets = [0, 0], sizes = [1, 256], strides = [1, 1]} : vector<1x768xf32> to vector<1x256xf32>
    %227 = vector.extract_strided_slice %225 {offsets = [0, 0], sizes = [1, 256], strides = [1, 1]} : vector<1x768xf32> to vector<1x256xf32>
    %228 = arith.addf %226, %227 : vector<1x256xf32>
    %229 = arith.negf %228 : vector<1x256xf32>
    %230 = math.exp %229 : vector<1x256xf32>
    %cst_57 = arith.constant 1.000000e+00 : f32
    %231 = vector.broadcast %cst_57 : f32 to vector<1x256xf32>
    %232 = arith.addf %231, %230 : vector<1x256xf32>
    %233 = arith.divf %231, %232 : vector<1x256xf32>
    %234 = vector.extract_strided_slice %223 {offsets = [0, 256], sizes = [1, 256], strides = [1, 1]} : vector<1x768xf32> to vector<1x256xf32>
    %235 = vector.extract_strided_slice %225 {offsets = [0, 256], sizes = [1, 256], strides = [1, 1]} : vector<1x768xf32> to vector<1x256xf32>
    %236 = arith.addf %234, %235 : vector<1x256xf32>
    %237 = arith.negf %236 : vector<1x256xf32>
    %238 = math.exp %237 : vector<1x256xf32>
    %cst_58 = arith.constant 1.000000e+00 : f32
    %239 = vector.broadcast %cst_58 : f32 to vector<1x256xf32>
    %240 = arith.addf %239, %238 : vector<1x256xf32>
    %241 = arith.divf %239, %240 : vector<1x256xf32>
    %242 = vector.extract_strided_slice %223 {offsets = [0, 512], sizes = [1, 256], strides = [1, 1]} : vector<1x768xf32> to vector<1x256xf32>
    %243 = vector.extract_strided_slice %225 {offsets = [0, 512], sizes = [1, 256], strides = [1, 1]} : vector<1x768xf32> to vector<1x256xf32>
    %244 = arith.addf %243, %5 : vector<1x256xf32>
    %245 = arith.mulf %233, %244 : vector<1x256xf32>
    %246 = arith.addf %242, %245 : vector<1x256xf32>
    %247 = math.tanh %246 : vector<1x256xf32>
    %cst_59 = arith.constant 1.000000e+00 : f32
    %248 = vector.broadcast %cst_59 : f32 to vector<1x256xf32>
    %249 = arith.subf %248, %241 : vector<1x256xf32>
    %250 = arith.mulf %249, %247 : vector<1x256xf32>
    %251 = arith.mulf %241, %221 : vector<1x256xf32>
    %252 = arith.addf %250, %251 : vector<1x256xf32>
    %c7_60 = arith.constant 7 : index
    %c0_61 = arith.constant 0 : index
    %253 = vector.load %arg5[%c7_60, %c0_61] : memref<8x256xf32, #tpu.memory_space<vmem>>, vector<1x256xf32>
    tpu.vector_store %arg5[%c7_60, %c0_61], %252 {strides = array<i32>} : memref<8x256xf32, #tpu.memory_space<vmem>>, vector<1x256xf32>,
    %c0_62 = arith.constant 0 : index
    %c0_63 = arith.constant 0 : index
    %254 = vector.load %arg6[%c0_62, %c0_63] : memref<1x256xf32, #tpu.memory_space<vmem>>, vector<1x256xf32>
    tpu.vector_store %arg6[%c0_62, %c0_63], %252 {strides = array<i32>} : memref<1x256xf32, #tpu.memory_space<vmem>>, vector<1x256xf32>,
    return
  }
  func.func @transform_0(%arg0: i32) -> (i32, i32) {
    %c0_i32 = arith.constant 0 : i32
    %c0_i32_0 = arith.constant 0 : i32
    return %arg0, %c0_i32 : i32, i32
  }
  func.func @transform_1(%arg0: i32) -> (i32, i32) {
    %c0_i32 = arith.constant 0 : i32
    %c0_i32_0 = arith.constant 0 : i32
    %c0_i32_1 = arith.constant 0 : i32
    return %c0_i32, %c0_i32_0 : i32, i32
  }
  func.func @transform_2(%arg0: i32) -> (i32, i32) {
    %c0_i32 = arith.constant 0 : i32
    %c0_i32_0 = arith.constant 0 : i32
    %c0_i32_1 = arith.constant 0 : i32
    return %c0_i32, %c0_i32_0 : i32, i32
  }
  func.func @transform_3(%arg0: i32) -> (i32, i32) {
    %c0_i32 = arith.constant 0 : i32
    %c0_i32_0 = arith.constant 0 : i32
    %c0_i32_1 = arith.constant 0 : i32
    return %c0_i32, %c0_i32_0 : i32, i32
  }
  func.func @transform_4(%arg0: i32) -> (i32, i32) {
    %c0_i32 = arith.constant 0 : i32
    %c0_i32_0 = arith.constant 0 : i32
    return %arg0, %c0_i32 : i32, i32
  }
}

</mosaic_0001>

<bundles_post_ra>
// kernel: tpu_custom_call.1
= control target key start
LH: loop header
LB: loop body
LE: loop exit
PB: predicated region body
PF: predicated region fallthrough
CT: control target
= control target key end

     0   :  { %9 = vsyncpa [#allocation4], 0  ;;  %s4412_s0 = inlined_call_operand.hbm [shape: f32[8,768], index: 0, kind: input, shape index: {}]   ;;  %s4413_s1 = inlined_call_operand.vmem [shape: f32[1,256], index: 1, kind: input, shape index: {}]   ;;  %s4414_s2 = inlined_call_operand.hbm [shape: bf16[256,768], index: 2, kind: input, shape index: {}]   ;;  %s4415_s3 = inlined_call_operand.vmem [shape: f32[1,256], index: 3, kind: input, shape index: {}]   ;;  %s4416_s4 = inlined_call_operand.hbm [shape: f32[8,256], index: 4, kind: output, shape index: {}]  }
   0x1   :  { %10 = vsyncpa [#allocation7], 0 }
   0x2   :  { %11 = vsyncpa [#allocation5], 0  ;;  %s3020_s15 = smov [#allocation3]   ;;  %s3021_s17 = smov [#allocation6]  }
   0x3   :  { %s18_s16 = sshll.u32 %s3020_s15, 4  ;;  %s29_s18 = sshll.u32 %s3021_s17, 4  ;;  %s19_s16 = int_to_ptr.vmem [resolvable:$true] %s18_s16  ;;  %s3051_s18 = int_to_ptr.vmem [resolvable:$true] %s29_s18 }
   0x4   :  { %s2948_s21 = scalar_lea.hbm %s4412_s0, 768 }
   0x5   :  { %p2949_p0 = scmp.ne.s32.totalorder %s4412_s0, %s2948_s21  ;;  %p2952_p1 = scmp.lt.u32.totalorder %s2948_s21, %s4412_s0 }
   0x7   :  { %p2954_p2 = pnand %p2952_p1, %p2949_p0 }
   0x9   :  { %2957 = shalt.err (!%p2954_p2)
}
   0xa   :  { %s2958_s26 = scalar_lea.vmem %s19_s16, 768  ;;  %p2963_p4 = scmp.lt.s32.totalorder %s19_s16, %s19_s16 }
   0xb   :  { %p2959_p3 = scmp.ne.s32.totalorder %s19_s16, %s2958_s26  ;;  %p2964_p5 = scmp.lt.s32.totalorder %s2958_s26, %s2958_s26 }
   0xd   :  { %p2965_p6 = por %p2964_p5, %p2963_p4 }
   0xf   :  { %p2966_p7 = pnand %p2965_p6, %p2959_p3 }
  0x11   :  { %2969 = shalt.err (!%p2966_p7)
}
  0x12   :  { %21 = dma.hbm_to_vmem [thread:$0]  %s4412_s0, 768, %s19_s16, [#allocation4]  }
  0x13   :  { %s2970_s5 = scalar_lea.hbm %s4414_s2, 12288 }
  0x14   :  { %p2971_p8 = scmp.ne.s32.totalorder %s4414_s2, %s2970_s5  ;;  %p2974_p9 = scmp.lt.u32.totalorder %s2970_s5, %s4414_s2 }
  0x16   :  { %p2976_p10 = pnand %p2974_p9, %p2971_p8 }
  0x18   :  { %2979 = shalt.err (!%p2976_p10)
}
  0x19   :  { %s2980_s10 = scalar_lea.vmem %s3051_s18, 12288  ;;  %p2985_p12 = scmp.lt.s32.totalorder %s3051_s18, %s3051_s18 }
  0x1a   :  { %p2981_p11 = scmp.ne.s32.totalorder %s3051_s18, %s2980_s10  ;;  %p2986_p13 = scmp.lt.s32.totalorder %s2980_s10, %s2980_s10 }
  0x1c   :  { %p2987_p0 = por %p2986_p13, %p2985_p12 }
  0x1e   :  { %p2988_p1 = pnand %p2987_p0, %p2981_p11 }
  0x20   :  { %2991 = shalt.err (!%p2988_p1)
}
  0x21   :  { %s3022_s0 = smov 384   ;;  %s3023_s11 = smov 24  }
  0x22   :  { %35 = dma.hbm_to_vmem [thread:$0]  %s4414_s2, 12288, %s3051_s18, [#allocation7], %s3022_s0, %s3022_s0, %s3023_s11  }
  0x23   :  { %3014 = dma.done.wait [#allocation4], 768  }
  0x24   :  { %3015 = vsyncadd [#allocation4], 4294966528 }
  0x25   :  { %3016 = dma.done.wait [#allocation7], 12288  }
  0x26   :  { %3017 = vsyncadd [#allocation7], 4294955008  ;;  %v3082_v0 = vld [vmem:[#allocation6 + $0x4] ss:$24 sps:$4 sm:$0xff]   ;;  %v3084_v1 = vld [vmem:[#allocation6] ss:$24 sps:$4 sm:$0xff]   ;;  %v49_v16 = vlaneseq }
  0x27   :  { %648 = vmatprep.subr.bf16.mxu0 %v3082_v0  ;;  %v3087_v2 = vld [vmem:[#allocation6 + $0x34] ss:$24 sps:$4 sm:$0xff]   ;;  %v3090_v3 = vld [vmem:[#allocation6 + $0x30] ss:$24 sps:$4 sm:$0xff]   ;;  %v3093_v4 = vld [vmem:[#allocation6 + $0x64] ss:$24 sps:$4 sm:$0xff]  }
  0x28   :  { %649 = vmatpush1.bf16.msra.mxu0 %v3084_v1  ;;  %v3096_v5 = vld [vmem:[#allocation6 + $0x60] ss:$24 sps:$4 sm:$0xff]   ;;  %v3099_v6 = vld [vmem:[#allocation6 + $0x94] ss:$24 sps:$4 sm:$0xff]   ;;  %v3102_v7 = vld [vmem:[#allocation6 + $0x90] ss:$24 sps:$4 sm:$0xff]  }
  0x29   :  { %650 = vmatprep.subr.bf16.mxu0 %v3087_v2  ;;  %v3105_v8 = vld [vmem:[#allocation6 + $0xc4] ss:$24 sps:$4 sm:$0xff]   ;;  %v3108_v9 = vld [vmem:[#allocation6 + $0xc0] ss:$24 sps:$4 sm:$0xff]   ;;  %v3111_v10 = vld [vmem:[#allocation6 + $0xf4] ss:$24 sps:$4 sm:$0xff]  }
  0x2a   :  { %v3113_v11 = vld [vmem:[#allocation6 + $0xc] ss:$24 sps:$4 sm:$0xff]   ;;  %v3115_v12 = vld [vmem:[#allocation6 + $0x8] ss:$24 sps:$4 sm:$0xff]   ;;  %v3125_v15 = vld [vmem:[#allocation6 + $0x3c] ss:$24 sps:$4 sm:$0xff]  }
  0x2b   :  { %v3118_v13 = vld [vmem:[#allocation6 + $0xf0] ss:$24 sps:$4 sm:$0xff]   ;;  %689 = vmatprep.subr.bf16.mxu1 %v3113_v11  ;;  %v3122_v14 = vld [vmem:[#allocation6 + $0x124] ss:$24 sps:$4 sm:$0xff]   ;;  %4647 = vst [vmem:[#allocation12_spill] sm:$0xff] %v3125_v15  ;;  %vm3141_vm0 = vcmp.lt.s32.totalorder %v49_v16, 256 }
  0x2c   :  { %651 = vmatpush1.bf16.msra.mxu0 %v3090_v3  ;;  %690 = vmatpush1.bf16.msra.mxu1 %v3115_v12  ;;  %v3127_v17 = vld [vmem:[#allocation6 + $0x38] ss:$24 sps:$4 sm:$0xff]   ;;  %v3133_v19 = vld [vmem:[#allocation6 + $0x154] ss:$24 sps:$4 sm:$0xff]   ;;  %v3139_v21 = vld [vmem:[#allocation6 + $0x68] ss:$24 sps:$4 sm:$0xff]  }
  0x2d   :  { %652 = vmatprep.subr.bf16.mxu0 %v3093_v4  ;;  %4648 = vst [vmem:[#allocation13_spill] sm:$0xff] %v3127_v17  ;;  %691 = vmatprep.subr.bf16.mxu1 %v3125_v15  ;;  %v3131_v18 = vld [vmem:[#allocation6 + $0x120] ss:$24 sps:$4 sm:$0xff]   ;;  %v3135_v20 = vld [vmem:[#allocation6 + $0x6c] ss:$24 sps:$4 sm:$0xff]   ;;  %4650 = vst [vmem:[#allocation15_spill] sm:$0xff] %v3139_v21 }
  0x2e   :  { %4649 = vst [vmem:[#allocation14_spill] sm:$0xff] %v3135_v20  ;;  %v4651_v22 = vmov 0  ;;  %v3146_v23 = vld [vmem:[#allocation6 + $0x9c] ss:$24 sps:$4 sm:$0xff]   ;;  %v3148_v24 = vld [vmem:[#allocation6 + $0x150] ss:$24 sps:$4 sm:$0xff]  }
  0x2f   :  { %v4652_v22 = vsel %vm3141_vm0, 4294967295, %v4651_v22  ;;  %4654 = vst [vmem:[#allocation17_spill] sm:$0xff] %v3146_v23  ;;  %v48_v25 = vld [vmem:[%s4413_s1] sm:$0x3]  ;;  %v3154_v26 = vld [vmem:[#allocation6 + $0x184] ss:$24 sps:$4 sm:$0xff]  }
  0x30   :  { %653 = vmatpush1.bf16.msra.mxu0 %v3096_v5  ;;  %692 = vmatpush1.bf16.msra.mxu1 %v3127_v17  ;;  %4653 = vst [vmem:[#allocation16_spill] sm:$0xff] %v4652_v22  ;;  %53 = vst.msk [vmem:[#allocation2] sm:$0x3] %vm3141_vm0, %v48_v25  ;;  %v3158_v27 = vshrl.u32 %v49_v16, 7  ;;  %v3162_v28 = vld [vmem:[#allocation6 + $0x98] ss:$24 sps:$4 sm:$0xff]  }
  0x31   :  { %654 = vmatprep.subr.bf16.mxu0 %v3099_v6  ;;  %693 = vmatprep.subr.bf16.mxu1 %v3135_v20  ;;  %4656 = vst [vmem:[#allocation19_spill] sm:$0xff] %v3162_v28  ;;  %v3165_v29 = vld [vmem:[#allocation6 + $0xcc] ss:$24 sps:$4 sm:$0xff]   ;;  %v3168_v30 = vld [vmem:[#allocation6 + $0x180] ss:$24 sps:$4 sm:$0xff]  }
  0x32   :  { %4655 = vst [vmem:[#allocation18_spill] sm:$0xff] %v3158_v27  ;;  %4657 = vst [vmem:[#allocation20_spill] sm:$0xff] %v3165_v29  ;;  %v3170_v31 = vld [vmem:[#allocation6 + $0x1b4] ss:$24 sps:$4 sm:$0xff]   ;;  %v3173_v32 = vsub.s32 1, %v3158_v27  ;;  %v3251_v58 = vsub.s32 0, %v3158_v27 }
  0x33   :  { %v3177_v33 = vld [vmem:[#allocation6 + $0xc8] ss:$24 sps:$4 sm:$0xff]   ;;  %v3180_v34 = vld [vmem:[#allocation6 + $0xfc] ss:$24 sps:$4 sm:$0xff]   ;;  %v3193_v39 = vld [vmem:[#allocation6 + $0xf8] ss:$24 sps:$4 sm:$0xff]  }
  0x34   :  { %655 = vmatpush1.bf16.msra.mxu0 %v3102_v7  ;;  %694 = vmatpush1.bf16.msra.mxu1 %v3139_v21  ;;  %4658 = vst [vmem:[#allocation21_spill] sm:$0xff] %v3173_v32  ;;  %4659 = vst [vmem:[#allocation22_spill] sm:$0xff] %v3177_v33  ;;  %v3182_v35 = vld [vmem:[#allocation6 + $0x1b0] ss:$24 sps:$4 sm:$0xff]   ;;  %v3187_v37 = vld [vmem:[#allocation6 + $0x1e4] ss:$24 sps:$4 sm:$0xff]  }
  0x35   :  { %656 = vmatprep.subr.bf16.mxu0 %v3105_v8  ;;  %695 = vmatprep.subr.bf16.mxu1 %v3146_v23  ;;  %4660 = vst [vmem:[#allocation23_spill] sm:$0xff] %v3180_v34  ;;  %4662 = vst [vmem:[#allocation25_spill] sm:$0xff] %v3193_v39  ;;  %v3198_v41 = vld [vmem:[#allocation6 + $0x12c] ss:$24 sps:$4 sm:$0xff]   ;;  %v3201_v42 = vld [vmem:[#allocation6 + $0x1e0] ss:$24 sps:$4 sm:$0xff]  }
  0x36   :  { %4663 = vst [vmem:[#allocation26_spill] sm:$0xff] %v3198_v41  ;;  %v3205_v43 = vld [vmem:[#allocation6 + $0x214] ss:$24 sps:$4 sm:$0xff]   ;;  %v3208_v44 = vld [vmem:[#allocation6 + $0x128] ss:$24 sps:$4 sm:$0xff]   ;;  %4672 = vst [vmem:[#allocation35_spill] sm:$0xff] %v3251_v58 }
  0x37   :  { %v3184_v36 = vld [vmem:[#allocation2] sm:$0x3]  ;;  %4664 = vst [vmem:[#allocation27_spill] sm:$0xff] %v3208_v44  ;;  %v3211_v45 = vld [vmem:[#allocation6 + $0x15c] ss:$24 sps:$4 sm:$0xff]  }
  0x38   :  { %657 = vmatpush1.bf16.msra.mxu0 %v3108_v9  ;;  %696 = vmatpush1.bf16.msra.mxu1 %v3162_v28  ;;  %4661 = vst [vmem:[#allocation24_spill] sm:$0xff] %v3184_v36  ;;  %v163_v38 = vrot.slane %v3184_v36, %v3173_v32  ;;  %4665 = vst [vmem:[#allocation28_spill] sm:$0xff] %v3211_v45  ;;  %v3214_v46 = vld [vmem:[#allocation6 + $0x210] ss:$24 sps:$4 sm:$0xff]   ;;  %v3217_v47 = vld [vmem:[#allocation6 + $0x244] ss:$24 sps:$4 sm:$0xff]   ;;  %v159_v63 = vrot.slane %v3184_v36, %v3251_v58 }
  0x39   :  { %658 = vmatprep.subr.bf16.mxu0 %v3111_v10  ;;  %697 = vmatprep.subr.bf16.mxu1 %v3165_v29  ;;  %v3221_v48 = vld [vmem:[#allocation6 + $0x158] ss:$24 sps:$4 sm:$0xff]   ;;  %v3224_v49 = vld [vmem:[#allocation6 + $0x18c] ss:$24 sps:$4 sm:$0xff]   ;;  %v3233_v52 = vld [vmem:[#allocation6 + $0x188] ss:$24 sps:$4 sm:$0xff]  }
  0x3a   :  { %v3195_v40 = vpack.c.bf16 %v163_v38, %v163_v38  ;;  %4666 = vst [vmem:[#allocation29_spill] sm:$0xff] %v3221_v48  ;;  %4667 = vst [vmem:[#allocation30_spill] sm:$0xff] %v3224_v49  ;;  %v3227_v50 = vld [vmem:[#allocation6 + $0x240] ss:$24 sps:$4 sm:$0xff]   ;;  %v3230_v51 = vld [vmem:[#allocation6 + $0x274] ss:$24 sps:$4 sm:$0xff]   ;;  %v3279_v32 = vpack.c.bf16 %v159_v63, %v159_v63 }
  0x3b   :  { %4668 = vst [vmem:[#allocation31_spill] sm:$0xff] %v3233_v52  ;;  %v3236_v53 = vld [vmem:[#allocation6 + $0x1bc] ss:$24 sps:$4 sm:$0xff]   ;;  %v3238_v54 = vld [vmem:[#allocation6 + $0x270] ss:$24 sps:$4 sm:$0xff]  }
  0x3c   :  { %659 = vmatpush1.bf16.msra.mxu0 %v3118_v13  ;;  %698 = vmatpush1.bf16.msra.mxu1 %v3177_v33  ;;  %4669 = vst [vmem:[#allocation32_spill] sm:$0xff] %v3236_v53  ;;  %v3241_v55 = vld [vmem:[#allocation6 + $0x2a4] ss:$24 sps:$4 sm:$0xff]   ;;  %v3245_v56 = vld [vmem:[#allocation6 + $0x1b8] ss:$24 sps:$4 sm:$0xff]  }
  0x3d   :  { %660 = vmatprep.subr.bf16.mxu0 %v3122_v14  ;;  %699 = vmatprep.subr.bf16.mxu1 %v3180_v34  ;;  %4670 = vst [vmem:[#allocation33_spill] sm:$0xff] %v3245_v56  ;;  %v3248_v57 = vld [vmem:[#allocation6 + $0x1ec] ss:$24 sps:$4 sm:$0xff]   ;;  %v3254_v59 = vld [vmem:[#allocation6 + $0x2a0] ss:$24 sps:$4 sm:$0xff]  }
  0x3e   :  { %680 = vmatprep.mubr.bf16.mxu0 %v3195_v40  ;;  %721 = vmatprep.mubr.bf16.mxu1 %v3195_v40  ;;  %4671 = vst [vmem:[#allocation34_spill] sm:$0xff] %v3248_v57  ;;  %4673 = vst [vmem:[#allocation36_spill] sm:$0xff] %v3254_v59  ;;  %v3257_v60 = vld [vmem:[#allocation6 + $0x2d4] ss:$24 sps:$4 sm:$0xff]   ;;  %v3260_v61 = vld [vmem:[#allocation6 + $0x1e8] ss:$24 sps:$4 sm:$0xff]  }
  0x3f   :  { %4674 = vst [vmem:[#allocation37_spill] sm:$0xff] %v3257_v60  ;;  %4675 = vst [vmem:[#allocation38_spill] sm:$0xff] %v3260_v61  ;;  %v3263_v62 = vld [vmem:[#allocation6 + $0x21c] ss:$24 sps:$4 sm:$0xff]   ;;  %v3268_v16 = vld [vmem:[#allocation6 + $0x2d0] ss:$24 sps:$4 sm:$0xff]  }
  0x40   :  { %661 = vmatpush1.bf16.msra.mxu0 %v3131_v18  ;;  %700 = vmatpush1.bf16.msra.mxu1 %v3193_v39  ;;  %4676 = vst [vmem:[#allocation39_spill] sm:$0xff] %v3263_v62  ;;  %4677 = vst [vmem:[#allocation40_spill] sm:$0xff] %v3268_v16  ;;  %v3271_v25 = vld [vmem:[#allocation6 + $0x14] ss:$24 sps:$4 sm:$0xff]   ;;  %v3274_v38 = vld [vmem:[#allocation6 + $0x218] ss:$24 sps:$4 sm:$0xff]  }
  0x41   :  { %662 = vmatprep.subr.bf16.mxu0 %v3133_v19  ;;  %701 = vmatprep.subr.bf16.mxu1 %v3198_v41  ;;  %4678 = vst [vmem:[#allocation41_spill] sm:$0xff] %v3271_v25  ;;  %4679 = vst [vmem:[#allocation42_spill] sm:$0xff] %v3274_v38  ;;  %v3277_v22 = vld [vmem:[#allocation6 + $0x24c] ss:$24 sps:$4 sm:$0xff]   ;;  %v3282_v36 = vld [vmem:[#allocation6 + $0x10] ss:$24 sps:$4 sm:$0xff]  }
  0x42   :  { %4680 = vst [vmem:[#allocation43_spill] sm:$0xff] %v3277_v22  ;;  %4681 = vst [vmem:[#allocation44_spill] sm:$0xff] %v3282_v36  ;;  %v3285_v58 = vld [vmem:[#allocation6 + $0x44] ss:$24 sps:$4 sm:$0xff]   ;;  %v3288_v27 = vld [vmem:[#allocation6 + $0x248] ss:$24 sps:$4 sm:$0xff]  }
  0x43   :  { %4682 = vst [vmem:[#allocation45_spill] sm:$0xff] %v3285_v58  ;;  %4683 = vst [vmem:[#allocation46_spill] sm:$0xff] %v3288_v27  ;;  %v3295_v63 = vld [vmem:[#allocation6 + $0x40] ss:$24 sps:$4 sm:$0xff]  }
  0x44   :  { %663 = vmatpush1.bf16.msra.mxu0 %v3148_v24  ;;  %702 = vmatpush1.bf16.msra.mxu1 %v3208_v44  ;;  %4685 = vst [vmem:[#allocation48_spill] sm:$0xff] %v3295_v63 }
  0x45   :  { %664 = vmatprep.subr.bf16.mxu0 %v3154_v26  ;;  %703 = vmatprep.subr.bf16.mxu1 %v3211_v45 }
  0x48   :  { %665 = vmatpush1.bf16.msra.mxu0 %v3168_v30  ;;  %704 = vmatpush1.bf16.msra.mxu1 %v3221_v48 }
  0x49   :  { %666 = vmatprep.subr.bf16.mxu0 %v3170_v31  ;;  %705 = vmatprep.subr.bf16.mxu1 %v3224_v49 }
  0x4c   :  { %667 = vmatpush1.bf16.msra.mxu0 %v3182_v35  ;;  %706 = vmatpush1.bf16.msra.mxu1 %v3233_v52 }
  0x4d   :  { %668 = vmatprep.subr.bf16.mxu0 %v3187_v37  ;;  %707 = vmatprep.subr.bf16.mxu1 %v3236_v53 }
  0x50   :  { %669 = vmatpush1.bf16.msra.mxu0 %v3201_v42  ;;  %708 = vmatpush1.bf16.msra.mxu1 %v3245_v56 }
  0x51   :  { %670 = vmatprep.subr.bf16.mxu0 %v3205_v43  ;;  %709 = vmatprep.subr.bf16.mxu1 %v3248_v57  ;;  %v3308_v57 = vld [vmem:[#allocation6 + $0x70] ss:$24 sps:$4 sm:$0xff]  }
  0x52   :  { %4689 = vst [vmem:[#allocation52_spill] sm:$0xff] %v3308_v57 }
  0x54   :  { %671 = vmatpush1.bf16.msra.mxu0 %v3214_v46  ;;  %710 = vmatpush1.bf16.msra.mxu1 %v3260_v61  ;;  %v3291_v61 = vld [vmem:[#allocation6 + $0x27c] ss:$24 sps:$4 sm:$0xff]  }
  0x55   :  { %672 = vmatprep.subr.bf16.mxu0 %v3217_v47  ;;  %711 = vmatprep.subr.bf16.mxu1 %v3263_v62  ;;  %4684 = vst [vmem:[#allocation47_spill] sm:$0xff] %v3291_v61  ;;  %v3299_v62 = vld [vmem:[#allocation6 + $0x74] ss:$24 sps:$4 sm:$0xff]  }
  0x56   :  { %4686 = vst [vmem:[#allocation49_spill] sm:$0xff] %v3299_v62 }
  0x58   :  { %673 = vmatpush1.bf16.msra.mxu0 %v3227_v50  ;;  %712 = vmatpush1.bf16.msra.mxu1 %v3274_v38  ;;  %v3302_v38 = vld [vmem:[#allocation6 + $0x278] ss:$24 sps:$4 sm:$0xff]  }
  0x59   :  { %674 = vmatprep.subr.bf16.mxu0 %v3230_v51  ;;  %713 = vmatprep.subr.bf16.mxu1 %v3277_v22  ;;  %4687 = vst [vmem:[#allocation50_spill] sm:$0xff] %v3302_v38  ;;  %v3305_v22 = vld [vmem:[#allocation6 + $0x2ac] ss:$24 sps:$4 sm:$0xff]  }
  0x5a   :  { %4688 = vst [vmem:[#allocation51_spill] sm:$0xff] %v3305_v22 }
  0x5c   :  { %675 = vmatpush1.bf16.msra.mxu0 %v3238_v54  ;;  %714 = vmatpush1.bf16.msra.mxu1 %v3288_v27 }
  0x5d   :  { %676 = vmatprep.subr.bf16.mxu0 %v3241_v55  ;;  %715 = vmatprep.subr.bf16.mxu1 %v3291_v61  ;;  %v3320_v61 = vld [vmem:[#allocation6 + $0xa0] ss:$24 sps:$4 sm:$0xff]  }
  0x5e   :  { %4693 = vst [vmem:[#allocation56_spill] sm:$0xff] %v3320_v61 }
  0x60   :  { %677 = vmatpush1.bf16.msra.mxu0 %v3254_v59  ;;  %716 = vmatpush1.bf16.msra.mxu1 %v3302_v38  ;;  %v3330_v38 = vld [vmem:[#allocation6 + $0xd0] ss:$24 sps:$4 sm:$0xff]  }
  0x61   :  { %678 = vmatprep.subr.bf16.mxu0 %v3257_v60  ;;  %717 = vmatprep.subr.bf16.mxu1 %v3305_v22  ;;  %4696 = vst [vmem:[#allocation59_spill] sm:$0xff] %v3330_v38  ;;  %v3333_v22 = vld [vmem:[#allocation6 + $0x104] ss:$24 sps:$4 sm:$0xff]  }
  0x62   :  { %4697 = vst [vmem:[#allocation60_spill] sm:$0xff] %v3333_v22 }
  0x64   :  { %679 = vmatpush1.bf16.msra.mxu0 %v3268_v16 }
  0x65   :  { %730 = vmatprep.subr.bf16.mxu0 %v3271_v25 }
  0x67   :  { %681 = vmatmul.mubr.bf16.vlgmr.msra.gmra.mrb[0].mxu0 %v3279_v32 }
  0x68   :  { %731 = vmatpush1.bf16.msra.mxu0 %v3282_v36  ;;  %762 = vmatprep.mubr.bf16.mxu0 %v3195_v40  ;;  %v3311_v36 = vld [vmem:[#allocation6 + $0xa4] ss:$24 sps:$4 sm:$0xff]   ;;  %v3314_v40 = vld [vmem:[#allocation6 + $0x2a8] ss:$24 sps:$4 sm:$0xff]  }
  0x69   :  { %732 = vmatprep.subr.bf16.mxu0 %v3285_v58  ;;  %4690 = vst [vmem:[#allocation53_spill] sm:$0xff] %v3311_v36  ;;  %4691 = vst [vmem:[#allocation54_spill] sm:$0xff] %v3314_v40  ;;  %v3317_v58 = vld [vmem:[#allocation6 + $0x2dc] ss:$24 sps:$4 sm:$0xff]   ;;  %718 = vmatpush1.bf16.msra.mxu1 %v3314_v40 }
  0x6a   :  { %4692 = vst [vmem:[#allocation55_spill] sm:$0xff] %v3317_v58  ;;  %719 = vmatprep.subr.bf16.mxu1 %v3317_v58 }
  0x6c   :  { %733 = vmatpush1.bf16.msra.mxu0 %v3295_v63  ;;  %v3323_v63 = vld [vmem:[#allocation6 + $0xd4] ss:$24 sps:$4 sm:$0xff]  }
  0x6d   :  { %734 = vmatprep.subr.bf16.mxu0 %v3299_v62  ;;  %4694 = vst [vmem:[#allocation57_spill] sm:$0xff] %v3323_v63  ;;  %v3326_v62 = vld [vmem:[#allocation6 + $0x2d8] ss:$24 sps:$4 sm:$0xff]  }
  0x6e   :  { %4695 = vst [vmem:[#allocation58_spill] sm:$0xff] %v3326_v62  ;;  %720 = vmatpush1.bf16.msra.mxu1 %v3326_v62 }
  0x6f   :  { %887 = vmatprep.subr.bf16.mxu1 %v3082_v0 }
  0x70   :  { %735 = vmatpush1.bf16.msra.mxu0 %v3308_v57  ;;  %v3342_v57 = vld [vmem:[#allocation6 + $0x134] ss:$24 sps:$4 sm:$0xff]  }
  0x71   :  { %736 = vmatprep.subr.bf16.mxu0 %v3311_v36  ;;  %v3338_v36 = vld [vmem:[#allocation6 + $0x100] ss:$24 sps:$4 sm:$0xff]   ;;  %722 = vmatmul.mubr.bf16.vlgmr.msra.gmra.mrb[0].mxu1 %v3279_v32  ;;  %4699 = vst [vmem:[#allocation62_spill] sm:$0xff] %v3342_v57 }
  0x72   :  { %4698 = vst [vmem:[#allocation61_spill] sm:$0xff] %v3338_v36  ;;  %888 = vmatpush1.bf16.msra.mxu1 %v3084_v1 }
  0x73   :  { %889 = vmatprep.subr.bf16.mxu1 %v3087_v2 }
  0x74   :  { %737 = vmatpush1.bf16.msra.mxu0 %v3320_v61  ;;  %v3350_v61 = vld [vmem:[#allocation6 + $0x164] ss:$24 sps:$4 sm:$0xff]  }
  0x75   :  { %738 = vmatprep.subr.bf16.mxu0 %v3323_v63  ;;  %v3347_v63 = vld [vmem:[#allocation6 + $0x130] ss:$24 sps:$4 sm:$0xff]   ;;  %4701 = vst [vmem:[#allocation64_spill] sm:$0xff] %v3350_v61 }
  0x76   :  { %4700 = vst [vmem:[#allocation63_spill] sm:$0xff] %v3347_v63  ;;  %890 = vmatpush1.bf16.msra.mxu1 %v3090_v3 }
  0x77   :  { %891 = vmatprep.subr.bf16.mxu1 %v3093_v4 }
  0x78   :  { %739 = vmatpush1.bf16.msra.mxu0 %v3330_v38  ;;  %v3358_v38 = vld [vmem:[#allocation6 + $0x194] ss:$24 sps:$4 sm:$0xff]  }
  0x79   :  { %740 = vmatprep.subr.bf16.mxu0 %v3333_v22  ;;  %v3355_v22 = vld [vmem:[#allocation6 + $0x160] ss:$24 sps:$4 sm:$0xff]   ;;  %4703 = vst [vmem:[#allocation66_spill] sm:$0xff] %v3358_v38 }
  0x7a   :  { %4702 = vst [vmem:[#allocation65_spill] sm:$0xff] %v3355_v22  ;;  %892 = vmatpush1.bf16.msra.mxu1 %v3096_v5 }
  0x7b   :  { %893 = vmatprep.subr.bf16.mxu1 %v3099_v6 }
  0x7c   :  { %741 = vmatpush1.bf16.msra.mxu0 %v3338_v36  ;;  %v3366_v36 = vld [vmem:[#allocation6 + $0x1c4] ss:$24 sps:$4 sm:$0xff]  }
  0x7d   :  { %742 = vmatprep.subr.bf16.mxu0 %v3342_v57  ;;  %v3363_v57 = vld [vmem:[#allocation6 + $0x190] ss:$24 sps:$4 sm:$0xff]   ;;  %4705 = vst [vmem:[#allocation68_spill] sm:$0xff] %v3366_v36 }
  0x7e   :  { %4704 = vst [vmem:[#allocation67_spill] sm:$0xff] %v3363_v57  ;;  %894 = vmatpush1.bf16.msra.mxu1 %v3102_v7 }
  0x7f   :  { %895 = vmatprep.subr.bf16.mxu1 %v3105_v8 }
  0x80   :  { %743 = vmatpush1.bf16.msra.mxu0 %v3347_v63  ;;  %v3374_v63 = vld [vmem:[#allocation6 + $0x1f4] ss:$24 sps:$4 sm:$0xff]  }
  0x81   :  { %744 = vmatprep.subr.bf16.mxu0 %v3350_v61  ;;  %v3371_v61 = vld [vmem:[#allocation6 + $0x1c0] ss:$24 sps:$4 sm:$0xff]   ;;  %4707 = vst [vmem:[#allocation70_spill] sm:$0xff] %v3374_v63 }
  0x82   :  { %4706 = vst [vmem:[#allocation69_spill] sm:$0xff] %v3371_v61  ;;  %896 = vmatpush1.bf16.msra.mxu1 %v3108_v9 }
  0x83   :  { %897 = vmatprep.subr.bf16.mxu1 %v3111_v10 }
  0x84   :  { %745 = vmatpush1.bf16.msra.mxu0 %v3355_v22  ;;  %v3382_v22 = vld [vmem:[#allocation6 + $0x224] ss:$24 sps:$4 sm:$0xff]  }
  0x85   :  { %746 = vmatprep.subr.bf16.mxu0 %v3358_v38  ;;  %v3379_v38 = vld [vmem:[#allocation6 + $0x1f0] ss:$24 sps:$4 sm:$0xff]   ;;  %4709 = vst [vmem:[#allocation72_spill] sm:$0xff] %v3382_v22 }
  0x86   :  { %4708 = vst [vmem:[#allocation71_spill] sm:$0xff] %v3379_v38  ;;  %898 = vmatpush1.bf16.msra.mxu1 %v3118_v13 }
  0x87   :  { %899 = vmatprep.subr.bf16.mxu1 %v3122_v14 }
  0x88   :  { %747 = vmatpush1.bf16.msra.mxu0 %v3363_v57  ;;  %v3390_v57 = vld [vmem:[#allocation6 + $0x254] ss:$24 sps:$4 sm:$0xff]  }
  0x89   :  { %748 = vmatprep.subr.bf16.mxu0 %v3366_v36  ;;  %v3387_v36 = vld [vmem:[#allocation6 + $0x220] ss:$24 sps:$4 sm:$0xff]   ;;  %4711 = vst [vmem:[#allocation74_spill] sm:$0xff] %v3390_v57 }
  0x8a   :  { %4710 = vst [vmem:[#allocation73_spill] sm:$0xff] %v3387_v36  ;;  %900 = vmatpush1.bf16.msra.mxu1 %v3131_v18 }
  0x8b   :  { %901 = vmatprep.subr.bf16.mxu1 %v3133_v19 }
  0x8c   :  { %749 = vmatpush1.bf16.msra.mxu0 %v3371_v61  ;;  %v3398_v61 = vld [vmem:[#allocation6 + $0x284] ss:$24 sps:$4 sm:$0xff]  }
  0x8d   :  { %750 = vmatprep.subr.bf16.mxu0 %v3374_v63  ;;  %v3395_v63 = vld [vmem:[#allocation6 + $0x250] ss:$24 sps:$4 sm:$0xff]   ;;  %4712 = vst [vmem:[#allocation75_spill] sm:$0xff] %v3398_v61 }
  0x8e   :  { %902 = vmatpush1.bf16.msra.mxu1 %v3148_v24 }
  0x8f   :  { %903 = vmatprep.subr.bf16.mxu1 %v3154_v26 }
  0x90   :  { %751 = vmatpush1.bf16.msra.mxu0 %v3379_v38  ;;  %v3406_v38 = vld [vmem:[#allocation6 + $0x2b4] ss:$24 sps:$4 sm:$0xff]  }
  0x91   :  { %752 = vmatprep.subr.bf16.mxu0 %v3382_v22  ;;  %v3403_v22 = vld [vmem:[#allocation6 + $0x280] ss:$24 sps:$4 sm:$0xff]   ;;  %4713 = vst [vmem:[#allocation76_spill] sm:$0xff] %v3406_v38 }
  0x92   :  { %904 = vmatpush1.bf16.msra.mxu1 %v3168_v30 }
  0x93   :  { %905 = vmatprep.subr.bf16.mxu1 %v3170_v31 }
  0x94   :  { %753 = vmatpush1.bf16.msra.mxu0 %v3387_v36  ;;  %v3414_v36 = vld [vmem:[#allocation6 + $0x2e4] ss:$24 sps:$4 sm:$0xff]  }
  0x95   :  { %754 = vmatprep.subr.bf16.mxu0 %v3390_v57  ;;  %v3411_v57 = vld [vmem:[#allocation6 + $0x2b0] ss:$24 sps:$4 sm:$0xff]   ;;  %4715 = vst [vmem:[#allocation78_spill] sm:$0xff] %v3414_v36 }
  0x96   :  { %4714 = vst [vmem:[#allocation77_spill] sm:$0xff] %v3411_v57  ;;  %906 = vmatpush1.bf16.msra.mxu1 %v3182_v35 }
  0x97   :  { %907 = vmatprep.subr.bf16.mxu1 %v3187_v37 }
  0x98   :  { %755 = vmatpush1.bf16.msra.mxu0 %v3395_v63 }
  0x99   :  { %756 = vmatprep.subr.bf16.mxu0 %v3398_v61  ;;  %v3419_v61 = vld [vmem:[#allocation6 + $0x2e0] ss:$24 sps:$4 sm:$0xff]  }
  0x9a   :  { %4716 = vst [vmem:[#allocation79_spill] sm:$0xff] %v3419_v61  ;;  %908 = vmatpush1.bf16.msra.mxu1 %v3201_v42 }
  0x9b   :  { %909 = vmatprep.subr.bf16.mxu1 %v3205_v43 }
  0x9c   :  { %757 = vmatpush1.bf16.msra.mxu0 %v3403_v22 }
  0x9d   :  { %758 = vmatprep.subr.bf16.mxu0 %v3406_v38 }
  0x9e   :  { %910 = vmatpush1.bf16.msra.mxu1 %v3214_v46 }
  0x9f   :  { %911 = vmatprep.subr.bf16.mxu1 %v3217_v47 }
  0xa0   :  { %759 = vmatpush1.bf16.msra.mxu0 %v3411_v57 }
  0xa1   :  { %760 = vmatprep.subr.bf16.mxu0 %v3414_v36 }
  0xa2   :  { %912 = vmatpush1.bf16.msra.mxu1 %v3227_v50 }
  0xa3   :  { %913 = vmatprep.subr.bf16.mxu1 %v3230_v51 }
  0xa4   :  { %761 = vmatpush1.bf16.msra.mxu0 %v3419_v61 }
  0xa5   :  { %928 = vmatprep.subr.bf16.mxu0 %v3113_v11 }
  0xa6   :  { %914 = vmatpush1.bf16.msra.mxu1 %v3238_v54 }
  0xa7   :  { %763 = vmatmul.mubr.bf16.vlgmr.msra.gmra.mrb[4].mxu0 %v3279_v32  ;;  %915 = vmatprep.subr.bf16.mxu1 %v3241_v55  ;;  %v4717_v32 = vld [vmem:[#allocation34_spill] sm:$0xff] }
  0xa8   :  { %929 = vmatpush1.bf16.msra.mxu0 %v3115_v12 }
  0xa9   :  { %930 = vmatprep.subr.bf16.mxu0 %v3125_v15  ;;  %v4729_v15 = vld [vmem:[#allocation24_spill] sm:$0xff] }
  0xaa   :  { %916 = vmatpush1.bf16.msra.mxu1 %v3254_v59 }
  0xab   :  { %917 = vmatprep.subr.bf16.mxu1 %v3257_v60 }
  0xac   :  { %931 = vmatpush1.bf16.msra.mxu0 %v3127_v17 }
  0xad   :  { %932 = vmatprep.subr.bf16.mxu0 %v3135_v20 }
  0xae   :  { %918 = vmatpush1.bf16.msra.mxu1 %v3268_v16 }
  0xaf   :  { %969 = vmatprep.subr.bf16.mxu1 %v3271_v25 }
  0xb0   :  { %933 = vmatpush1.bf16.msra.mxu0 %v3139_v21 }
  0xb1   :  { %934 = vmatprep.subr.bf16.mxu0 %v3146_v23 }
  0xb4   :  { %935 = vmatpush1.bf16.msra.mxu0 %v3162_v28 }
  0xb5   :  { %936 = vmatprep.subr.bf16.mxu0 %v3165_v29 }
  0xb8   :  { %937 = vmatpush1.bf16.msra.mxu0 %v3177_v33 }
  0xb9   :  { %938 = vmatprep.subr.bf16.mxu0 %v3180_v34  ;;  %v4718_v34 = vld [vmem:[#allocation38_spill] sm:$0xff] }
  0xbc   :  { %939 = vmatpush1.bf16.msra.mxu0 %v3193_v39  ;;  %v4719_v39 = vld [vmem:[#allocation39_spill] sm:$0xff] }
  0xbd   :  { %940 = vmatprep.subr.bf16.mxu0 %v3198_v41  ;;  %v4720_v41 = vld [vmem:[#allocation42_spill] sm:$0xff] }
  0xc0   :  { %941 = vmatpush1.bf16.msra.mxu0 %v3208_v44  ;;  %v4721_v44 = vld [vmem:[#allocation43_spill] sm:$0xff] }
  0xc1   :  { %942 = vmatprep.subr.bf16.mxu0 %v3211_v45 }
  0xc4   :  { %943 = vmatpush1.bf16.msra.mxu0 %v3221_v48  ;;  %v4722_v48 = vld [vmem:[#allocation47_spill] sm:$0xff] }
  0xc5   :  { %944 = vmatprep.subr.bf16.mxu0 %v3224_v49  ;;  %v4723_v49 = vld [vmem:[#allocation50_spill] sm:$0xff] }
  0xc8   :  { %945 = vmatpush1.bf16.msra.mxu0 %v3233_v52  ;;  %v4724_v52 = vld [vmem:[#allocation51_spill] sm:$0xff] }
  0xc9   :  { %946 = vmatprep.subr.bf16.mxu0 %v3236_v53 }
  0xcc   :  { %947 = vmatpush1.bf16.msra.mxu0 %v3245_v56  ;;  %v3024_v56 = vmov 1966171168  }
  0xcd   :  { %948 = vmatprep.subr.bf16.mxu0 %v4717_v32 }
  0xd0   :  { %949 = vmatpush1.bf16.msra.mxu0 %v4718_v34 }
  0xd1   :  { %950 = vmatprep.subr.bf16.mxu0 %v4719_v39 }
  0xd4   :  { %951 = vmatpush1.bf16.msra.mxu0 %v4720_v41 }
  0xd5   :  { %952 = vmatprep.subr.bf16.mxu0 %v4721_v44 }
  0xd8   :  { %953 = vmatpush1.bf16.msra.mxu0 %v3288_v27 }
  0xd9   :  { %954 = vmatprep.subr.bf16.mxu0 %v4722_v48  ;;  %v775_v48 = vunpack.c.l.s4 %v3024_v56 }
  0xdb   :  { %v776_v33 = vunpack.c.0.s8 %v775_v48 }
  0xdc   :  { %955 = vmatpush1.bf16.msra.mxu0 %v4723_v49 }
  0xdd   :  { %956 = vmatprep.subr.bf16.mxu0 %v4724_v52 }
  0xe0   :  { %957 = vmatpush1.bf16.msra.mxu0 %v3314_v40  ;;  %v4725_v40 = vld [vmem:[#allocation18_spill] sm:$0xff] }
  0xe1   :  { %958 = vmatprep.subr.bf16.mxu0 %v3317_v58  ;;  %v3470_v29 = vsub.s32 %v776_v33, %v4725_v40  ;;  %v152_v58 = vld [vmem:[#allocation3] ss:$8 sm:$0xf] }
  0xe4   :  { %959 = vmatpush1.bf16.msra.mxu0 %v3326_v62 }
  0xe5   :  { %1112 = vmatprep.subr.bf16.mxu0 %v3082_v0  ;;  %v153_v0 = vld [vmem:[#allocation3] ss:$8 sm:$0x30] }
  0xe6   :  { %v154_v28 = vor.u32 %v153_v0, %v152_v58 }
  0xe8   :  { %v797_v56 = vrot.slane %v154_v28, 2  ;;  %v856_v23 = vrot.slane %v154_v28, 4 }
 0x13a   :  { %v682_v39 = vpop.f32.mrb[0].mxu0 }
 0x13b   :  { %v684_v41 = vpop.f32.mrb[1].mxu0 }
 0x13c   :  { %v773_v34 = vcombine.low %v682_v39, %v684_v41  ;;  %v686_v44 = vpop.f32.mrb[2].mxu0 }
 0x13d   :  { %v687_v32 = vpop.f32.mrb[3].mxu0 }
 0x13e   :  { %v780_v62 = vrot.slane %v773_v34, %v3470_v29  ;;  %v151_v34 = vld [vmem:[%s4415_s3] sm:$0x3]  ;;  %s3025_s3 = smov [#allocation8]  }
 0x13f   :  { %s2452_s16 = sshll.u32 %s3025_s3, 4  ;;  %s2453_s16 = int_to_ptr.vmem [resolvable:$true] %s2452_s16 }
 0x140   :  { %v787_v39 = vrot.slane %v780_v62, %v3470_v29  ;;  %v4728_v62 = vld [vmem:[#allocation21_spill] sm:$0xff]  ;;  %s2992_s17 = scalar_lea.vmem %s2453_s16, 256  ;;  %p2997_p3 = scmp.lt.s32.totalorder %s2453_s16, %s2453_s16 }
 0x141   :  { %v3483_v40 = vrot.slane %v151_v34, %v4728_v62  ;;  %p2993_p2 = scmp.ne.s32.totalorder %s2453_s16, %s2992_s17  ;;  %p2998_p4 = scmp.lt.s32.totalorder %s2992_s17, %s2992_s17 }
 0x142   :  { %v789_v41 = vadd.f32 %v787_v39, %v154_v28 }
 0x143   :  { %p2999_p5 = por %p2998_p4, %p2997_p3 }
 0x144   :  { %v723_v27 = vpop.f32.mrb[0].mxu1  ;;  %v2558_v32 = vmul.f32 -1.442695, %v789_v41 }
 0x145   :  { %v725_v53 = vpop.f32.mrb[1].mxu1  ;;  %p3000_p6 = pnand %p2999_p5, %p2993_p2 }
 0x146   :  { %v801_v49 = vcombine.low %v723_v27, %v725_v53  ;;  %v727_v45 = vpop.f32.mrb[2].mxu1  ;;  %2724 = vpow2.f32 %v2558_v32  ;;  %v4726_v53 = vld [vmem:[#allocation35_spill] sm:$0xff] }
 0x147   :  { %v728_v52 = vpop.f32.mrb[3].mxu1  ;;  %v3480_v58 = vrot.slane %v151_v34, %v4726_v53 }
 0x148   :  { %v808_v44 = vrot.slane %v801_v49, %v3470_v29 }
 0x149   :  { %4727 = vst [vmem:[#allocation18_spill] sm:$0xff] %v3480_v58 }
 0x14a   :  { %v815_v27 = vrot.slane %v808_v44, %v3470_v29 }
 0x14c   :  { %v817_v45 = vadd.f32 %v815_v27, %v797_v56 }
 0x14e   :  { %v2559_v48 = vmul.f32 -1.442695, %v817_v45 }
 0x150   :  { %2726 = vpow2.f32 %v2559_v48  ;;  %v2725_v33 = vpop.eup %2724 }
 0x151   :  { %v793_v52 = vadd.f32 1.0, %v2725_v33 }
 0x153   :  { %2728 = vrcp.f32 %v793_v52 }
 0x15a   :  { %v2727_v0 = vpop.eup %2726 }
 0x15b   :  { %v821_v27 = vadd.f32 1.0, %v2727_v0 }
 0x15d   :  { %2730 = vrcp.f32 %v821_v27  ;;  %v2729_v34 = vpop.eup %2728  ;;  %v4737_v27 = vld [vmem:[#allocation56_spill] sm:$0xff] }
 0x167   :  { %v2731_v20 = vpop.eup %2730 }
 0x168   :  { %v860_v17 = vsub.f32 1.0, %v2731_v20 }
 0x17a   :  { %v764_v49 = vpop.f32.mrb[4].mxu0 }
 0x17b   :  { %v835_v39 = vadd.f32 %v3480_v58, %v764_v49  ;;  %v766_v41 = vpop.f32.mrb[5].mxu0 }
 0x17c   :  { %v836_v44 = vadd.f32 %v3483_v40, %v766_v41  ;;  %v768_v32 = vpop.f32.mrb[6].mxu0  ;;  %v862_v41 = vmul.f32 %v2731_v20, %v4729_v15  ;;  %v4731_v15 = vld [vmem:[#allocation44_spill] sm:$0xff] }
 0x17d   :  { %v769_v56 = vpop.f32.mrb[7].mxu0  ;;  %v4733_v20 = vld [vmem:[#allocation48_spill] sm:$0xff] }
 0x17e   :  { %v839_v45 = vcombine.low %v835_v39, %v836_v44  ;;  %v4735_v44 = vld [vmem:[#allocation52_spill] sm:$0xff]  ;;  %v4736_v56 = vld [vmem:[#allocation53_spill] sm:$0xff] }
 0x180   :  { %v846_v48 = vrot.slane %v839_v45, %v3470_v29  ;;  %v4758_v45 = vld [vmem:[#allocation14_spill] sm:$0xff] }
 0x182   :  { %v853_v33 = vrot.slane %v846_v48, %v3470_v29  ;;  %v4759_v48 = vld [vmem:[#allocation15_spill] sm:$0xff] }
 0x184   :  { %v855_v21 = vmul.f32 %v2729_v34, %v853_v33  ;;  %v4760_v33 = vld [vmem:[#allocation17_spill] sm:$0xff]  ;;  %v4761_v34 = vld [vmem:[#allocation19_spill] sm:$0xff] }
 0x186   :  { %v858_v52 = vadd.f32 %v856_v23, %v855_v21 }
 0x188   :  { %2732 = vtanh.f32 %v858_v52  ;;  %v4763_v52 = vld [vmem:[#allocation22_spill] sm:$0xff] }
 0x192   :  { %v2733_v49 = vpop.eup %2732 }
 0x193   :  { %v861_v58 = vmul.f32 %v2733_v49, %v860_v17  ;;  %v4732_v17 = vld [vmem:[#allocation45_spill] sm:$0xff]  ;;  %v4764_v49 = vld [vmem:[#allocation23_spill] sm:$0xff] }
 0x195   :  { %v3490_v32 = vadd.f32 %v862_v41, %v861_v58  ;;  %v4734_v58 = vld [vmem:[#allocation49_spill] sm:$0xff] }
 0x196   :  { %v4765_v41 = vld [vmem:[#allocation25_spill] sm:$0xff] }
 0x197   :  { %868 = vst.msk [vmem:[#allocation8] ss:$8 sm:$0x3] %vm3141_vm0, %v3490_v32  ;;  %v882_v39 = vrot.slane %v3490_v32, %v4728_v62  ;;  %v878_v28 = vrot.slane %v3490_v32, %v4726_v53 }
 0x199   :  { %v886_v21 = vpack.c.bf16 %v882_v39, %v882_v39  ;;  %v3499_v23 = vpack.c.bf16 %v878_v28, %v878_v28  ;;  %v4767_v39 = vld [vmem:[#allocation27_spill] sm:$0xff]  ;;  %v4768_v28 = vld [vmem:[#allocation28_spill] sm:$0xff] }
 0x19b   :  { %919 = vmatprep.mubr.bf16.mxu1 %v886_v21  ;;  %960 = vmatprep.mubr.bf16.mxu0 %v886_v21 }
 0x19c   :  { %920 = vmatmul.mubr.bf16.vlgmr.msra.gmra.mrb[4].mxu1 %v3499_v23  ;;  %961 = vmatmul.mubr.bf16.vlgmr.msra.gmra.mrb[8].mxu0 %v3499_v23 }
 0x19d   :  { %970 = vmatpush1.bf16.msra.mxu1 %v4731_v15  ;;  %1001 = vmatprep.mubr.bf16.mxu1 %v886_v21  ;;  %v4769_v21 = vld [vmem:[#allocation29_spill] sm:$0xff] }
 0x19e   :  { %971 = vmatprep.subr.bf16.mxu1 %v4732_v17  ;;  %1113 = vmatpush1.bf16.msra.mxu0 %v3084_v1  ;;  %v4738_v1 = vld [vmem:[#allocation57_spill] sm:$0xff] }
 0x19f   :  { %1114 = vmatprep.subr.bf16.mxu0 %v3087_v2  ;;  %v4739_v2 = vld [vmem:[#allocation59_spill] sm:$0xff] }
 0x1a1   :  { %972 = vmatpush1.bf16.msra.mxu1 %v4733_v20 }
 0x1a2   :  { %973 = vmatprep.subr.bf16.mxu1 %v4734_v58  ;;  %1115 = vmatpush1.bf16.msra.mxu0 %v3090_v3  ;;  %v4740_v3 = vld [vmem:[#allocation60_spill] sm:$0xff] }
 0x1a3   :  { %1116 = vmatprep.subr.bf16.mxu0 %v3093_v4  ;;  %v4741_v4 = vld [vmem:[#allocation61_spill] sm:$0xff] }
 0x1a5   :  { %974 = vmatpush1.bf16.msra.mxu1 %v4735_v44 }
 0x1a6   :  { %975 = vmatprep.subr.bf16.mxu1 %v4736_v56  ;;  %1117 = vmatpush1.bf16.msra.mxu0 %v3096_v5  ;;  %v4742_v5 = vld [vmem:[#allocation62_spill] sm:$0xff] }
 0x1a7   :  { %1118 = vmatprep.subr.bf16.mxu0 %v3099_v6  ;;  %v4743_v6 = vld [vmem:[#allocation63_spill] sm:$0xff] }
 0x1a9   :  { %976 = vmatpush1.bf16.msra.mxu1 %v4737_v27 }
 0x1aa   :  { %977 = vmatprep.subr.bf16.mxu1 %v4738_v1  ;;  %1119 = vmatpush1.bf16.msra.mxu0 %v3102_v7  ;;  %v4744_v7 = vld [vmem:[#allocation64_spill] sm:$0xff] }
 0x1ab   :  { %1120 = vmatprep.subr.bf16.mxu0 %v3105_v8  ;;  %v4745_v8 = vld [vmem:[#allocation65_spill] sm:$0xff] }
 0x1ad   :  { %978 = vmatpush1.bf16.msra.mxu1 %v4739_v2 }
 0x1ae   :  { %979 = vmatprep.subr.bf16.mxu1 %v4740_v3  ;;  %1121 = vmatpush1.bf16.msra.mxu0 %v3108_v9  ;;  %v4746_v9 = vld [vmem:[#allocation66_spill] sm:$0xff] }
 0x1af   :  { %1122 = vmatprep.subr.bf16.mxu0 %v3111_v10  ;;  %v4747_v10 = vld [vmem:[#allocation67_spill] sm:$0xff] }
 0x1b1   :  { %980 = vmatpush1.bf16.msra.mxu1 %v4741_v4 }
 0x1b2   :  { %981 = vmatprep.subr.bf16.mxu1 %v4742_v5  ;;  %1123 = vmatpush1.bf16.msra.mxu0 %v3118_v13  ;;  %v4748_v13 = vld [vmem:[#allocation68_spill] sm:$0xff] }
 0x1b3   :  { %1124 = vmatprep.subr.bf16.mxu0 %v3122_v14  ;;  %v4749_v14 = vld [vmem:[#allocation69_spill] sm:$0xff] }
 0x1b5   :  { %982 = vmatpush1.bf16.msra.mxu1 %v4743_v6 }
 0x1b6   :  { %983 = vmatprep.subr.bf16.mxu1 %v4744_v7  ;;  %1125 = vmatpush1.bf16.msra.mxu0 %v3131_v18  ;;  %v4750_v18 = vld [vmem:[#allocation70_spill] sm:$0xff] }
 0x1b7   :  { %1126 = vmatprep.subr.bf16.mxu0 %v3133_v19  ;;  %v4751_v19 = vld [vmem:[#allocation71_spill] sm:$0xff] }
 0x1b9   :  { %984 = vmatpush1.bf16.msra.mxu1 %v4745_v8 }
 0x1ba   :  { %985 = vmatprep.subr.bf16.mxu1 %v4746_v9  ;;  %1127 = vmatpush1.bf16.msra.mxu0 %v3148_v24  ;;  %v4752_v24 = vld [vmem:[#allocation72_spill] sm:$0xff] }
 0x1bb   :  { %1128 = vmatprep.subr.bf16.mxu0 %v3154_v26  ;;  %v4753_v26 = vld [vmem:[#allocation73_spill] sm:$0xff] }
 0x1bd   :  { %986 = vmatpush1.bf16.msra.mxu1 %v4747_v10 }
 0x1be   :  { %987 = vmatprep.subr.bf16.mxu1 %v4748_v13  ;;  %1129 = vmatpush1.bf16.msra.mxu0 %v3168_v30  ;;  %v4754_v30 = vld [vmem:[#allocation74_spill] sm:$0xff] }
 0x1bf   :  { %1130 = vmatprep.subr.bf16.mxu0 %v3170_v31  ;;  %v4755_v31 = vld [vmem:[#allocation75_spill] sm:$0xff] }
 0x1c1   :  { %988 = vmatpush1.bf16.msra.mxu1 %v4749_v14 }
 0x1c2   :  { %989 = vmatprep.subr.bf16.mxu1 %v4750_v18  ;;  %1131 = vmatpush1.bf16.msra.mxu0 %v3182_v35  ;;  %v4756_v35 = vld [vmem:[#allocation12_spill] sm:$0xff] }
 0x1c3   :  { %1132 = vmatprep.subr.bf16.mxu0 %v3187_v37  ;;  %v4757_v37 = vld [vmem:[#allocation13_spill] sm:$0xff] }
 0x1c5   :  { %990 = vmatpush1.bf16.msra.mxu1 %v4751_v19 }
 0x1c6   :  { %991 = vmatprep.subr.bf16.mxu1 %v4752_v24  ;;  %1133 = vmatpush1.bf16.msra.mxu0 %v3201_v42 }
 0x1c7   :  { %1134 = vmatprep.subr.bf16.mxu0 %v3205_v43 }
 0x1c9   :  { %992 = vmatpush1.bf16.msra.mxu1 %v4753_v26 }
 0x1ca   :  { %993 = vmatprep.subr.bf16.mxu1 %v4754_v30  ;;  %1135 = vmatpush1.bf16.msra.mxu0 %v3214_v46 }
 0x1cb   :  { %1136 = vmatprep.subr.bf16.mxu0 %v3217_v47 }
 0x1cd   :  { %994 = vmatpush1.bf16.msra.mxu1 %v3395_v63 }
 0x1ce   :  { %995 = vmatprep.subr.bf16.mxu1 %v4755_v31  ;;  %1137 = vmatpush1.bf16.msra.mxu0 %v3227_v50 }
 0x1cf   :  { %1138 = vmatprep.subr.bf16.mxu0 %v3230_v51 }
 0x1d1   :  { %996 = vmatpush1.bf16.msra.mxu1 %v3403_v22 }
 0x1d2   :  { %997 = vmatprep.subr.bf16.mxu1 %v3406_v38  ;;  %1139 = vmatpush1.bf16.msra.mxu0 %v3238_v54 }
 0x1d3   :  { %1140 = vmatprep.subr.bf16.mxu0 %v3241_v55 }
 0x1d5   :  { %998 = vmatpush1.bf16.msra.mxu1 %v3411_v57 }
 0x1d6   :  { %999 = vmatprep.subr.bf16.mxu1 %v3414_v36  ;;  %1141 = vmatpush1.bf16.msra.mxu0 %v3254_v59 }
 0x1d7   :  { %1142 = vmatprep.subr.bf16.mxu0 %v3257_v60 }
 0x1d9   :  { %1000 = vmatpush1.bf16.msra.mxu1 %v3419_v61 }
 0x1da   :  { %1153 = vmatprep.subr.bf16.mxu1 %v3113_v11  ;;  %1143 = vmatpush1.bf16.msra.mxu0 %v3268_v16  ;;  %v4762_v11 = vld [vmem:[#allocation20_spill] sm:$0xff] }
 0x1db   :  { %1194 = vmatprep.subr.bf16.mxu0 %v3271_v25 }
 0x1dc   :  { %1002 = vmatmul.mubr.bf16.vlgmr.msra.gmra.mrb[8].mxu1 %v3499_v23  ;;  %v4770_v23 = vld [vmem:[#allocation30_spill] sm:$0xff] }
 0x1dd   :  { %1154 = vmatpush1.bf16.msra.mxu1 %v3115_v12  ;;  %v4766_v12 = vld [vmem:[#allocation26_spill] sm:$0xff] }
 0x1de   :  { %1155 = vmatprep.subr.bf16.mxu1 %v4756_v35  ;;  %v4771_v35 = vld [vmem:[#allocation31_spill] sm:$0xff] }
 0x1e1   :  { %1156 = vmatpush1.bf16.msra.mxu1 %v4757_v37  ;;  %v4772_v37 = vld [vmem:[#allocation32_spill] sm:$0xff] }
 0x1e2   :  { %1157 = vmatprep.subr.bf16.mxu1 %v4758_v45  ;;  %v4773_v45 = vld [vmem:[#allocation33_spill] sm:$0xff] }
 0x1e5   :  { %1158 = vmatpush1.bf16.msra.mxu1 %v4759_v48  ;;  %v4774_v48 = vld [vmem:[#allocation34_spill] sm:$0xff] }
 0x1e6   :  { %1159 = vmatprep.subr.bf16.mxu1 %v4760_v33  ;;  %v4775_v33 = vld [vmem:[#allocation38_spill] sm:$0xff] }
 0x1e9   :  { %1160 = vmatpush1.bf16.msra.mxu1 %v4761_v34  ;;  %v4776_v34 = vld [vmem:[#allocation39_spill] sm:$0xff] }
 0x1ea   :  { %1161 = vmatprep.subr.bf16.mxu1 %v4762_v11  ;;  %v4777_v11 = vld [vmem:[#allocation42_spill] sm:$0xff] }
 0x1ed   :  { %1162 = vmatpush1.bf16.msra.mxu1 %v4763_v52  ;;  %v4778_v52 = vld [vmem:[#allocation43_spill] sm:$0xff] }
 0x1ee   :  { %1163 = vmatprep.subr.bf16.mxu1 %v4764_v49  ;;  %v4779_v49 = vld [vmem:[#allocation46_spill] sm:$0xff] }
 0x1f1   :  { %1164 = vmatpush1.bf16.msra.mxu1 %v4765_v41  ;;  %v4780_v41 = vld [vmem:[#allocation47_spill] sm:$0xff] }
 0x1f2   :  { %1165 = vmatprep.subr.bf16.mxu1 %v4766_v12  ;;  %v4781_v12 = vld [vmem:[#allocation50_spill] sm:$0xff] }
 0x1f5   :  { %1166 = vmatpush1.bf16.msra.mxu1 %v4767_v39  ;;  %v4782_v39 = vld [vmem:[#allocation51_spill] sm:$0xff] }
 0x1f6   :  { %1167 = vmatprep.subr.bf16.mxu1 %v4768_v28  ;;  %v4783_v28 = vld [vmem:[#allocation54_spill] sm:$0xff] }
 0x1f9   :  { %1168 = vmatpush1.bf16.msra.mxu1 %v4769_v21  ;;  %v4784_v21 = vld [vmem:[#allocation55_spill] sm:$0xff] }
 0x1fa   :  { %1169 = vmatprep.subr.bf16.mxu1 %v4770_v23  ;;  %v4785_v23 = vld [vmem:[#allocation58_spill] sm:$0xff] }
 0x1fd   :  { %1170 = vmatpush1.bf16.msra.mxu1 %v4771_v35  ;;  %v871_v35 = vld [vmem:[#allocation3 + $0x1] ss:$8 sm:$0xf] }
 0x1fe   :  { %1171 = vmatprep.subr.bf16.mxu1 %v4772_v37 }
 0x201   :  { %1172 = vmatpush1.bf16.msra.mxu1 %v4773_v45 }
 0x202   :  { %1173 = vmatprep.subr.bf16.mxu1 %v4774_v48 }
 0x205   :  { %1174 = vmatpush1.bf16.msra.mxu1 %v4775_v33  ;;  %v3599_v33 = vld [vmem:[#allocation6 + $0x4] ss:$24 sps:$4 sm:$0xff]  }
 0x206   :  { %1175 = vmatprep.subr.bf16.mxu1 %v4776_v34  ;;  %4786 = vst [vmem:[#allocation35_spill] sm:$0xff] %v3599_v33 }
 0x209   :  { %1176 = vmatpush1.bf16.msra.mxu1 %v4777_v11 }
 0x20a   :  { %1177 = vmatprep.subr.bf16.mxu1 %v4778_v52 }
 0x20d   :  { %1178 = vmatpush1.bf16.msra.mxu1 %v4779_v49 }
 0x20e   :  { %1179 = vmatprep.subr.bf16.mxu1 %v4780_v41 }
 0x211   :  { %1180 = vmatpush1.bf16.msra.mxu1 %v4781_v12 }
 0x212   :  { %1181 = vmatprep.subr.bf16.mxu1 %v4782_v39 }
 0x215   :  { %1182 = vmatpush1.bf16.msra.mxu1 %v4783_v28 }
 0x216   :  { %1183 = vmatprep.subr.bf16.mxu1 %v4784_v21  ;;  %v872_v21 = vld [vmem:[#allocation3 + $0x1] ss:$8 sm:$0x30] }
 0x217   :  { %v873_v25 = vor.u32 %v872_v21, %v871_v35 }
 0x219   :  { %1184 = vmatpush1.bf16.msra.mxu1 %v4785_v23  ;;  %v1036_v60 = vrot.slane %v873_v25, 2 }
 0x21a   :  { %1337 = vmatprep.subr.bf16.mxu1 %v3599_v33 }
 0x26f   :  { %v921_v11 = vpop.f32.mrb[4].mxu1  ;;  %v962_v52 = vpop.f32.mrb[8].mxu0 }
 0x270   :  { %v923_v34 = vpop.f32.mrb[5].mxu1  ;;  %v964_v49 = vpop.f32.mrb[9].mxu0 }
 0x271   :  { %v1012_v48 = vcombine.low %v921_v11, %v923_v34  ;;  %v1040_v41 = vcombine.low %v962_v52, %v964_v49  ;;  %v925_v45 = vpop.f32.mrb[6].mxu1  ;;  %v966_v12 = vpop.f32.mrb[10].mxu0  ;;  %v4787_v52 = vld [vmem:[#allocation18_spill] sm:$0xff] }
 0x272   :  { %v926_v37 = vpop.f32.mrb[7].mxu1  ;;  %v967_v39 = vpop.f32.mrb[11].mxu0 }
 0x273   :  { %v1019_v28 = vrot.slane %v1012_v48, %v3470_v29  ;;  %v1047_v33 = vrot.slane %v1040_v41, %v3470_v29 }
 0x275   :  { %v1026_v23 = vrot.slane %v1019_v28, %v3470_v29  ;;  %v1054_v59 = vrot.slane %v1047_v33, %v3470_v29 }
 0x277   :  { %v1028_v16 = vadd.f32 %v1026_v23, %v873_v25  ;;  %v1056_v34 = vadd.f32 %v1054_v59, %v1036_v60  ;;  %v1084_v60 = vrot.slane %v873_v25, 4 }
 0x279   :  { %v2560_v61 = vmul.f32 -1.442695, %v1028_v16  ;;  %v2561_v45 = vmul.f32 -1.442695, %v1056_v34 }
 0x27b   :  { %2734 = vpow2.f32 %v2560_v61 }
 0x27c   :  { %2736 = vpow2.f32 %v2561_v45 }
 0x285   :  { %v2735_v11 = vpop.eup %2734 }
 0x286   :  { %v1032_v37 = vadd.f32 1.0, %v2735_v11  ;;  %v2737_v28 = vpop.eup %2736 }
 0x287   :  { %v1060_v21 = vadd.f32 1.0, %v2737_v28 }
 0x288   :  { %2738 = vrcp.f32 %v1032_v37 }
 0x289   :  { %2740 = vrcp.f32 %v1060_v21  ;;  %v3645_v21 = vld [vmem:[#allocation6 + $0x94] ss:$24 sps:$4 sm:$0xff]  }
 0x292   :  { %v2739_v61 = vpop.eup %2738 }
 0x293   :  { %v2741_v45 = vpop.eup %2740 }
 0x294   :  { %v1088_v11 = vsub.f32 1.0, %v2741_v45 }
 0x2af   :  { %v1003_v48 = vpop.f32.mrb[8].mxu1 }
 0x2b0   :  { %v1063_v49 = vadd.f32 %v1003_v48, %v4787_v52  ;;  %v1005_v12 = vpop.f32.mrb[9].mxu1 }
 0x2b1   :  { %v1064_v35 = vadd.f32 %v1005_v12, %v3483_v40  ;;  %v1007_v39 = vpop.f32.mrb[10].mxu1  ;;  %v1090_v12 = vmul.f32 %v2741_v45, %v3490_v32  ;;  %v3626_v32 = vld [vmem:[#allocation6] ss:$24 sps:$4 sm:$0xff]  }
 0x2b2   :  { %v1008_v41 = vpop.f32.mrb[11].mxu1  ;;  %v3737_v45 = vld [vmem:[#allocation6 + $0x38] ss:$24 sps:$4 sm:$0xff]  }
 0x2b3   :  { %v1067_v16 = vcombine.low %v1063_v49, %v1064_v35  ;;  %v3629_v41 = vld [vmem:[#allocation6 + $0x34] ss:$24 sps:$4 sm:$0xff]   ;;  %4798 = vst [vmem:[#allocation48_spill] sm:$0xff] %v3737_v45 }
 0x2b5   :  { %v1074_v33 = vrot.slane %v1067_v16, %v3470_v29  ;;  %v3634_v16 = vld [vmem:[#allocation6 + $0x30] ss:$24 sps:$4 sm:$0xff]  }
 0x2b7   :  { %v1081_v59 = vrot.slane %v1074_v33, %v3470_v29  ;;  %v3682_v33 = vld [vmem:[#allocation6 + $0x150] ss:$24 sps:$4 sm:$0xff]  }
 0x2b9   :  { %v1083_v23 = vmul.f32 %v2739_v61, %v1081_v59  ;;  %v3685_v59 = vld [vmem:[#allocation6 + $0x184] ss:$24 sps:$4 sm:$0xff]   ;;  %v3693_v61 = vld [vmem:[#allocation6 + $0x1b4] ss:$24 sps:$4 sm:$0xff]  }
 0x2bb   :  { %v1086_v34 = vadd.f32 %v1084_v60, %v1083_v23  ;;  %v3690_v60 = vld [vmem:[#allocation6 + $0x180] ss:$24 sps:$4 sm:$0xff]   ;;  %v3698_v23 = vld [vmem:[#allocation6 + $0x1b0] ss:$24 sps:$4 sm:$0xff]  }
 0x2bc   :  { %4788 = vst [vmem:[#allocation21_spill] sm:$0xff] %v3698_v23 }
 0x2bd   :  { %2742 = vtanh.f32 %v1086_v34  ;;  %v3701_v34 = vld [vmem:[#allocation6 + $0x1e4] ss:$24 sps:$4 sm:$0xff]  }
 0x2be   :  { %4789 = vst [vmem:[#allocation24_spill] sm:$0xff] %v3701_v34 }
 0x2c7   :  { %v2743_v37 = vpop.eup %2742 }
 0x2c8   :  { %v1089_v48 = vmul.f32 %v2743_v37, %v1088_v11  ;;  %v3740_v11 = vld [vmem:[#allocation6 + $0x6c] ss:$24 sps:$4 sm:$0xff]   ;;  %v3743_v37 = vld [vmem:[#allocation6 + $0x68] ss:$24 sps:$4 sm:$0xff]  }
 0x2c9   :  { %4799 = vst [vmem:[#allocation49_spill] sm:$0xff] %v3740_v11  ;;  %4800 = vst [vmem:[#allocation52_spill] sm:$0xff] %v3743_v37 }
 0x2ca   :  { %v3611_v39 = vadd.f32 %v1090_v12, %v1089_v48  ;;  %v3746_v48 = vld [vmem:[#allocation6 + $0x9c] ss:$24 sps:$4 sm:$0xff]   ;;  %v3749_v12 = vld [vmem:[#allocation6 + $0x98] ss:$24 sps:$4 sm:$0xff]  }
 0x2cb   :  { %4801 = vst [vmem:[#allocation53_spill] sm:$0xff] %v3746_v48  ;;  %4802 = vst [vmem:[#allocation56_spill] sm:$0xff] %v3749_v12 }
 0x2cc   :  { %1093 = vst.msk [vmem:[#allocation8 + $0x1] ss:$8 sm:$0x3] %vm3141_vm0, %v3611_v39  ;;  %v1107_v25 = vrot.slane %v3611_v39, %v4728_v62  ;;  %v1103_v49 = vrot.slane %v3611_v39, %v4726_v53 }
 0x2ce   :  { %v1111_v35 = vpack.c.bf16 %v1107_v25, %v1107_v25  ;;  %v3620_v28 = vpack.c.bf16 %v1103_v49, %v1103_v49  ;;  %v3752_v25 = vld [vmem:[#allocation6 + $0xcc] ss:$24 sps:$4 sm:$0xff]   ;;  %v3755_v49 = vld [vmem:[#allocation6 + $0xc8] ss:$24 sps:$4 sm:$0xff]  }
 0x2cf   :  { %4803 = vst [vmem:[#allocation57_spill] sm:$0xff] %v3752_v25  ;;  %4804 = vst [vmem:[#allocation59_spill] sm:$0xff] %v3755_v49 }
 0x2d0   :  { %1144 = vmatprep.mubr.bf16.mxu0 %v1111_v35  ;;  %1185 = vmatprep.mubr.bf16.mxu1 %v1111_v35 }
 0x2d1   :  { %1145 = vmatmul.mubr.bf16.vlgmr.msra.gmra.mrb[12].mxu0 %v3620_v28  ;;  %1186 = vmatmul.mubr.bf16.vlgmr.msra.gmra.mrb[12].mxu1 %v3620_v28 }
 0x2d2   :  { %1195 = vmatpush1.bf16.msra.mxu0 %v4731_v15  ;;  %1226 = vmatprep.mubr.bf16.mxu0 %v1111_v35  ;;  %v3637_v15 = vld [vmem:[#allocation6 + $0x64] ss:$24 sps:$4 sm:$0xff]  }
 0x2d3   :  { %1196 = vmatprep.subr.bf16.mxu0 %v4732_v17  ;;  %1338 = vmatpush1.bf16.msra.mxu1 %v3626_v32  ;;  %v3642_v17 = vld [vmem:[#allocation6 + $0x60] ss:$24 sps:$4 sm:$0xff]   ;;  %v3758_v35 = vld [vmem:[#allocation6 + $0xfc] ss:$24 sps:$4 sm:$0xff]  }
 0x2d4   :  { %1339 = vmatprep.subr.bf16.mxu1 %v3629_v41  ;;  %4805 = vst [vmem:[#allocation60_spill] sm:$0xff] %v3758_v35 }
 0x2d6   :  { %1197 = vmatpush1.bf16.msra.mxu0 %v4733_v20  ;;  %v3650_v20 = vld [vmem:[#allocation6 + $0x90] ss:$24 sps:$4 sm:$0xff]  }
 0x2d7   :  { %1198 = vmatprep.subr.bf16.mxu0 %v4734_v58  ;;  %1340 = vmatpush1.bf16.msra.mxu1 %v3634_v16  ;;  %v3653_v58 = vld [vmem:[#allocation6 + $0xc4] ss:$24 sps:$4 sm:$0xff]  }
 0x2d8   :  { %1341 = vmatprep.subr.bf16.mxu1 %v3637_v15 }
 0x2da   :  { %1199 = vmatpush1.bf16.msra.mxu0 %v4735_v44  ;;  %v3658_v44 = vld [vmem:[#allocation6 + $0xc0] ss:$24 sps:$4 sm:$0xff]  }
 0x2db   :  { %1200 = vmatprep.subr.bf16.mxu0 %v4736_v56  ;;  %1342 = vmatpush1.bf16.msra.mxu1 %v3642_v17  ;;  %v3661_v56 = vld [vmem:[#allocation6 + $0xf4] ss:$24 sps:$4 sm:$0xff]  }
 0x2dc   :  { %1343 = vmatprep.subr.bf16.mxu1 %v3645_v21 }
 0x2de   :  { %1201 = vmatpush1.bf16.msra.mxu0 %v4737_v27  ;;  %v3666_v27 = vld [vmem:[#allocation6 + $0xf0] ss:$24 sps:$4 sm:$0xff]  }
 0x2df   :  { %1202 = vmatprep.subr.bf16.mxu0 %v4738_v1  ;;  %1344 = vmatpush1.bf16.msra.mxu1 %v3650_v20  ;;  %v3669_v1 = vld [vmem:[#allocation6 + $0x124] ss:$24 sps:$4 sm:$0xff]  }
 0x2e0   :  { %1345 = vmatprep.subr.bf16.mxu1 %v3653_v58 }
 0x2e2   :  { %1203 = vmatpush1.bf16.msra.mxu0 %v4739_v2  ;;  %v3674_v2 = vld [vmem:[#allocation6 + $0x120] ss:$24 sps:$4 sm:$0xff]  }
 0x2e3   :  { %1204 = vmatprep.subr.bf16.mxu0 %v4740_v3  ;;  %1346 = vmatpush1.bf16.msra.mxu1 %v3658_v44  ;;  %v3677_v3 = vld [vmem:[#allocation6 + $0x154] ss:$24 sps:$4 sm:$0xff]  }
 0x2e4   :  { %1347 = vmatprep.subr.bf16.mxu1 %v3661_v56 }
 0x2e6   :  { %1205 = vmatpush1.bf16.msra.mxu0 %v4741_v4 }
 0x2e7   :  { %1206 = vmatprep.subr.bf16.mxu0 %v4742_v5  ;;  %1348 = vmatpush1.bf16.msra.mxu1 %v3666_v27 }
 0x2e8   :  { %1349 = vmatprep.subr.bf16.mxu1 %v3669_v1 }
 0x2ea   :  { %1207 = vmatpush1.bf16.msra.mxu0 %v4743_v6 }
 0x2eb   :  { %1208 = vmatprep.subr.bf16.mxu0 %v4744_v7  ;;  %1350 = vmatpush1.bf16.msra.mxu1 %v3674_v2 }
 0x2ec   :  { %1351 = vmatprep.subr.bf16.mxu1 %v3677_v3 }
 0x2ee   :  { %1209 = vmatpush1.bf16.msra.mxu0 %v4745_v8 }
 0x2ef   :  { %1210 = vmatprep.subr.bf16.mxu0 %v4746_v9  ;;  %1352 = vmatpush1.bf16.msra.mxu1 %v3682_v33 }
 0x2f0   :  { %1353 = vmatprep.subr.bf16.mxu1 %v3685_v59 }
 0x2f2   :  { %1211 = vmatpush1.bf16.msra.mxu0 %v4747_v10 }
 0x2f3   :  { %1212 = vmatprep.subr.bf16.mxu0 %v4748_v13  ;;  %1354 = vmatpush1.bf16.msra.mxu1 %v3690_v60 }
 0x2f4   :  { %1355 = vmatprep.subr.bf16.mxu1 %v3693_v61 }
 0x2f6   :  { %1213 = vmatpush1.bf16.msra.mxu0 %v4749_v14 }
 0x2f7   :  { %1214 = vmatprep.subr.bf16.mxu0 %v4750_v18  ;;  %1356 = vmatpush1.bf16.msra.mxu1 %v3698_v23 }
 0x2f8   :  { %1357 = vmatprep.subr.bf16.mxu1 %v3701_v34 }
 0x2fa   :  { %1215 = vmatpush1.bf16.msra.mxu0 %v4751_v19 }
 0x2fb   :  { %1216 = vmatprep.subr.bf16.mxu0 %v4752_v24  ;;  %1358 = vmatpush1.bf16.msra.mxu1 %v3201_v42  ;;  %v4790_v42 = vld [vmem:[#allocation36_spill] sm:$0xff] }
 0x2fc   :  { %1359 = vmatprep.subr.bf16.mxu1 %v3205_v43  ;;  %v4791_v43 = vld [vmem:[#allocation37_spill] sm:$0xff] }
 0x2fe   :  { %1217 = vmatpush1.bf16.msra.mxu0 %v4753_v26 }
 0x2ff   :  { %1218 = vmatprep.subr.bf16.mxu0 %v4754_v30  ;;  %1360 = vmatpush1.bf16.msra.mxu1 %v3214_v46  ;;  %v4792_v46 = vld [vmem:[#allocation79_spill] sm:$0xff] }
 0x300   :  { %1361 = vmatprep.subr.bf16.mxu1 %v3217_v47  ;;  %v3725_v47 = vld [vmem:[#allocation6 + $0xc] ss:$24 sps:$4 sm:$0xff]  }
 0x301   :  { %4793 = vst [vmem:[#allocation16_spill] sm:$0xff] %v3725_v47 }
 0x302   :  { %1219 = vmatpush1.bf16.msra.mxu0 %v3395_v63 }
 0x303   :  { %1220 = vmatprep.subr.bf16.mxu0 %v4755_v31  ;;  %1362 = vmatpush1.bf16.msra.mxu1 %v3227_v50  ;;  %v4794_v50 = vld [vmem:[#allocation40_spill] sm:$0xff] }
 0x304   :  { %1363 = vmatprep.subr.bf16.mxu1 %v3230_v51  ;;  %v4795_v51 = vld [vmem:[#allocation41_spill] sm:$0xff] }
 0x306   :  { %1221 = vmatpush1.bf16.msra.mxu0 %v3403_v22 }
 0x307   :  { %1222 = vmatprep.subr.bf16.mxu0 %v3406_v38  ;;  %1364 = vmatpush1.bf16.msra.mxu1 %v3238_v54  ;;  %v3731_v54 = vld [vmem:[#allocation6 + $0x8] ss:$24 sps:$4 sm:$0xff]  }
 0x308   :  { %1365 = vmatprep.subr.bf16.mxu1 %v3241_v55  ;;  %4796 = vst [vmem:[#allocation44_spill] sm:$0xff] %v3731_v54  ;;  %v3734_v55 = vld [vmem:[#allocation6 + $0x3c] ss:$24 sps:$4 sm:$0xff]  }
 0x309   :  { %4797 = vst [vmem:[#allocation45_spill] sm:$0xff] %v3734_v55 }
 0x30a   :  { %1223 = vmatpush1.bf16.msra.mxu0 %v3411_v57 }
 0x30b   :  { %1224 = vmatprep.subr.bf16.mxu0 %v3414_v36  ;;  %1366 = vmatpush1.bf16.msra.mxu1 %v4790_v42  ;;  %v3764_v42 = vld [vmem:[#allocation6 + $0x12c] ss:$24 sps:$4 sm:$0xff]  }
 0x30c   :  { %1367 = vmatprep.subr.bf16.mxu1 %v4791_v43  ;;  %4807 = vst [vmem:[#allocation62_spill] sm:$0xff] %v3764_v42  ;;  %v3767_v43 = vld [vmem:[#allocation6 + $0x128] ss:$24 sps:$4 sm:$0xff]  }
 0x30d   :  { %4808 = vst [vmem:[#allocation63_spill] sm:$0xff] %v3767_v43 }
 0x30e   :  { %1225 = vmatpush1.bf16.msra.mxu0 %v4792_v46 }
 0x30f   :  { %1378 = vmatprep.subr.bf16.mxu0 %v3725_v47  ;;  %1368 = vmatpush1.bf16.msra.mxu1 %v4794_v50  ;;  %v3770_v50 = vld [vmem:[#allocation6 + $0x15c] ss:$24 sps:$4 sm:$0xff]   ;;  %v1096_v47 = vld [vmem:[#allocation3 + $0x2] ss:$8 sm:$0xf] }
 0x310   :  { %1419 = vmatprep.subr.bf16.mxu1 %v4795_v51  ;;  %4809 = vst [vmem:[#allocation64_spill] sm:$0xff] %v3770_v50  ;;  %v3773_v51 = vld [vmem:[#allocation6 + $0x158] ss:$24 sps:$4 sm:$0xff]  }
 0x311   :  { %1227 = vmatmul.mubr.bf16.vlgmr.msra.gmra.mrb[16].mxu0 %v3620_v28  ;;  %v3761_v28 = vld [vmem:[#allocation6 + $0xf8] ss:$24 sps:$4 sm:$0xff]   ;;  %4810 = vst [vmem:[#allocation65_spill] sm:$0xff] %v3773_v51 }
 0x312   :  { %1379 = vmatpush1.bf16.msra.mxu0 %v3731_v54  ;;  %4806 = vst [vmem:[#allocation61_spill] sm:$0xff] %v3761_v28 }
 0x313   :  { %1380 = vmatprep.subr.bf16.mxu0 %v3734_v55 }
 0x316   :  { %1381 = vmatpush1.bf16.msra.mxu0 %v3737_v45 }
 0x317   :  { %1382 = vmatprep.subr.bf16.mxu0 %v3740_v11 }
 0x31a   :  { %1383 = vmatpush1.bf16.msra.mxu0 %v3743_v37  ;;  %v4821_v37 = vld [vmem:[#allocation47_spill] sm:$0xff] }
 0x31b   :  { %1384 = vmatprep.subr.bf16.mxu0 %v3746_v48  ;;  %v4819_v48 = vld [vmem:[#allocation43_spill] sm:$0xff] }
 0x31e   :  { %1385 = vmatpush1.bf16.msra.mxu0 %v3749_v12  ;;  %v4817_v12 = vld [vmem:[#allocation39_spill] sm:$0xff] }
 0x31f   :  { %1386 = vmatprep.subr.bf16.mxu0 %v3752_v25  ;;  %v4815_v25 = vld [vmem:[#allocation34_spill] sm:$0xff] }
 0x322   :  { %1387 = vmatpush1.bf16.msra.mxu0 %v3755_v49  ;;  %v4813_v49 = vld [vmem:[#allocation32_spill] sm:$0xff] }
 0x323   :  { %1388 = vmatprep.subr.bf16.mxu0 %v3758_v35  ;;  %v3776_v35 = vld [vmem:[#allocation6 + $0x18c] ss:$24 sps:$4 sm:$0xff]  }
 0x324   :  { %4811 = vst [vmem:[#allocation66_spill] sm:$0xff] %v3776_v35 }
 0x326   :  { %1389 = vmatpush1.bf16.msra.mxu0 %v3761_v28  ;;  %v4812_v28 = vld [vmem:[#allocation31_spill] sm:$0xff] }
 0x327   :  { %1390 = vmatprep.subr.bf16.mxu0 %v3764_v42  ;;  %v4814_v42 = vld [vmem:[#allocation33_spill] sm:$0xff] }
 0x32a   :  { %1391 = vmatpush1.bf16.msra.mxu0 %v3767_v43  ;;  %v4816_v43 = vld [vmem:[#allocation38_spill] sm:$0xff] }
 0x32b   :  { %1392 = vmatprep.subr.bf16.mxu0 %v3770_v50  ;;  %v4818_v50 = vld [vmem:[#allocation42_spill] sm:$0xff] }
 0x32e   :  { %1393 = vmatpush1.bf16.msra.mxu0 %v3773_v51  ;;  %v4820_v51 = vld [vmem:[#allocation46_spill] sm:$0xff] }
 0x32f   :  { %1394 = vmatprep.subr.bf16.mxu0 %v3776_v35  ;;  %v4822_v35 = vld [vmem:[#allocation50_spill] sm:$0xff] }
 0x332   :  { %1395 = vmatpush1.bf16.msra.mxu0 %v4812_v28  ;;  %v4823_v28 = vld [vmem:[#allocation51_spill] sm:$0xff] }
 0x333   :  { %1396 = vmatprep.subr.bf16.mxu0 %v4813_v49  ;;  %v4824_v49 = vld [vmem:[#allocation54_spill] sm:$0xff] }
 0x336   :  { %1397 = vmatpush1.bf16.msra.mxu0 %v4814_v42  ;;  %v4825_v42 = vld [vmem:[#allocation55_spill] sm:$0xff] }
 0x337   :  { %1398 = vmatprep.subr.bf16.mxu0 %v4815_v25  ;;  %v4826_v25 = vld [vmem:[#allocation58_spill] sm:$0xff] }
 0x33a   :  { %1399 = vmatpush1.bf16.msra.mxu0 %v4816_v43  ;;  %v4827_v43 = vld [vmem:[#allocation35_spill] sm:$0xff] }
 0x33b   :  { %1400 = vmatprep.subr.bf16.mxu0 %v4817_v12 }
 0x33e   :  { %1401 = vmatpush1.bf16.msra.mxu0 %v4818_v50 }
 0x33f   :  { %1402 = vmatprep.subr.bf16.mxu0 %v4819_v48 }
 0x342   :  { %1403 = vmatpush1.bf16.msra.mxu0 %v4820_v51 }
 0x343   :  { %1404 = vmatprep.subr.bf16.mxu0 %v4821_v37 }
 0x346   :  { %1405 = vmatpush1.bf16.msra.mxu0 %v4822_v35 }
 0x347   :  { %1406 = vmatprep.subr.bf16.mxu0 %v4823_v28 }
 0x34a   :  { %1407 = vmatpush1.bf16.msra.mxu0 %v4824_v49  ;;  %v1097_v49 = vld [vmem:[#allocation3 + $0x2] ss:$8 sm:$0x30] }
 0x34b   :  { %1408 = vmatprep.subr.bf16.mxu0 %v4825_v42  ;;  %v1098_v46 = vor.u32 %v1097_v49, %v1096_v47 }
 0x34d   :  { %v1261_v57 = vrot.slane %v1098_v46, 2 }
 0x34e   :  { %1409 = vmatpush1.bf16.msra.mxu0 %v4826_v25 }
 0x34f   :  { %1562 = vmatprep.subr.bf16.mxu0 %v4827_v43 }
 0x3a4   :  { %v1146_v12 = vpop.f32.mrb[12].mxu0  ;;  %v1187_v50 = vpop.f32.mrb[12].mxu1 }
 0x3a5   :  { %v1148_v11 = vpop.f32.mrb[13].mxu0  ;;  %v1189_v48 = vpop.f32.mrb[13].mxu1 }
 0x3a6   :  { %v1237_v45 = vcombine.low %v1146_v12, %v1148_v11  ;;  %v1265_v51 = vcombine.low %v1187_v50, %v1189_v48  ;;  %v1150_v55 = vpop.f32.mrb[14].mxu0  ;;  %v1191_v37 = vpop.f32.mrb[14].mxu1 }
 0x3a7   :  { %v1151_v54 = vpop.f32.mrb[15].mxu0  ;;  %v1192_v35 = vpop.f32.mrb[15].mxu1 }
 0x3a8   :  { %v1244_v28 = vrot.slane %v1237_v45, %v3470_v29  ;;  %v1272_v43 = vrot.slane %v1265_v51, %v3470_v29 }
 0x3aa   :  { %v1251_v42 = vrot.slane %v1244_v28, %v3470_v29  ;;  %v1279_v38 = vrot.slane %v1272_v43, %v3470_v29 }
 0x3ac   :  { %v1253_v25 = vadd.f32 %v1251_v42, %v1098_v46  ;;  %v1281_v11 = vadd.f32 %v1279_v38, %v1261_v57  ;;  %v1309_v57 = vrot.slane %v1098_v46, 4 }
 0x3ae   :  { %v2562_v36 = vmul.f32 -1.442695, %v1253_v25  ;;  %v2563_v55 = vmul.f32 -1.442695, %v1281_v11 }
 0x3b0   :  { %2744 = vpow2.f32 %v2562_v36 }
 0x3b1   :  { %2746 = vpow2.f32 %v2563_v55 }
 0x3ba   :  { %v2745_v12 = vpop.eup %2744 }
 0x3bb   :  { %v1257_v54 = vadd.f32 1.0, %v2745_v12  ;;  %v2747_v35 = vpop.eup %2746 }
 0x3bc   :  { %v1285_v49 = vadd.f32 1.0, %v2747_v35  ;;  %v3820_v35 = vld [vmem:[#allocation6 + $0x44] ss:$24 sps:$4 sm:$0xff]  }
 0x3bd   :  { %2748 = vrcp.f32 %v1257_v54 }
 0x3be   :  { %2750 = vrcp.f32 %v1285_v49  ;;  %v3833_v49 = vld [vmem:[#allocation6 + $0x70] ss:$24 sps:$4 sm:$0xff]  }
 0x3c7   :  { %v2749_v38 = vpop.eup %2748 }
 0x3c8   :  { %v2751_v11 = vpop.eup %2750 }
 0x3c9   :  { %v1313_v55 = vsub.f32 1.0, %v2751_v11 }
 0x3e4   :  { %v1228_v45 = vpop.f32.mrb[16].mxu0 }
 0x3e5   :  { %v1288_v50 = vadd.f32 %v1228_v45, %v4787_v52  ;;  %v1230_v48 = vpop.f32.mrb[17].mxu0  ;;  %v1315_v45 = vmul.f32 %v2751_v11, %v3611_v39  ;;  %v3817_v39 = vld [vmem:[#allocation6 + $0x10] ss:$24 sps:$4 sm:$0xff]   ;;  %v4846_v11 = vld [vmem:[#allocation45_spill] sm:$0xff] }
 0x3e6   :  { %v1289_v47 = vadd.f32 %v1230_v48, %v3483_v40  ;;  %v1232_v37 = vpop.f32.mrb[18].mxu0 }
 0x3e7   :  { %v1233_v51 = vpop.f32.mrb[19].mxu0 }
 0x3e8   :  { %v1292_v28 = vcombine.low %v1288_v50, %v1289_v47  ;;  %v3825_v51 = vld [vmem:[#allocation6 + $0x40] ss:$24 sps:$4 sm:$0xff]  }
 0x3ea   :  { %v1299_v43 = vrot.slane %v1292_v28, %v3470_v29  ;;  %v3828_v28 = vld [vmem:[#allocation6 + $0x74] ss:$24 sps:$4 sm:$0xff]  }
 0x3ec   :  { %v1306_v36 = vrot.slane %v1299_v43, %v3470_v29  ;;  %v3836_v43 = vld [vmem:[#allocation6 + $0xa4] ss:$24 sps:$4 sm:$0xff]  }
 0x3ee   :  { %v1308_v42 = vmul.f32 %v2749_v38, %v1306_v36  ;;  %v3841_v36 = vld [vmem:[#allocation6 + $0xa0] ss:$24 sps:$4 sm:$0xff]   ;;  %v3849_v38 = vld [vmem:[#allocation6 + $0xd0] ss:$24 sps:$4 sm:$0xff]  }
 0x3f0   :  { %v1311_v25 = vadd.f32 %v1309_v57, %v1308_v42  ;;  %v3844_v57 = vld [vmem:[#allocation6 + $0xd4] ss:$24 sps:$4 sm:$0xff]   ;;  %v3852_v42 = vld [vmem:[#allocation6 + $0x104] ss:$24 sps:$4 sm:$0xff]  }
 0x3f2   :  { %2752 = vtanh.f32 %v1311_v25  ;;  %v4845_v25 = vld [vmem:[#allocation44_spill] sm:$0xff] }
 0x3fc   :  { %v2753_v12 = vpop.eup %2752 }
 0x3fd   :  { %v1314_v54 = vmul.f32 %v2753_v12, %v1313_v55  ;;  %v4847_v55 = vld [vmem:[#allocation48_spill] sm:$0xff]  ;;  %v4848_v12 = vld [vmem:[#allocation49_spill] sm:$0xff] }
 0x3ff   :  { %v3804_v48 = vadd.f32 %v1315_v45, %v1314_v54  ;;  %v4849_v54 = vld [vmem:[#allocation52_spill] sm:$0xff]  ;;  %v4850_v45 = vld [vmem:[#allocation53_spill] sm:$0xff] }
 0x401   :  { %1318 = vst.msk [vmem:[#allocation8 + $0x2] ss:$8 sm:$0x3] %vm3141_vm0, %v3804_v48  ;;  %v1332_v46 = vrot.slane %v3804_v48, %v4728_v62  ;;  %v1328_v50 = vrot.slane %v3804_v48, %v4726_v53 }
 0x403   :  { %v1336_v47 = vpack.c.bf16 %v1332_v46, %v1332_v46  ;;  %v3813_v37 = vpack.c.bf16 %v1328_v50, %v1328_v50  ;;  %v4851_v46 = vld [vmem:[#allocation56_spill] sm:$0xff]  ;;  %v4852_v50 = vld [vmem:[#allocation57_spill] sm:$0xff] }
 0x405   :  { %1369 = vmatprep.mubr.bf16.mxu1 %v1336_v47  ;;  %1410 = vmatprep.mubr.bf16.mxu0 %v1336_v47 }
 0x406   :  { %1370 = vmatmul.mubr.bf16.vlgmr.msra.gmra.mrb[16].mxu1 %v3813_v37  ;;  %1411 = vmatmul.mubr.bf16.vlgmr.msra.gmra.mrb[20].mxu0 %v3813_v37 }
 0x407   :  { %1420 = vmatpush1.bf16.msra.mxu1 %v3817_v39  ;;  %1451 = vmatprep.mubr.bf16.mxu1 %v1336_v47  ;;  %v4853_v47 = vld [vmem:[#allocation59_spill] sm:$0xff] }
 0x408   :  { %1421 = vmatprep.subr.bf16.mxu1 %v3820_v35  ;;  %1563 = vmatpush1.bf16.msra.mxu0 %v3626_v32 }
 0x409   :  { %1564 = vmatprep.subr.bf16.mxu0 %v3629_v41 }
 0x40b   :  { %1422 = vmatpush1.bf16.msra.mxu1 %v3825_v51 }
 0x40c   :  { %1423 = vmatprep.subr.bf16.mxu1 %v3828_v28  ;;  %1565 = vmatpush1.bf16.msra.mxu0 %v3634_v16 }
 0x40d   :  { %1566 = vmatprep.subr.bf16.mxu0 %v3637_v15 }
 0x40f   :  { %1424 = vmatpush1.bf16.msra.mxu1 %v3833_v49 }
 0x410   :  { %1425 = vmatprep.subr.bf16.mxu1 %v3836_v43  ;;  %1567 = vmatpush1.bf16.msra.mxu0 %v3642_v17 }
 0x411   :  { %1568 = vmatprep.subr.bf16.mxu0 %v3645_v21 }
 0x413   :  { %1426 = vmatpush1.bf16.msra.mxu1 %v3841_v36 }
 0x414   :  { %1427 = vmatprep.subr.bf16.mxu1 %v3844_v57  ;;  %1569 = vmatpush1.bf16.msra.mxu0 %v3650_v20 }
 0x415   :  { %1570 = vmatprep.subr.bf16.mxu0 %v3653_v58 }
 0x417   :  { %1428 = vmatpush1.bf16.msra.mxu1 %v3849_v38 }
 0x418   :  { %1429 = vmatprep.subr.bf16.mxu1 %v3852_v42  ;;  %1571 = vmatpush1.bf16.msra.mxu0 %v3658_v44 }
 0x419   :  { %1572 = vmatprep.subr.bf16.mxu0 %v3661_v56 }
 0x41b   :  { %1430 = vmatpush1.bf16.msra.mxu1 %v4741_v4  ;;  %v3879_v4 = vld [vmem:[#allocation6 + $0x1e0] ss:$24 sps:$4 sm:$0xff]  }
 0x41c   :  { %1431 = vmatprep.subr.bf16.mxu1 %v4742_v5  ;;  %1573 = vmatpush1.bf16.msra.mxu0 %v3666_v27  ;;  %4828 = vst [vmem:[#allocation67_spill] sm:$0xff] %v3879_v4  ;;  %v3882_v5 = vld [vmem:[#allocation6 + $0x214] ss:$24 sps:$4 sm:$0xff]  }
 0x41d   :  { %1574 = vmatprep.subr.bf16.mxu0 %v3669_v1  ;;  %4829 = vst [vmem:[#allocation68_spill] sm:$0xff] %v3882_v5 }
 0x41f   :  { %1432 = vmatpush1.bf16.msra.mxu1 %v4743_v6  ;;  %v3887_v6 = vld [vmem:[#allocation6 + $0x210] ss:$24 sps:$4 sm:$0xff]  }
 0x420   :  { %1433 = vmatprep.subr.bf16.mxu1 %v4744_v7  ;;  %1575 = vmatpush1.bf16.msra.mxu0 %v3674_v2  ;;  %4830 = vst [vmem:[#allocation69_spill] sm:$0xff] %v3887_v6  ;;  %v3890_v7 = vld [vmem:[#allocation6 + $0x244] ss:$24 sps:$4 sm:$0xff]  }
 0x421   :  { %1576 = vmatprep.subr.bf16.mxu0 %v3677_v3  ;;  %4831 = vst [vmem:[#allocation70_spill] sm:$0xff] %v3890_v7 }
 0x423   :  { %1434 = vmatpush1.bf16.msra.mxu1 %v4745_v8  ;;  %v3895_v8 = vld [vmem:[#allocation6 + $0x240] ss:$24 sps:$4 sm:$0xff]  }
 0x424   :  { %1435 = vmatprep.subr.bf16.mxu1 %v4746_v9  ;;  %1577 = vmatpush1.bf16.msra.mxu0 %v3682_v33  ;;  %4832 = vst [vmem:[#allocation71_spill] sm:$0xff] %v3895_v8  ;;  %v3898_v9 = vld [vmem:[#allocation6 + $0x274] ss:$24 sps:$4 sm:$0xff]  }
 0x425   :  { %1578 = vmatprep.subr.bf16.mxu0 %v3685_v59  ;;  %4833 = vst [vmem:[#allocation72_spill] sm:$0xff] %v3898_v9 }
 0x427   :  { %1436 = vmatpush1.bf16.msra.mxu1 %v4747_v10  ;;  %v4834_v10 = vld [vmem:[#allocation76_spill] sm:$0xff] }
 0x428   :  { %1437 = vmatprep.subr.bf16.mxu1 %v4748_v13  ;;  %1579 = vmatpush1.bf16.msra.mxu0 %v3690_v60  ;;  %v3903_v13 = vld [vmem:[#allocation6 + $0x270] ss:$24 sps:$4 sm:$0xff]  }
 0x429   :  { %1580 = vmatprep.subr.bf16.mxu0 %v3693_v61  ;;  %4835 = vst [vmem:[#allocation73_spill] sm:$0xff] %v3903_v13 }
 0x42b   :  { %1438 = vmatpush1.bf16.msra.mxu1 %v4749_v14  ;;  %v3906_v14 = vld [vmem:[#allocation6 + $0x2a4] ss:$24 sps:$4 sm:$0xff]  }
 0x42c   :  { %1439 = vmatprep.subr.bf16.mxu1 %v4750_v18  ;;  %1581 = vmatpush1.bf16.msra.mxu0 %v3698_v23  ;;  %4836 = vst [vmem:[#allocation74_spill] sm:$0xff] %v3906_v14  ;;  %v4838_v18 = vld [vmem:[#allocation78_spill] sm:$0xff] }
 0x42d   :  { %1582 = vmatprep.subr.bf16.mxu0 %v3701_v34 }
 0x42f   :  { %1440 = vmatpush1.bf16.msra.mxu1 %v4751_v19  ;;  %v3911_v19 = vld [vmem:[#allocation6 + $0x2a0] ss:$24 sps:$4 sm:$0xff]  }
 0x430   :  { %1441 = vmatprep.subr.bf16.mxu1 %v4752_v24  ;;  %1583 = vmatpush1.bf16.msra.mxu0 %v3879_v4  ;;  %4839 = vst [vmem:[#allocation75_spill] sm:$0xff] %v3911_v19  ;;  %v3914_v24 = vld [vmem:[#allocation6 + $0x2d4] ss:$24 sps:$4 sm:$0xff]  }
 0x431   :  { %1584 = vmatprep.subr.bf16.mxu0 %v3882_v5  ;;  %4840 = vst [vmem:[#allocation12_spill] sm:$0xff] %v3914_v24 }
 0x433   :  { %1442 = vmatpush1.bf16.msra.mxu1 %v4753_v26  ;;  %v4842_v26 = vld [vmem:[#allocation16_spill] sm:$0xff] }
 0x434   :  { %1443 = vmatprep.subr.bf16.mxu1 %v4754_v30  ;;  %1585 = vmatpush1.bf16.msra.mxu0 %v3887_v6  ;;  %v3919_v30 = vld [vmem:[#allocation6 + $0x2d0] ss:$24 sps:$4 sm:$0xff]  }
 0x435   :  { %1586 = vmatprep.subr.bf16.mxu0 %v3890_v7  ;;  %4843 = vst [vmem:[#allocation13_spill] sm:$0xff] %v3919_v30 }
 0x437   :  { %1444 = vmatpush1.bf16.msra.mxu1 %v3395_v63  ;;  %v4837_v63 = vld [vmem:[#allocation77_spill] sm:$0xff] }
 0x438   :  { %1445 = vmatprep.subr.bf16.mxu1 %v4755_v31  ;;  %1587 = vmatpush1.bf16.msra.mxu0 %v3895_v8  ;;  %v3922_v31 = vld [vmem:[#allocation6 + $0x14] ss:$24 sps:$4 sm:$0xff]  }
 0x439   :  { %1588 = vmatprep.subr.bf16.mxu0 %v3898_v9  ;;  %4844 = vst [vmem:[#allocation14_spill] sm:$0xff] %v3922_v31 }
 0x43b   :  { %1446 = vmatpush1.bf16.msra.mxu1 %v3403_v22  ;;  %v4841_v22 = vld [vmem:[#allocation79_spill] sm:$0xff] }
 0x43c   :  { %1447 = vmatprep.subr.bf16.mxu1 %v4834_v10  ;;  %1589 = vmatpush1.bf16.msra.mxu0 %v3903_v13  ;;  %v4854_v10 = vld [vmem:[#allocation60_spill] sm:$0xff] }
 0x43d   :  { %1590 = vmatprep.subr.bf16.mxu0 %v3906_v14 }
 0x43f   :  { %1448 = vmatpush1.bf16.msra.mxu1 %v4837_v63  ;;  %v4856_v63 = vld [vmem:[#allocation62_spill] sm:$0xff] }
 0x440   :  { %1449 = vmatprep.subr.bf16.mxu1 %v4838_v18  ;;  %1591 = vmatpush1.bf16.msra.mxu0 %v3911_v19  ;;  %v4857_v18 = vld [vmem:[#allocation63_spill] sm:$0xff] }
 0x441   :  { %1592 = vmatprep.subr.bf16.mxu0 %v3914_v24 }
 0x443   :  { %1450 = vmatpush1.bf16.msra.mxu1 %v4841_v22  ;;  %v4858_v22 = vld [vmem:[#allocation64_spill] sm:$0xff] }
 0x444   :  { %1603 = vmatprep.subr.bf16.mxu1 %v4842_v26  ;;  %1593 = vmatpush1.bf16.msra.mxu0 %v3919_v30 }
 0x445   :  { %1644 = vmatprep.subr.bf16.mxu0 %v3922_v31  ;;  %v1321_v31 = vld [vmem:[#allocation3 + $0x3] ss:$8 sm:$0xf] }
 0x446   :  { %1452 = vmatmul.mubr.bf16.vlgmr.msra.gmra.mrb[20].mxu1 %v3813_v37  ;;  %v4855_v37 = vld [vmem:[#allocation61_spill] sm:$0xff] }
 0x447   :  { %1604 = vmatpush1.bf16.msra.mxu1 %v4845_v25 }
 0x448   :  { %1605 = vmatprep.subr.bf16.mxu1 %v4846_v11 }
 0x44b   :  { %1606 = vmatpush1.bf16.msra.mxu1 %v4847_v55 }
 0x44c   :  { %1607 = vmatprep.subr.bf16.mxu1 %v4848_v12  ;;  %v4859_v12 = vld [vmem:[#allocation65_spill] sm:$0xff] }
 0x44f   :  { %1608 = vmatpush1.bf16.msra.mxu1 %v4849_v54  ;;  %v4860_v54 = vld [vmem:[#allocation66_spill] sm:$0xff] }
 0x450   :  { %1609 = vmatprep.subr.bf16.mxu1 %v4850_v45  ;;  %v3942_v45 = vld [vmem:[#allocation6 + $0x188] ss:$24 sps:$4 sm:$0xff]  }
 0x451   :  { %4861 = vst [vmem:[#allocation15_spill] sm:$0xff] %v3942_v45 }
 0x453   :  { %1610 = vmatpush1.bf16.msra.mxu1 %v4851_v46 }
 0x454   :  { %1611 = vmatprep.subr.bf16.mxu1 %v4852_v50  ;;  %v3945_v50 = vld [vmem:[#allocation6 + $0x1bc] ss:$24 sps:$4 sm:$0xff]  }
 0x455   :  { %4862 = vst [vmem:[#allocation17_spill] sm:$0xff] %v3945_v50 }
 0x457   :  { %1612 = vmatpush1.bf16.msra.mxu1 %v4853_v47 }
 0x458   :  { %1613 = vmatprep.subr.bf16.mxu1 %v4854_v10  ;;  %v3948_v10 = vld [vmem:[#allocation6 + $0x1b8] ss:$24 sps:$4 sm:$0xff]  }
 0x459   :  { %4863 = vst [vmem:[#allocation19_spill] sm:$0xff] %v3948_v10 }
 0x45b   :  { %1614 = vmatpush1.bf16.msra.mxu1 %v4855_v37 }
 0x45c   :  { %1615 = vmatprep.subr.bf16.mxu1 %v4856_v63  ;;  %v3951_v63 = vld [vmem:[#allocation6 + $0x1ec] ss:$24 sps:$4 sm:$0xff]  }
 0x45d   :  { %4864 = vst [vmem:[#allocation20_spill] sm:$0xff] %v3951_v63 }
 0x45f   :  { %1616 = vmatpush1.bf16.msra.mxu1 %v4857_v18 }
 0x460   :  { %1617 = vmatprep.subr.bf16.mxu1 %v4858_v22  ;;  %v3954_v22 = vld [vmem:[#allocation6 + $0x1e8] ss:$24 sps:$4 sm:$0xff]  }
 0x461   :  { %4865 = vst [vmem:[#allocation22_spill] sm:$0xff] %v3954_v22 }
 0x463   :  { %1618 = vmatpush1.bf16.msra.mxu1 %v4859_v12 }
 0x464   :  { %1619 = vmatprep.subr.bf16.mxu1 %v4860_v54  ;;  %v3957_v54 = vld [vmem:[#allocation6 + $0x21c] ss:$24 sps:$4 sm:$0xff]  }
 0x465   :  { %4866 = vst [vmem:[#allocation23_spill] sm:$0xff] %v3957_v54 }
 0x467   :  { %1620 = vmatpush1.bf16.msra.mxu1 %v3942_v45  ;;  %v3960_v45 = vld [vmem:[#allocation6 + $0x218] ss:$24 sps:$4 sm:$0xff]  }
 0x468   :  { %1621 = vmatprep.subr.bf16.mxu1 %v3945_v50  ;;  %4867 = vst [vmem:[#allocation25_spill] sm:$0xff] %v3960_v45  ;;  %v3963_v50 = vld [vmem:[#allocation6 + $0x24c] ss:$24 sps:$4 sm:$0xff]  }
 0x469   :  { %4868 = vst [vmem:[#allocation26_spill] sm:$0xff] %v3963_v50 }
 0x46b   :  { %1622 = vmatpush1.bf16.msra.mxu1 %v3948_v10  ;;  %v3966_v10 = vld [vmem:[#allocation6 + $0x248] ss:$24 sps:$4 sm:$0xff]  }
 0x46c   :  { %1623 = vmatprep.subr.bf16.mxu1 %v3951_v63  ;;  %4869 = vst [vmem:[#allocation27_spill] sm:$0xff] %v3966_v10  ;;  %v3969_v63 = vld [vmem:[#allocation6 + $0x27c] ss:$24 sps:$4 sm:$0xff]  }
 0x46d   :  { %4870 = vst [vmem:[#allocation28_spill] sm:$0xff] %v3969_v63 }
 0x46f   :  { %1624 = vmatpush1.bf16.msra.mxu1 %v3954_v22  ;;  %v3972_v22 = vld [vmem:[#allocation6 + $0x278] ss:$24 sps:$4 sm:$0xff]  }
 0x470   :  { %1625 = vmatprep.subr.bf16.mxu1 %v3957_v54  ;;  %4871 = vst [vmem:[#allocation29_spill] sm:$0xff] %v3972_v22  ;;  %v3975_v54 = vld [vmem:[#allocation6 + $0x2ac] ss:$24 sps:$4 sm:$0xff]  }
 0x471   :  { %4872 = vst [vmem:[#allocation30_spill] sm:$0xff] %v3975_v54 }
 0x473   :  { %1626 = vmatpush1.bf16.msra.mxu1 %v3960_v45  ;;  %v3978_v45 = vld [vmem:[#allocation6 + $0x2a8] ss:$24 sps:$4 sm:$0xff]  }
 0x474   :  { %1627 = vmatprep.subr.bf16.mxu1 %v3963_v50  ;;  %4873 = vst [vmem:[#allocation18_spill] sm:$0xff] %v3978_v45  ;;  %v3981_v50 = vld [vmem:[#allocation6 + $0x2dc] ss:$24 sps:$4 sm:$0xff]  }
 0x475   :  { %4874 = vst [vmem:[#allocation36_spill] sm:$0xff] %v3981_v50 }
 0x477   :  { %1628 = vmatpush1.bf16.msra.mxu1 %v3966_v10  ;;  %v3984_v10 = vld [vmem:[#allocation6 + $0x2d8] ss:$24 sps:$4 sm:$0xff]  }
 0x478   :  { %1629 = vmatprep.subr.bf16.mxu1 %v3969_v63  ;;  %4875 = vst [vmem:[#allocation37_spill] sm:$0xff] %v3984_v10  ;;  %v4876_v63 = vld [vmem:[#allocation35_spill] sm:$0xff] }
 0x47b   :  { %1630 = vmatpush1.bf16.msra.mxu1 %v3972_v22 }
 0x47c   :  { %1631 = vmatprep.subr.bf16.mxu1 %v3975_v54 }
 0x47f   :  { %1632 = vmatpush1.bf16.msra.mxu1 %v3978_v45 }
 0x480   :  { %1633 = vmatprep.subr.bf16.mxu1 %v3981_v50  ;;  %v1322_v50 = vld [vmem:[#allocation3 + $0x3] ss:$8 sm:$0x30] }
 0x481   :  { %v1323_v26 = vor.u32 %v1322_v50, %v1321_v31 }
 0x483   :  { %1634 = vmatpush1.bf16.msra.mxu1 %v3984_v10  ;;  %v1486_v19 = vrot.slane %v1323_v26, 2 }
 0x484   :  { %1787 = vmatprep.subr.bf16.mxu1 %v4876_v63 }
 0x4d9   :  { %v1371_v12 = vpop.f32.mrb[16].mxu1  ;;  %v1412_v22 = vpop.f32.mrb[20].mxu0 }
 0x4da   :  { %v1373_v18 = vpop.f32.mrb[17].mxu1  ;;  %v1414_v37 = vpop.f32.mrb[21].mxu0 }
 0x4db   :  { %v1462_v47 = vcombine.low %v1371_v12, %v1373_v18  ;;  %v1490_v54 = vcombine.low %v1412_v22, %v1414_v37  ;;  %v1375_v46 = vpop.f32.mrb[18].mxu1  ;;  %v1416_v55 = vpop.f32.mrb[22].mxu0 }
 0x4dc   :  { %v1376_v11 = vpop.f32.mrb[19].mxu1  ;;  %v1417_v45 = vpop.f32.mrb[23].mxu0 }
 0x4dd   :  { %v1469_v25 = vrot.slane %v1462_v47, %v3470_v29  ;;  %v1497_v63 = vrot.slane %v1490_v54, %v3470_v29 }
 0x4df   :  { %v1476_v30 = vrot.slane %v1469_v25, %v3470_v29  ;;  %v1504_v14 = vrot.slane %v1497_v63, %v3470_v29 }
 0x4e1   :  { %v1478_v10 = vadd.f32 %v1476_v30, %v1323_v26  ;;  %v1506_v12 = vadd.f32 %v1504_v14, %v1486_v19  ;;  %v1534_v19 = vrot.slane %v1323_v26, 4 }
 0x4e3   :  { %v2564_v24 = vmul.f32 -1.442695, %v1478_v10  ;;  %v2565_v46 = vmul.f32 -1.442695, %v1506_v12 }
 0x4e5   :  { %2754 = vpow2.f32 %v2564_v24 }
 0x4e6   :  { %2756 = vpow2.f32 %v2565_v46 }
 0x4ef   :  { %v2755_v55 = vpop.eup %2754 }
 0x4f0   :  { %v1482_v11 = vadd.f32 1.0, %v2755_v55  ;;  %v2757_v25 = vpop.eup %2756 }
 0x4f1   :  { %v1510_v10 = vadd.f32 1.0, %v2757_v25  ;;  %v4033_v25 = vld [vmem:[#allocation6 + $0x134] ss:$24 sps:$4 sm:$0xff]  }
 0x4f2   :  { %2758 = vrcp.f32 %v1482_v11 }
 0x4f3   :  { %2760 = vrcp.f32 %v1510_v10  ;;  %v4046_v10 = vld [vmem:[#allocation6 + $0x160] ss:$24 sps:$4 sm:$0xff]  }
 0x4fc   :  { %v2759_v24 = vpop.eup %2758 }
 0x4fd   :  { %v2761_v12 = vpop.eup %2760 }
 0x4fe   :  { %v1538_v46 = vsub.f32 1.0, %v2761_v12 }
 0x519   :  { %v1453_v45 = vpop.f32.mrb[20].mxu1 }
 0x51a   :  { %v1513_v47 = vadd.f32 %v1453_v45, %v4787_v52  ;;  %v1455_v37 = vpop.f32.mrb[21].mxu1  ;;  %v1540_v45 = vmul.f32 %v2761_v12, %v3804_v48  ;;  %v4030_v48 = vld [vmem:[#allocation6 + $0x100] ss:$24 sps:$4 sm:$0xff]   ;;  %v4073_v12 = vld [vmem:[#allocation6 + $0x224] ss:$24 sps:$4 sm:$0xff]  }
 0x51b   :  { %v1514_v31 = vadd.f32 %v1455_v37, %v3483_v40  ;;  %v1457_v30 = vpop.f32.mrb[22].mxu1  ;;  %4879 = vst [vmem:[#allocation31_spill] sm:$0xff] %v4073_v12 }
 0x51c   :  { %v1458_v54 = vpop.f32.mrb[23].mxu1 }
 0x51d   :  { %v1517_v50 = vcombine.low %v1513_v47, %v1514_v31  ;;  %v4038_v54 = vld [vmem:[#allocation6 + $0x130] ss:$24 sps:$4 sm:$0xff]  }
 0x51f   :  { %v1524_v63 = vrot.slane %v1517_v50, %v3470_v29  ;;  %v4041_v50 = vld [vmem:[#allocation6 + $0x164] ss:$24 sps:$4 sm:$0xff]  }
 0x521   :  { %v1531_v14 = vrot.slane %v1524_v63, %v3470_v29  ;;  %v4049_v63 = vld [vmem:[#allocation6 + $0x194] ss:$24 sps:$4 sm:$0xff]  }
 0x523   :  { %v1533_v18 = vmul.f32 %v2759_v24, %v1531_v14  ;;  %v4054_v14 = vld [vmem:[#allocation6 + $0x190] ss:$24 sps:$4 sm:$0xff]   ;;  %v4062_v24 = vld [vmem:[#allocation6 + $0x1c0] ss:$24 sps:$4 sm:$0xff]  }
 0x525   :  { %v1536_v22 = vadd.f32 %v1534_v19, %v1533_v18  ;;  %v4057_v19 = vld [vmem:[#allocation6 + $0x1c4] ss:$24 sps:$4 sm:$0xff]   ;;  %v4065_v18 = vld [vmem:[#allocation6 + $0x1f4] ss:$24 sps:$4 sm:$0xff]  }
 0x526   :  { %4877 = vst [vmem:[#allocation40_spill] sm:$0xff] %v4065_v18 }
 0x527   :  { %2762 = vtanh.f32 %v1536_v22  ;;  %v4070_v22 = vld [vmem:[#allocation6 + $0x1f0] ss:$24 sps:$4 sm:$0xff]  }
 0x528   :  { %4878 = vst [vmem:[#allocation41_spill] sm:$0xff] %v4070_v22 }
 0x531   :  { %v2763_v55 = vpop.eup %2762 }
 0x532   :  { %v1539_v11 = vmul.f32 %v2763_v55, %v1538_v46  ;;  %v4078_v46 = vld [vmem:[#allocation6 + $0x220] ss:$24 sps:$4 sm:$0xff]   ;;  %v4081_v55 = vld [vmem:[#allocation6 + $0x254] ss:$24 sps:$4 sm:$0xff]  }
 0x533   :  { %4880 = vst [vmem:[#allocation32_spill] sm:$0xff] %v4078_v46  ;;  %4881 = vst [vmem:[#allocation33_spill] sm:$0xff] %v4081_v55 }
 0x534   :  { %v3997_v37 = vadd.f32 %v1540_v45, %v1539_v11  ;;  %v4086_v11 = vld [vmem:[#allocation6 + $0x250] ss:$24 sps:$4 sm:$0xff]   ;;  %v4089_v45 = vld [vmem:[#allocation6 + $0x284] ss:$24 sps:$4 sm:$0xff]  }
 0x535   :  { %4882 = vst [vmem:[#allocation34_spill] sm:$0xff] %v4086_v11  ;;  %4883 = vst [vmem:[#allocation38_spill] sm:$0xff] %v4089_v45 }
 0x536   :  { %1543 = vst.msk [vmem:[#allocation8 + $0x3] ss:$8 sm:$0x3] %vm3141_vm0, %v3997_v37  ;;  %v1557_v26 = vrot.slane %v3997_v37, %v4728_v62  ;;  %v1553_v47 = vrot.slane %v3997_v37, %v4726_v53 }
 0x538   :  { %v1561_v31 = vpack.c.bf16 %v1557_v26, %v1557_v26  ;;  %v4006_v30 = vpack.c.bf16 %v1553_v47, %v1553_v47  ;;  %v4094_v26 = vld [vmem:[#allocation6 + $0x280] ss:$24 sps:$4 sm:$0xff]   ;;  %v4097_v47 = vld [vmem:[#allocation6 + $0x2b4] ss:$24 sps:$4 sm:$0xff]  }
 0x539   :  { %4884 = vst [vmem:[#allocation39_spill] sm:$0xff] %v4094_v26  ;;  %4885 = vst [vmem:[#allocation42_spill] sm:$0xff] %v4097_v47 }
 0x53a   :  { %1594 = vmatprep.mubr.bf16.mxu0 %v1561_v31  ;;  %1635 = vmatprep.mubr.bf16.mxu1 %v1561_v31 }
 0x53b   :  { %1595 = vmatmul.mubr.bf16.vlgmr.msra.gmra.mrb[24].mxu0 %v4006_v30  ;;  %1636 = vmatmul.mubr.bf16.vlgmr.msra.gmra.mrb[24].mxu1 %v4006_v30 }
 0x53c   :  { %1645 = vmatpush1.bf16.msra.mxu0 %v3817_v39  ;;  %1676 = vmatprep.mubr.bf16.mxu0 %v1561_v31  ;;  %v4886_v31 = vld [vmem:[#allocation74_spill] sm:$0xff] }
 0x53d   :  { %1646 = vmatprep.subr.bf16.mxu0 %v3820_v35  ;;  %1788 = vmatpush1.bf16.msra.mxu1 %v3626_v32 }
 0x53e   :  { %1789 = vmatprep.subr.bf16.mxu1 %v3629_v41 }
 0x540   :  { %1647 = vmatpush1.bf16.msra.mxu0 %v3825_v51 }
 0x541   :  { %1648 = vmatprep.subr.bf16.mxu0 %v3828_v28  ;;  %1790 = vmatpush1.bf16.msra.mxu1 %v3634_v16 }
 0x542   :  { %1791 = vmatprep.subr.bf16.mxu1 %v3637_v15 }
 0x544   :  { %1649 = vmatpush1.bf16.msra.mxu0 %v3833_v49 }
 0x545   :  { %1650 = vmatprep.subr.bf16.mxu0 %v3836_v43  ;;  %1792 = vmatpush1.bf16.msra.mxu1 %v3642_v17 }
 0x546   :  { %1793 = vmatprep.subr.bf16.mxu1 %v3645_v21 }
 0x548   :  { %1651 = vmatpush1.bf16.msra.mxu0 %v3841_v36 }
 0x549   :  { %1652 = vmatprep.subr.bf16.mxu0 %v3844_v57  ;;  %1794 = vmatpush1.bf16.msra.mxu1 %v3650_v20 }
 0x54a   :  { %1795 = vmatprep.subr.bf16.mxu1 %v3653_v58 }
 0x54c   :  { %1653 = vmatpush1.bf16.msra.mxu0 %v3849_v38 }
 0x54d   :  { %1654 = vmatprep.subr.bf16.mxu0 %v3852_v42  ;;  %1796 = vmatpush1.bf16.msra.mxu1 %v3658_v44 }
 0x54e   :  { %1797 = vmatprep.subr.bf16.mxu1 %v3661_v56 }
 0x550   :  { %1655 = vmatpush1.bf16.msra.mxu0 %v4030_v48 }
 0x551   :  { %1656 = vmatprep.subr.bf16.mxu0 %v4033_v25  ;;  %1798 = vmatpush1.bf16.msra.mxu1 %v3666_v27 }
 0x552   :  { %1799 = vmatprep.subr.bf16.mxu1 %v3669_v1 }
 0x554   :  { %1657 = vmatpush1.bf16.msra.mxu0 %v4038_v54 }
 0x555   :  { %1658 = vmatprep.subr.bf16.mxu0 %v4041_v50  ;;  %1800 = vmatpush1.bf16.msra.mxu1 %v3674_v2 }
 0x556   :  { %1801 = vmatprep.subr.bf16.mxu1 %v3677_v3 }
 0x558   :  { %1659 = vmatpush1.bf16.msra.mxu0 %v4046_v10 }
 0x559   :  { %1660 = vmatprep.subr.bf16.mxu0 %v4049_v63  ;;  %1802 = vmatpush1.bf16.msra.mxu1 %v3682_v33 }
 0x55a   :  { %1803 = vmatprep.subr.bf16.mxu1 %v3685_v59 }
 0x55c   :  { %1661 = vmatpush1.bf16.msra.mxu0 %v4054_v14 }
 0x55d   :  { %1662 = vmatprep.subr.bf16.mxu0 %v4057_v19  ;;  %1804 = vmatpush1.bf16.msra.mxu1 %v3690_v60 }
 0x55e   :  { %1805 = vmatprep.subr.bf16.mxu1 %v3693_v61 }
 0x560   :  { %1663 = vmatpush1.bf16.msra.mxu0 %v4062_v24 }
 0x561   :  { %1664 = vmatprep.subr.bf16.mxu0 %v4065_v18  ;;  %1806 = vmatpush1.bf16.msra.mxu1 %v3698_v23 }
 0x562   :  { %1807 = vmatprep.subr.bf16.mxu1 %v3701_v34 }
 0x564   :  { %1665 = vmatpush1.bf16.msra.mxu0 %v4070_v22 }
 0x565   :  { %1666 = vmatprep.subr.bf16.mxu0 %v4073_v12  ;;  %1808 = vmatpush1.bf16.msra.mxu1 %v3879_v4  ;;  %v1546_v12 = vld [vmem:[#allocation3 + $0x4] ss:$8 sm:$0xf] }
 0x566   :  { %1809 = vmatprep.subr.bf16.mxu1 %v3882_v5 }
 0x568   :  { %1667 = vmatpush1.bf16.msra.mxu0 %v4078_v46 }
 0x569   :  { %1668 = vmatprep.subr.bf16.mxu0 %v4081_v55  ;;  %1810 = vmatpush1.bf16.msra.mxu1 %v3887_v6  ;;  %v4900_v6 = vld [vmem:[#allocation53_spill] sm:$0xff] }
 0x56a   :  { %1811 = vmatprep.subr.bf16.mxu1 %v3890_v7  ;;  %v4896_v7 = vld [vmem:[#allocation45_spill] sm:$0xff] }
 0x56c   :  { %1669 = vmatpush1.bf16.msra.mxu0 %v4086_v11  ;;  %v4102_v11 = vld [vmem:[#allocation6 + $0x2b0] ss:$24 sps:$4 sm:$0xff]  }
 0x56d   :  { %1670 = vmatprep.subr.bf16.mxu0 %v4089_v45  ;;  %1812 = vmatpush1.bf16.msra.mxu1 %v3895_v8  ;;  %4887 = vst [vmem:[#allocation43_spill] sm:$0xff] %v4102_v11  ;;  %v4105_v45 = vld [vmem:[#allocation6 + $0x2e4] ss:$24 sps:$4 sm:$0xff]   ;;  %v4890_v8 = vld [vmem:[#allocation12_spill] sm:$0xff] }
 0x56e   :  { %1813 = vmatprep.subr.bf16.mxu1 %v3898_v9  ;;  %4888 = vst [vmem:[#allocation46_spill] sm:$0xff] %v4105_v45  ;;  %v4889_v9 = vld [vmem:[#allocation75_spill] sm:$0xff] }
 0x570   :  { %1671 = vmatpush1.bf16.msra.mxu0 %v4094_v26  ;;  %v4110_v26 = vld [vmem:[#allocation6 + $0x2e0] ss:$24 sps:$4 sm:$0xff]  }
 0x571   :  { %1672 = vmatprep.subr.bf16.mxu0 %v4097_v47  ;;  %1814 = vmatpush1.bf16.msra.mxu1 %v3903_v13  ;;  %4891 = vst [vmem:[#allocation47_spill] sm:$0xff] %v4110_v26  ;;  %v4892_v47 = vld [vmem:[#allocation16_spill] sm:$0xff]  ;;  %v4893_v13 = vld [vmem:[#allocation13_spill] sm:$0xff] }
 0x572   :  { %1815 = vmatprep.subr.bf16.mxu1 %v4886_v31  ;;  %v4894_v31 = vld [vmem:[#allocation14_spill] sm:$0xff] }
 0x574   :  { %1673 = vmatpush1.bf16.msra.mxu0 %v4102_v11  ;;  %v4895_v11 = vld [vmem:[#allocation44_spill] sm:$0xff] }
 0x575   :  { %1674 = vmatprep.subr.bf16.mxu0 %v4105_v45  ;;  %1816 = vmatpush1.bf16.msra.mxu1 %v4889_v9  ;;  %v4897_v45 = vld [vmem:[#allocation48_spill] sm:$0xff]  ;;  %v4898_v9 = vld [vmem:[#allocation49_spill] sm:$0xff] }
 0x576   :  { %1817 = vmatprep.subr.bf16.mxu1 %v4890_v8  ;;  %v4899_v8 = vld [vmem:[#allocation52_spill] sm:$0xff] }
 0x578   :  { %1675 = vmatpush1.bf16.msra.mxu0 %v4110_v26  ;;  %v4901_v26 = vld [vmem:[#allocation56_spill] sm:$0xff] }
 0x579   :  { %1828 = vmatprep.subr.bf16.mxu0 %v4892_v47  ;;  %1818 = vmatpush1.bf16.msra.mxu1 %v4893_v13  ;;  %v4902_v47 = vld [vmem:[#allocation57_spill] sm:$0xff]  ;;  %v4903_v13 = vld [vmem:[#allocation59_spill] sm:$0xff] }
 0x57a   :  { %1869 = vmatprep.subr.bf16.mxu1 %v4894_v31  ;;  %v4904_v31 = vld [vmem:[#allocation60_spill] sm:$0xff] }
 0x57b   :  { %1677 = vmatmul.mubr.bf16.vlgmr.msra.gmra.mrb[28].mxu0 %v4006_v30  ;;  %v4905_v30 = vld [vmem:[#allocation61_spill] sm:$0xff] }
 0x57c   :  { %1829 = vmatpush1.bf16.msra.mxu0 %v4895_v11  ;;  %v4906_v11 = vld [vmem:[#allocation62_spill] sm:$0xff] }
 0x57d   :  { %1830 = vmatprep.subr.bf16.mxu0 %v4896_v7  ;;  %v4907_v7 = vld [vmem:[#allocation63_spill] sm:$0xff] }
 0x580   :  { %1831 = vmatpush1.bf16.msra.mxu0 %v4897_v45  ;;  %v4908_v45 = vld [vmem:[#allocation64_spill] sm:$0xff] }
 0x581   :  { %1832 = vmatprep.subr.bf16.mxu0 %v4898_v9  ;;  %v4909_v9 = vld [vmem:[#allocation65_spill] sm:$0xff] }
 0x584   :  { %1833 = vmatpush1.bf16.msra.mxu0 %v4899_v8  ;;  %v4910_v8 = vld [vmem:[#allocation66_spill] sm:$0xff] }
 0x585   :  { %1834 = vmatprep.subr.bf16.mxu0 %v4900_v6  ;;  %v4911_v6 = vld [vmem:[#allocation15_spill] sm:$0xff] }
 0x588   :  { %1835 = vmatpush1.bf16.msra.mxu0 %v4901_v26  ;;  %v4912_v26 = vld [vmem:[#allocation17_spill] sm:$0xff] }
 0x589   :  { %1836 = vmatprep.subr.bf16.mxu0 %v4902_v47  ;;  %v4913_v47 = vld [vmem:[#allocation19_spill] sm:$0xff] }
 0x58c   :  { %1837 = vmatpush1.bf16.msra.mxu0 %v4903_v13  ;;  %v4914_v13 = vld [vmem:[#allocation20_spill] sm:$0xff] }
 0x58d   :  { %1838 = vmatprep.subr.bf16.mxu0 %v4904_v31  ;;  %v4915_v31 = vld [vmem:[#allocation22_spill] sm:$0xff] }
 0x590   :  { %1839 = vmatpush1.bf16.msra.mxu0 %v4905_v30  ;;  %v4916_v30 = vld [vmem:[#allocation23_spill] sm:$0xff] }
 0x591   :  { %1840 = vmatprep.subr.bf16.mxu0 %v4906_v11  ;;  %v4917_v11 = vld [vmem:[#allocation25_spill] sm:$0xff] }
 0x594   :  { %1841 = vmatpush1.bf16.msra.mxu0 %v4907_v7  ;;  %v4918_v7 = vld [vmem:[#allocation26_spill] sm:$0xff] }
 0x595   :  { %1842 = vmatprep.subr.bf16.mxu0 %v4908_v45  ;;  %v4919_v45 = vld [vmem:[#allocation27_spill] sm:$0xff] }
 0x598   :  { %1843 = vmatpush1.bf16.msra.mxu0 %v4909_v9  ;;  %v4920_v9 = vld [vmem:[#allocation28_spill] sm:$0xff] }
 0x599   :  { %1844 = vmatprep.subr.bf16.mxu0 %v4910_v8  ;;  %v4921_v8 = vld [vmem:[#allocation29_spill] sm:$0xff] }
 0x59c   :  { %1845 = vmatpush1.bf16.msra.mxu0 %v4911_v6  ;;  %v4922_v6 = vld [vmem:[#allocation30_spill] sm:$0xff] }
 0x59d   :  { %1846 = vmatprep.subr.bf16.mxu0 %v4912_v26  ;;  %v4923_v26 = vld [vmem:[#allocation18_spill] sm:$0xff] }
 0x5a0   :  { %1847 = vmatpush1.bf16.msra.mxu0 %v4913_v47  ;;  %v4924_v47 = vld [vmem:[#allocation36_spill] sm:$0xff] }
 0x5a1   :  { %1848 = vmatprep.subr.bf16.mxu0 %v4914_v13  ;;  %v4925_v13 = vld [vmem:[#allocation37_spill] sm:$0xff] }
 0x5a4   :  { %1849 = vmatpush1.bf16.msra.mxu0 %v4915_v31  ;;  %v4926_v31 = vld [vmem:[#allocation35_spill] sm:$0xff] }
 0x5a5   :  { %1850 = vmatprep.subr.bf16.mxu0 %v4916_v30 }
 0x5a8   :  { %1851 = vmatpush1.bf16.msra.mxu0 %v4917_v11 }
 0x5a9   :  { %1852 = vmatprep.subr.bf16.mxu0 %v4918_v7 }
 0x5ac   :  { %1853 = vmatpush1.bf16.msra.mxu0 %v4919_v45 }
 0x5ad   :  { %1854 = vmatprep.subr.bf16.mxu0 %v4920_v9 }
 0x5b0   :  { %1855 = vmatpush1.bf16.msra.mxu0 %v4921_v8 }
 0x5b1   :  { %1856 = vmatprep.subr.bf16.mxu0 %v4922_v6 }
 0x5b4   :  { %1857 = vmatpush1.bf16.msra.mxu0 %v4923_v26  ;;  %v1547_v26 = vld [vmem:[#allocation3 + $0x4] ss:$8 sm:$0x30] }
 0x5b5   :  { %1858 = vmatprep.subr.bf16.mxu0 %v4924_v47  ;;  %v1548_v22 = vor.u32 %v1547_v26, %v1546_v12 }
 0x5b7   :  { %v1711_v23 = vrot.slane %v1548_v22, 2 }
 0x5b8   :  { %1859 = vmatpush1.bf16.msra.mxu0 %v4925_v13 }
 0x5b9   :  { %2012 = vmatprep.subr.bf16.mxu0 %v4926_v31 }
 0x60e   :  { %v1596_v30 = vpop.f32.mrb[24].mxu0  ;;  %v1637_v11 = vpop.f32.mrb[24].mxu1 }
 0x60f   :  { %v1598_v55 = vpop.f32.mrb[25].mxu0  ;;  %v1639_v7 = vpop.f32.mrb[25].mxu1 }
 0x610   :  { %v1687_v46 = vcombine.low %v1596_v30, %v1598_v55  ;;  %v1715_v45 = vcombine.low %v1637_v11, %v1639_v7  ;;  %v1600_v5 = vpop.f32.mrb[26].mxu0  ;;  %v1641_v9 = vpop.f32.mrb[26].mxu1 }
 0x611   :  { %v1601_v4 = vpop.f32.mrb[27].mxu0  ;;  %v1642_v8 = vpop.f32.mrb[27].mxu1 }
 0x612   :  { %v1694_v6 = vrot.slane %v1687_v46, %v3470_v29  ;;  %v1722_v31 = vrot.slane %v1715_v45, %v3470_v29 }
 0x614   :  { %v1701_v47 = vrot.slane %v1694_v6, %v3470_v29  ;;  %v1729_v18 = vrot.slane %v1722_v31, %v3470_v29 }
 0x616   :  { %v1703_v13 = vadd.f32 %v1701_v47, %v1548_v22  ;;  %v1731_v7 = vadd.f32 %v1729_v18, %v1711_v23 }
 0x618   :  { %v2566_v34 = vmul.f32 -1.442695, %v1703_v13  ;;  %v2567_v5 = vmul.f32 -1.442695, %v1731_v7 }
 0x61a   :  { %2764 = vpow2.f32 %v2566_v34  ;;  %v1759_v34 = vrot.slane %v1548_v22, 4 }
 0x61b   :  { %2766 = vpow2.f32 %v2567_v5 }
 0x624   :  { %v2765_v9 = vpop.eup %2764 }
 0x625   :  { %v1707_v4 = vadd.f32 1.0, %v2765_v9  ;;  %v2767_v11 = vpop.eup %2766 }
 0x626   :  { %v1735_v26 = vadd.f32 1.0, %v2767_v11  ;;  %v4946_v11 = vld [vmem:[#allocation43_spill] sm:$0xff] }
 0x627   :  { %2768 = vrcp.f32 %v1707_v4 }
 0x628   :  { %2770 = vrcp.f32 %v1735_v26  ;;  %v4949_v26 = vld [vmem:[#allocation12_spill] sm:$0xff] }
 0x631   :  { %v2769_v18 = vpop.eup %2768 }
 0x632   :  { %v2771_v7 = vpop.eup %2770 }
 0x633   :  { %v1763_v5 = vsub.f32 1.0, %v2771_v7 }
 0x64e   :  { %v1678_v8 = vpop.f32.mrb[28].mxu0 }
 0x64f   :  { %v1738_v46 = vadd.f32 %v1678_v8, %v4787_v52  ;;  %v1680_v55 = vpop.f32.mrb[29].mxu0  ;;  %v1765_v8 = vmul.f32 %v2771_v7, %v3997_v37  ;;  %v4945_v37 = vld [vmem:[#allocation74_spill] sm:$0xff]  ;;  %v4956_v7 = vld [vmem:[#allocation48_spill] sm:$0xff] }
 0x650   :  { %v1739_v6 = vadd.f32 %v1680_v55, %v3483_v40  ;;  %v1682_v12 = vpop.f32.mrb[30].mxu0 }
 0x651   :  { %v1683_v45 = vpop.f32.mrb[31].mxu0 }
 0x652   :  { %v1742_v13 = vcombine.low %v1738_v46, %v1739_v6  ;;  %v4947_v45 = vld [vmem:[#allocation46_spill] sm:$0xff] }
 0x654   :  { %v1749_v47 = vrot.slane %v1742_v13, %v3470_v29  ;;  %v4948_v13 = vld [vmem:[#allocation75_spill] sm:$0xff] }
 0x656   :  { %v1756_v23 = vrot.slane %v1749_v47, %v3470_v29  ;;  %v4950_v47 = vld [vmem:[#allocation47_spill] sm:$0xff] }
 0x658   :  { %v1758_v30 = vmul.f32 %v2769_v18, %v1756_v23  ;;  %v4951_v23 = vld [vmem:[#allocation16_spill] sm:$0xff]  ;;  %v4953_v18 = vld [vmem:[#allocation14_spill] sm:$0xff] }
 0x65a   :  { %v1761_v31 = vadd.f32 %v1759_v34, %v1758_v30  ;;  %v4952_v34 = vld [vmem:[#allocation13_spill] sm:$0xff]  ;;  %v4954_v30 = vld [vmem:[#allocation44_spill] sm:$0xff] }
 0x65c   :  { %2772 = vtanh.f32 %v1761_v31  ;;  %v4955_v31 = vld [vmem:[#allocation45_spill] sm:$0xff] }
 0x666   :  { %v2773_v9 = vpop.eup %2772 }
 0x667   :  { %v1764_v4 = vmul.f32 %v2773_v9, %v1763_v5  ;;  %v4957_v5 = vld [vmem:[#allocation49_spill] sm:$0xff]  ;;  %v4958_v9 = vld [vmem:[#allocation52_spill] sm:$0xff] }
 0x669   :  { %v4158_v55 = vadd.f32 %v1765_v8, %v1764_v4  ;;  %v4959_v4 = vld [vmem:[#allocation53_spill] sm:$0xff]  ;;  %v4960_v8 = vld [vmem:[#allocation56_spill] sm:$0xff] }
 0x66b   :  { %1768 = vst.msk [vmem:[#allocation8 + $0x4] ss:$8 sm:$0x3] %vm3141_vm0, %v4158_v55  ;;  %v1782_v22 = vrot.slane %v4158_v55, %v4728_v62  ;;  %v1778_v46 = vrot.slane %v4158_v55, %v4726_v53 }
 0x66d   :  { %v1786_v6 = vpack.c.bf16 %v1782_v22, %v1782_v22  ;;  %v4167_v12 = vpack.c.bf16 %v1778_v46, %v1778_v46  ;;  %v4961_v22 = vld [vmem:[#allocation57_spill] sm:$0xff]  ;;  %v4962_v46 = vld [vmem:[#allocation59_spill] sm:$0xff] }
 0x66f   :  { %1819 = vmatprep.mubr.bf16.mxu1 %v1786_v6  ;;  %1860 = vmatprep.mubr.bf16.mxu0 %v1786_v6 }
 0x670   :  { %1820 = vmatmul.mubr.bf16.vlgmr.msra.gmra.mrb[28].mxu1 %v4167_v12  ;;  %1861 = vmatmul.mubr.bf16.vlgmr.msra.gmra.mrb[32].mxu0 %v4167_v12 }
 0x671   :  { %1870 = vmatpush1.bf16.msra.mxu1 %v3817_v39  ;;  %1901 = vmatprep.mubr.bf16.mxu1 %v1786_v6  ;;  %v4963_v6 = vld [vmem:[#allocation60_spill] sm:$0xff] }
 0x672   :  { %1871 = vmatprep.subr.bf16.mxu1 %v3820_v35  ;;  %2013 = vmatpush1.bf16.msra.mxu0 %v3626_v32  ;;  %v4927_v32 = vld [vmem:[#allocation40_spill] sm:$0xff] }
 0x673   :  { %2014 = vmatprep.subr.bf16.mxu0 %v3629_v41  ;;  %v4928_v41 = vld [vmem:[#allocation21_spill] sm:$0xff] }
 0x675   :  { %1872 = vmatpush1.bf16.msra.mxu1 %v3825_v51 }
 0x676   :  { %1873 = vmatprep.subr.bf16.mxu1 %v3828_v28  ;;  %2015 = vmatpush1.bf16.msra.mxu0 %v3634_v16  ;;  %v4929_v16 = vld [vmem:[#allocation24_spill] sm:$0xff] }
 0x677   :  { %2016 = vmatprep.subr.bf16.mxu0 %v3637_v15  ;;  %v4930_v15 = vld [vmem:[#allocation41_spill] sm:$0xff] }
 0x679   :  { %1874 = vmatpush1.bf16.msra.mxu1 %v3833_v49 }
 0x67a   :  { %1875 = vmatprep.subr.bf16.mxu1 %v3836_v43  ;;  %2017 = vmatpush1.bf16.msra.mxu0 %v3642_v17  ;;  %v4931_v17 = vld [vmem:[#allocation31_spill] sm:$0xff] }
 0x67b   :  { %2018 = vmatprep.subr.bf16.mxu0 %v3645_v21  ;;  %v4932_v21 = vld [vmem:[#allocation67_spill] sm:$0xff] }
 0x67d   :  { %1876 = vmatpush1.bf16.msra.mxu1 %v3841_v36 }
 0x67e   :  { %1877 = vmatprep.subr.bf16.mxu1 %v3844_v57  ;;  %2019 = vmatpush1.bf16.msra.mxu0 %v3650_v20  ;;  %v4933_v20 = vld [vmem:[#allocation68_spill] sm:$0xff] }
 0x67f   :  { %2020 = vmatprep.subr.bf16.mxu0 %v3653_v58  ;;  %v4934_v58 = vld [vmem:[#allocation32_spill] sm:$0xff] }
 0x681   :  { %1878 = vmatpush1.bf16.msra.mxu1 %v3849_v38 }
 0x682   :  { %1879 = vmatprep.subr.bf16.mxu1 %v3852_v42  ;;  %2021 = vmatpush1.bf16.msra.mxu0 %v3658_v44  ;;  %v4935_v44 = vld [vmem:[#allocation33_spill] sm:$0xff] }
 0x683   :  { %2022 = vmatprep.subr.bf16.mxu0 %v3661_v56  ;;  %v4936_v56 = vld [vmem:[#allocation69_spill] sm:$0xff] }
 0x685   :  { %1880 = vmatpush1.bf16.msra.mxu1 %v4030_v48 }
 0x686   :  { %1881 = vmatprep.subr.bf16.mxu1 %v4033_v25  ;;  %2023 = vmatpush1.bf16.msra.mxu0 %v3666_v27  ;;  %v4937_v27 = vld [vmem:[#allocation70_spill] sm:$0xff] }
 0x687   :  { %2024 = vmatprep.subr.bf16.mxu0 %v3669_v1  ;;  %v4938_v1 = vld [vmem:[#allocation34_spill] sm:$0xff] }
 0x689   :  { %1882 = vmatpush1.bf16.msra.mxu1 %v4038_v54 }
 0x68a   :  { %1883 = vmatprep.subr.bf16.mxu1 %v4041_v50  ;;  %2025 = vmatpush1.bf16.msra.mxu0 %v3674_v2  ;;  %v4939_v2 = vld [vmem:[#allocation38_spill] sm:$0xff] }
 0x68b   :  { %2026 = vmatprep.subr.bf16.mxu0 %v3677_v3  ;;  %v4940_v3 = vld [vmem:[#allocation71_spill] sm:$0xff] }
 0x68d   :  { %1884 = vmatpush1.bf16.msra.mxu1 %v4046_v10 }
 0x68e   :  { %1885 = vmatprep.subr.bf16.mxu1 %v4049_v63  ;;  %2027 = vmatpush1.bf16.msra.mxu0 %v3682_v33  ;;  %v4941_v33 = vld [vmem:[#allocation72_spill] sm:$0xff] }
 0x68f   :  { %2028 = vmatprep.subr.bf16.mxu0 %v3685_v59  ;;  %v4942_v59 = vld [vmem:[#allocation39_spill] sm:$0xff] }
 0x691   :  { %1886 = vmatpush1.bf16.msra.mxu1 %v4054_v14 }
 0x692   :  { %1887 = vmatprep.subr.bf16.mxu1 %v4057_v19  ;;  %2029 = vmatpush1.bf16.msra.mxu0 %v3690_v60  ;;  %v4943_v60 = vld [vmem:[#allocation42_spill] sm:$0xff] }
 0x693   :  { %2030 = vmatprep.subr.bf16.mxu0 %v3693_v61  ;;  %v4944_v61 = vld [vmem:[#allocation73_spill] sm:$0xff] }
 0x695   :  { %1888 = vmatpush1.bf16.msra.mxu1 %v4062_v24 }
 0x696   :  { %1889 = vmatprep.subr.bf16.mxu1 %v4927_v32  ;;  %2031 = vmatpush1.bf16.msra.mxu0 %v4928_v41  ;;  %v4965_v41 = vld [vmem:[#allocation62_spill] sm:$0xff] }
 0x697   :  { %2032 = vmatprep.subr.bf16.mxu0 %v4929_v16  ;;  %v4966_v16 = vld [vmem:[#allocation63_spill] sm:$0xff] }
 0x699   :  { %1890 = vmatpush1.bf16.msra.mxu1 %v4930_v15 }
 0x69a   :  { %1891 = vmatprep.subr.bf16.mxu1 %v4931_v17  ;;  %2033 = vmatpush1.bf16.msra.mxu0 %v4932_v21 }
 0x69b   :  { %2034 = vmatprep.subr.bf16.mxu0 %v4933_v20 }
 0x69d   :  { %1892 = vmatpush1.bf16.msra.mxu1 %v4934_v58 }
 0x69e   :  { %1893 = vmatprep.subr.bf16.mxu1 %v4935_v44  ;;  %2035 = vmatpush1.bf16.msra.mxu0 %v4936_v56 }
 0x69f   :  { %2036 = vmatprep.subr.bf16.mxu0 %v4937_v27 }
 0x6a1   :  { %1894 = vmatpush1.bf16.msra.mxu1 %v4938_v1 }
 0x6a2   :  { %1895 = vmatprep.subr.bf16.mxu1 %v4939_v2  ;;  %2037 = vmatpush1.bf16.msra.mxu0 %v4940_v3 }
 0x6a3   :  { %2038 = vmatprep.subr.bf16.mxu0 %v4941_v33 }
 0x6a5   :  { %1896 = vmatpush1.bf16.msra.mxu1 %v4942_v59 }
 0x6a6   :  { %1897 = vmatprep.subr.bf16.mxu1 %v4943_v60  ;;  %2039 = vmatpush1.bf16.msra.mxu0 %v4944_v61 }
 0x6a7   :  { %2040 = vmatprep.subr.bf16.mxu0 %v4945_v37 }
 0x6a9   :  { %1898 = vmatpush1.bf16.msra.mxu1 %v4946_v11 }
 0x6aa   :  { %1899 = vmatprep.subr.bf16.mxu1 %v4947_v45  ;;  %2041 = vmatpush1.bf16.msra.mxu0 %v4948_v13 }
 0x6ab   :  { %2042 = vmatprep.subr.bf16.mxu0 %v4949_v26 }
 0x6ad   :  { %1900 = vmatpush1.bf16.msra.mxu1 %v4950_v47 }
 0x6ae   :  { %2053 = vmatprep.subr.bf16.mxu1 %v4951_v23  ;;  %2043 = vmatpush1.bf16.msra.mxu0 %v4952_v34  ;;  %v4967_v23 = vld [vmem:[#allocation64_spill] sm:$0xff] }
 0x6af   :  { %2094 = vmatprep.subr.bf16.mxu0 %v4953_v18  ;;  %v1771_v34 = vld [vmem:[#allocation3 + $0x5] ss:$8 sm:$0xf] }
 0x6b0   :  { %1902 = vmatmul.mubr.bf16.vlgmr.msra.gmra.mrb[32].mxu1 %v4167_v12  ;;  %v4964_v12 = vld [vmem:[#allocation61_spill] sm:$0xff] }
 0x6b1   :  { %2054 = vmatpush1.bf16.msra.mxu1 %v4954_v30  ;;  %v4968_v30 = vld [vmem:[#allocation65_spill] sm:$0xff] }
 0x6b2   :  { %2055 = vmatprep.subr.bf16.mxu1 %v4955_v31  ;;  %v4969_v31 = vld [vmem:[#allocation66_spill] sm:$0xff] }
 0x6b5   :  { %2056 = vmatpush1.bf16.msra.mxu1 %v4956_v7  ;;  %v4970_v7 = vld [vmem:[#allocation15_spill] sm:$0xff] }
 0x6b6   :  { %2057 = vmatprep.subr.bf16.mxu1 %v4957_v5  ;;  %v4971_v5 = vld [vmem:[#allocation17_spill] sm:$0xff] }
 0x6b9   :  { %2058 = vmatpush1.bf16.msra.mxu1 %v4958_v9  ;;  %v4972_v9 = vld [vmem:[#allocation19_spill] sm:$0xff] }
 0x6ba   :  { %2059 = vmatprep.subr.bf16.mxu1 %v4959_v4  ;;  %v4973_v4 = vld [vmem:[#allocation20_spill] sm:$0xff] }
 0x6bd   :  { %2060 = vmatpush1.bf16.msra.mxu1 %v4960_v8  ;;  %v4974_v8 = vld [vmem:[#allocation22_spill] sm:$0xff] }
 0x6be   :  { %2061 = vmatprep.subr.bf16.mxu1 %v4961_v22  ;;  %v4975_v22 = vld [vmem:[#allocation23_spill] sm:$0xff] }
 0x6c1   :  { %2062 = vmatpush1.bf16.msra.mxu1 %v4962_v46  ;;  %v4976_v46 = vld [vmem:[#allocation25_spill] sm:$0xff] }
 0x6c2   :  { %2063 = vmatprep.subr.bf16.mxu1 %v4963_v6  ;;  %v4977_v6 = vld [vmem:[#allocation26_spill] sm:$0xff] }
 0x6c5   :  { %2064 = vmatpush1.bf16.msra.mxu1 %v4964_v12  ;;  %v4978_v12 = vld [vmem:[#allocation27_spill] sm:$0xff] }
 0x6c6   :  { %2065 = vmatprep.subr.bf16.mxu1 %v4965_v41  ;;  %v4979_v41 = vld [vmem:[#allocation28_spill] sm:$0xff] }
 0x6c9   :  { %2066 = vmatpush1.bf16.msra.mxu1 %v4966_v16  ;;  %v4980_v16 = vld [vmem:[#allocation29_spill] sm:$0xff] }
 0x6ca   :  { %2067 = vmatprep.subr.bf16.mxu1 %v4967_v23  ;;  %v4981_v23 = vld [vmem:[#allocation30_spill] sm:$0xff] }
 0x6cd   :  { %2068 = vmatpush1.bf16.msra.mxu1 %v4968_v30  ;;  %v4982_v30 = vld [vmem:[#allocation18_spill] sm:$0xff] }
 0x6ce   :  { %2069 = vmatprep.subr.bf16.mxu1 %v4969_v31  ;;  %v4983_v31 = vld [vmem:[#allocation36_spill] sm:$0xff] }
 0x6d1   :  { %2070 = vmatpush1.bf16.msra.mxu1 %v4970_v7 }
 0x6d2   :  { %2071 = vmatprep.subr.bf16.mxu1 %v4971_v5 }
 0x6d5   :  { %2072 = vmatpush1.bf16.msra.mxu1 %v4972_v9 }
 0x6d6   :  { %2073 = vmatprep.subr.bf16.mxu1 %v4973_v4  ;;  %v4984_v4 = vld [vmem:[#allocation37_spill] sm:$0xff] }
 0x6d9   :  { %2074 = vmatpush1.bf16.msra.mxu1 %v4974_v8  ;;  %v2900_v8 = vld [vmem:[#allocation6 + $0x4] ss:$24 sps:$4 sm:$0xff]  }
 0x6da   :  { %2075 = vmatprep.subr.bf16.mxu1 %v4975_v22 }
 0x6dd   :  { %2076 = vmatpush1.bf16.msra.mxu1 %v4976_v46 }
 0x6de   :  { %2077 = vmatprep.subr.bf16.mxu1 %v4977_v6 }
 0x6e1   :  { %2078 = vmatpush1.bf16.msra.mxu1 %v4978_v12 }
 0x6e2   :  { %2079 = vmatprep.subr.bf16.mxu1 %v4979_v41 }
 0x6e5   :  { %2080 = vmatpush1.bf16.msra.mxu1 %v4980_v16 }
 0x6e6   :  { %2081 = vmatprep.subr.bf16.mxu1 %v4981_v23 }
 0x6e9   :  { %2082 = vmatpush1.bf16.msra.mxu1 %v4982_v30  ;;  %v1772_v30 = vld [vmem:[#allocation3 + $0x5] ss:$8 sm:$0x30] }
 0x6ea   :  { %2083 = vmatprep.subr.bf16.mxu1 %v4983_v31  ;;  %v1773_v47 = vor.u32 %v1772_v30, %v1771_v34 }
 0x6ec   :  { %v1936_v13 = vrot.slane %v1773_v47, 2 }
 0x6ed   :  { %2084 = vmatpush1.bf16.msra.mxu1 %v4984_v4 }
 0x6ee   :  { %2237 = vmatprep.subr.bf16.mxu1 %v2900_v8 }
 0x743   :  { %v1821_v22 = vpop.f32.mrb[28].mxu1  ;;  %v1862_v46 = vpop.f32.mrb[32].mxu0 }
 0x744   :  { %v1823_v9 = vpop.f32.mrb[29].mxu1  ;;  %v1864_v6 = vpop.f32.mrb[33].mxu0 }
 0x745   :  { %v1912_v5 = vcombine.low %v1821_v22, %v1823_v9  ;;  %v1940_v12 = vcombine.low %v1862_v46, %v1864_v6  ;;  %v1825_v7 = vpop.f32.mrb[30].mxu1  ;;  %v1866_v41 = vpop.f32.mrb[34].mxu0 }
 0x746   :  { %v1826_v18 = vpop.f32.mrb[31].mxu1  ;;  %v1867_v16 = vpop.f32.mrb[35].mxu0 }
 0x747   :  { %v1919_v23 = vrot.slane %v1912_v5, %v3470_v29  ;;  %v1947_v8 = vrot.slane %v1940_v12, %v3470_v29 }
 0x749   :  { %v1926_v31 = vrot.slane %v1919_v23, %v3470_v29  ;;  %v1954_v45 = vrot.slane %v1947_v8, %v3470_v29 }
 0x74b   :  { %v1928_v4 = vadd.f32 %v1926_v31, %v1773_v47  ;;  %v1956_v9 = vadd.f32 %v1954_v45, %v1936_v13  ;;  %v1984_v13 = vrot.slane %v1773_v47, 4 }
 0x74d   :  { %v2568_v26 = vmul.f32 -1.442695, %v1928_v4  ;;  %v2569_v7 = vmul.f32 -1.442695, %v1956_v9 }
 0x74f   :  { %2774 = vpow2.f32 %v2568_v26 }
 0x750   :  { %2776 = vpow2.f32 %v2569_v7 }
 0x759   :  { %v2775_v22 = vpop.eup %2774 }
 0x75a   :  { %v1932_v18 = vadd.f32 1.0, %v2775_v22  ;;  %v2777_v16 = vpop.eup %2776 }
 0x75b   :  { %v1960_v23 = vadd.f32 1.0, %v2777_v16  ;;  %v2902_v16 = vld [vmem:[#allocation6 + $0x34] ss:$24 sps:$4 sm:$0xff]  }
 0x75c   :  { %2778 = vrcp.f32 %v1932_v18 }
 0x75d   :  { %2780 = vrcp.f32 %v1960_v23  ;;  %v2906_v23 = vld [vmem:[#allocation6 + $0x94] ss:$24 sps:$4 sm:$0xff]  }
 0x766   :  { %v2779_v26 = vpop.eup %2778 }
 0x767   :  { %v2781_v9 = vpop.eup %2780 }
 0x768   :  { %v1988_v7 = vsub.f32 1.0, %v2781_v9 }
 0x783   :  { %v1903_v5 = vpop.f32.mrb[32].mxu1 }
 0x784   :  { %v1963_v46 = vadd.f32 %v1903_v5, %v4787_v52  ;;  %v1905_v6 = vpop.f32.mrb[33].mxu1  ;;  %v1990_v5 = vmul.f32 %v2781_v9, %v4158_v55  ;;  %v2901_v55 = vld [vmem:[#allocation6] ss:$24 sps:$4 sm:$0xff]  }
 0x785   :  { %v1964_v34 = vadd.f32 %v1905_v6, %v3483_v40  ;;  %v1907_v41 = vpop.f32.mrb[34].mxu1  ;;  %v2924_v9 = vld [vmem:[#allocation6 + $0x38] ss:$24 sps:$4 sm:$0xff]  }
 0x786   :  { %v1908_v12 = vpop.f32.mrb[35].mxu1 }
 0x787   :  { %v1967_v4 = vcombine.low %v1963_v46, %v1964_v34  ;;  %v2903_v12 = vld [vmem:[#allocation6 + $0x30] ss:$24 sps:$4 sm:$0xff]  }
 0x789   :  { %v1974_v30 = vrot.slane %v1967_v4, %v3470_v29  ;;  %v2904_v4 = vld [vmem:[#allocation6 + $0x64] ss:$24 sps:$4 sm:$0xff]  }
 0x78b   :  { %v1981_v45 = vrot.slane %v1974_v30, %v3470_v29  ;;  %v2916_v30 = vld [vmem:[#allocation6 + $0x184] ss:$24 sps:$4 sm:$0xff]  }
 0x78d   :  { %v1983_v31 = vmul.f32 %v2779_v26, %v1981_v45  ;;  %v2917_v45 = vld [vmem:[#allocation6 + $0x180] ss:$24 sps:$4 sm:$0xff]   ;;  %v2919_v26 = vld [vmem:[#allocation6 + $0x1b0] ss:$24 sps:$4 sm:$0xff]  }
 0x78f   :  { %v1986_v8 = vadd.f32 %v1984_v13, %v1983_v31  ;;  %v2918_v13 = vld [vmem:[#allocation6 + $0x1b4] ss:$24 sps:$4 sm:$0xff]   ;;  %v2920_v31 = vld [vmem:[#allocation6 + $0x1e4] ss:$24 sps:$4 sm:$0xff]  }
 0x791   :  { %2782 = vtanh.f32 %v1986_v8  ;;  %v4990_v8 = vld [vmem:[#allocation14_spill] sm:$0xff] }
 0x79b   :  { %v2783_v22 = vpop.eup %2782 }
 0x79c   :  { %v1989_v18 = vmul.f32 %v2783_v22, %v1988_v7  ;;  %v2925_v7 = vld [vmem:[#allocation6 + $0x6c] ss:$24 sps:$4 sm:$0xff]   ;;  %v2926_v22 = vld [vmem:[#allocation6 + $0x68] ss:$24 sps:$4 sm:$0xff]  }
 0x79e   :  { %v4276_v6 = vadd.f32 %v1990_v5, %v1989_v18  ;;  %v2927_v18 = vld [vmem:[#allocation6 + $0x9c] ss:$24 sps:$4 sm:$0xff]   ;;  %v2928_v5 = vld [vmem:[#allocation6 + $0x98] ss:$24 sps:$4 sm:$0xff]  }
 0x7a0   :  { %1993 = vst.msk [vmem:[#allocation8 + $0x5] ss:$8 sm:$0x3] %vm3141_vm0, %v4276_v6  ;;  %v2007_v47 = vrot.slane %v4276_v6, %v4728_v62  ;;  %v2003_v46 = vrot.slane %v4276_v6, %v4726_v53 }
 0x7a2   :  { %v2011_v34 = vpack.c.bf16 %v2007_v47, %v2007_v47  ;;  %v4285_v41 = vpack.c.bf16 %v2003_v46, %v2003_v46  ;;  %v2929_v47 = vld [vmem:[#allocation6 + $0xcc] ss:$24 sps:$4 sm:$0xff]   ;;  %v2930_v46 = vld [vmem:[#allocation6 + $0xc8] ss:$24 sps:$4 sm:$0xff]  }
 0x7a4   :  { %2044 = vmatprep.mubr.bf16.mxu0 %v2011_v34  ;;  %2085 = vmatprep.mubr.bf16.mxu1 %v2011_v34 }
 0x7a5   :  { %2045 = vmatmul.mubr.bf16.vlgmr.msra.gmra.mrb[36].mxu0 %v4285_v41  ;;  %2086 = vmatmul.mubr.bf16.vlgmr.msra.gmra.mrb[36].mxu1 %v4285_v41 }
 0x7a6   :  { %2095 = vmatpush1.bf16.msra.mxu0 %v3817_v39  ;;  %2126 = vmatprep.mubr.bf16.mxu0 %v2011_v34  ;;  %v2905_v39 = vld [vmem:[#allocation6 + $0x60] ss:$24 sps:$4 sm:$0xff]   ;;  %v2931_v34 = vld [vmem:[#allocation6 + $0xfc] ss:$24 sps:$4 sm:$0xff]  }
 0x7a7   :  { %2096 = vmatprep.subr.bf16.mxu0 %v3820_v35  ;;  %2238 = vmatpush1.bf16.msra.mxu1 %v2901_v55  ;;  %v2907_v35 = vld [vmem:[#allocation6 + $0x90] ss:$24 sps:$4 sm:$0xff]   ;;  %v2933_v55 = vld [vmem:[#allocation6 + $0x12c] ss:$24 sps:$4 sm:$0xff]  }
 0x7a8   :  { %2239 = vmatprep.subr.bf16.mxu1 %v2902_v16  ;;  %v2934_v16 = vld [vmem:[#allocation6 + $0x128] ss:$24 sps:$4 sm:$0xff]  }
 0x7aa   :  { %2097 = vmatpush1.bf16.msra.mxu0 %v3825_v51  ;;  %v2908_v51 = vld [vmem:[#allocation6 + $0xc4] ss:$24 sps:$4 sm:$0xff]  }
 0x7ab   :  { %2098 = vmatprep.subr.bf16.mxu0 %v3828_v28  ;;  %2240 = vmatpush1.bf16.msra.mxu1 %v2903_v12  ;;  %v2909_v28 = vld [vmem:[#allocation6 + $0xc0] ss:$24 sps:$4 sm:$0xff]   ;;  %v2935_v12 = vld [vmem:[#allocation6 + $0x15c] ss:$24 sps:$4 sm:$0xff]  }
 0x7ac   :  { %2241 = vmatprep.subr.bf16.mxu1 %v2904_v4  ;;  %v2936_v4 = vld [vmem:[#allocation6 + $0x158] ss:$24 sps:$4 sm:$0xff]  }
 0x7ae   :  { %2099 = vmatpush1.bf16.msra.mxu0 %v3833_v49  ;;  %v2910_v49 = vld [vmem:[#allocation6 + $0xf4] ss:$24 sps:$4 sm:$0xff]  }
 0x7af   :  { %2100 = vmatprep.subr.bf16.mxu0 %v3836_v43  ;;  %2242 = vmatpush1.bf16.msra.mxu1 %v2905_v39  ;;  %v2911_v43 = vld [vmem:[#allocation6 + $0xf0] ss:$24 sps:$4 sm:$0xff]   ;;  %v2937_v39 = vld [vmem:[#allocation6 + $0x18c] ss:$24 sps:$4 sm:$0xff]  }
 0x7b0   :  { %2243 = vmatprep.subr.bf16.mxu1 %v2906_v23  ;;  %v4991_v23 = vld [vmem:[#allocation15_spill] sm:$0xff] }
 0x7b2   :  { %2101 = vmatpush1.bf16.msra.mxu0 %v3841_v36  ;;  %v2912_v36 = vld [vmem:[#allocation6 + $0x124] ss:$24 sps:$4 sm:$0xff]  }
 0x7b3   :  { %2102 = vmatprep.subr.bf16.mxu0 %v3844_v57  ;;  %2244 = vmatpush1.bf16.msra.mxu1 %v2907_v35  ;;  %v2913_v57 = vld [vmem:[#allocation6 + $0x120] ss:$24 sps:$4 sm:$0xff]  }
 0x7b4   :  { %2245 = vmatprep.subr.bf16.mxu1 %v2908_v51  ;;  %v4992_v35 = vld [vmem:[#allocation17_spill] sm:$0xff]  ;;  %v4993_v51 = vld [vmem:[#allocation19_spill] sm:$0xff] }
 0x7b6   :  { %2103 = vmatpush1.bf16.msra.mxu0 %v3849_v38  ;;  %v2914_v38 = vld [vmem:[#allocation6 + $0x154] ss:$24 sps:$4 sm:$0xff]  }
 0x7b7   :  { %2104 = vmatprep.subr.bf16.mxu0 %v3852_v42  ;;  %2246 = vmatpush1.bf16.msra.mxu1 %v2909_v28  ;;  %v2915_v42 = vld [vmem:[#allocation6 + $0x150] ss:$24 sps:$4 sm:$0xff]  }
 0x7b8   :  { %2247 = vmatprep.subr.bf16.mxu1 %v2910_v49  ;;  %v4994_v28 = vld [vmem:[#allocation20_spill] sm:$0xff]  ;;  %v4995_v49 = vld [vmem:[#allocation22_spill] sm:$0xff] }
 0x7ba   :  { %2105 = vmatpush1.bf16.msra.mxu0 %v4030_v48 }
 0x7bb   :  { %2106 = vmatprep.subr.bf16.mxu0 %v4033_v25  ;;  %2248 = vmatpush1.bf16.msra.mxu1 %v2911_v43  ;;  %v4996_v43 = vld [vmem:[#allocation23_spill] sm:$0xff] }
 0x7bc   :  { %2249 = vmatprep.subr.bf16.mxu1 %v2912_v36  ;;  %v4997_v36 = vld [vmem:[#allocation25_spill] sm:$0xff] }
 0x7be   :  { %2107 = vmatpush1.bf16.msra.mxu0 %v4038_v54 }
 0x7bf   :  { %2108 = vmatprep.subr.bf16.mxu0 %v4041_v50  ;;  %2250 = vmatpush1.bf16.msra.mxu1 %v2913_v57  ;;  %v4998_v57 = vld [vmem:[#allocation26_spill] sm:$0xff] }
 0x7c0   :  { %2251 = vmatprep.subr.bf16.mxu1 %v2914_v38  ;;  %v4999_v38 = vld [vmem:[#allocation27_spill] sm:$0xff] }
 0x7c2   :  { %2109 = vmatpush1.bf16.msra.mxu0 %v4046_v10 }
 0x7c3   :  { %2110 = vmatprep.subr.bf16.mxu0 %v4049_v63  ;;  %2252 = vmatpush1.bf16.msra.mxu1 %v2915_v42  ;;  %v5000_v42 = vld [vmem:[#allocation28_spill] sm:$0xff] }
 0x7c4   :  { %2253 = vmatprep.subr.bf16.mxu1 %v2916_v30  ;;  %v5001_v30 = vld [vmem:[#allocation29_spill] sm:$0xff] }
 0x7c6   :  { %2111 = vmatpush1.bf16.msra.mxu0 %v4054_v14 }
 0x7c7   :  { %2112 = vmatprep.subr.bf16.mxu0 %v4057_v19  ;;  %2254 = vmatpush1.bf16.msra.mxu1 %v2917_v45  ;;  %v5002_v45 = vld [vmem:[#allocation30_spill] sm:$0xff] }
 0x7c8   :  { %2255 = vmatprep.subr.bf16.mxu1 %v2918_v13  ;;  %v5003_v13 = vld [vmem:[#allocation18_spill] sm:$0xff] }
 0x7ca   :  { %2113 = vmatpush1.bf16.msra.mxu0 %v4062_v24 }
 0x7cb   :  { %2114 = vmatprep.subr.bf16.mxu0 %v4927_v32  ;;  %2256 = vmatpush1.bf16.msra.mxu1 %v2919_v26  ;;  %v5004_v26 = vld [vmem:[#allocation36_spill] sm:$0xff] }
 0x7cc   :  { %2257 = vmatprep.subr.bf16.mxu1 %v2920_v31  ;;  %v5005_v31 = vld [vmem:[#allocation37_spill] sm:$0xff] }
 0x7ce   :  { %2115 = vmatpush1.bf16.msra.mxu0 %v4930_v15 }
 0x7cf   :  { %2116 = vmatprep.subr.bf16.mxu0 %v4931_v17  ;;  %2258 = vmatpush1.bf16.msra.mxu1 %v4932_v21  ;;  %v4985_v21 = vld [vmem:[#allocation46_spill] sm:$0xff] }
 0x7d0   :  { %2259 = vmatprep.subr.bf16.mxu1 %v4933_v20  ;;  %v4986_v20 = vld [vmem:[#allocation75_spill] sm:$0xff] }
 0x7d2   :  { %2117 = vmatpush1.bf16.msra.mxu0 %v4934_v58 }
 0x7d3   :  { %2118 = vmatprep.subr.bf16.mxu0 %v4935_v44  ;;  %2260 = vmatpush1.bf16.msra.mxu1 %v4936_v56  ;;  %v4987_v56 = vld [vmem:[#allocation12_spill] sm:$0xff] }
 0x7d4   :  { %2261 = vmatprep.subr.bf16.mxu1 %v4937_v27  ;;  %v4988_v27 = vld [vmem:[#allocation47_spill] sm:$0xff] }
 0x7d6   :  { %2119 = vmatpush1.bf16.msra.mxu0 %v4938_v1 }
 0x7d7   :  { %2120 = vmatprep.subr.bf16.mxu0 %v4939_v2  ;;  %2262 = vmatpush1.bf16.msra.mxu1 %v4940_v3  ;;  %v2921_v3 = vld [vmem:[#allocation6 + $0xc] ss:$24 sps:$4 sm:$0xff]  }
 0x7d8   :  { %2263 = vmatprep.subr.bf16.mxu1 %v4941_v33  ;;  %v4989_v33 = vld [vmem:[#allocation13_spill] sm:$0xff] }
 0x7da   :  { %2121 = vmatpush1.bf16.msra.mxu0 %v4942_v59 }
 0x7db   :  { %2122 = vmatprep.subr.bf16.mxu0 %v4943_v60  ;;  %2264 = vmatpush1.bf16.msra.mxu1 %v4944_v61  ;;  %v2922_v61 = vld [vmem:[#allocation6 + $0x8] ss:$24 sps:$4 sm:$0xff]  }
 0x7dc   :  { %2265 = vmatprep.subr.bf16.mxu1 %v4945_v37  ;;  %v2923_v37 = vld [vmem:[#allocation6 + $0x3c] ss:$24 sps:$4 sm:$0xff]  }
 0x7de   :  { %2123 = vmatpush1.bf16.msra.mxu0 %v4946_v11 }
 0x7df   :  { %2124 = vmatprep.subr.bf16.mxu0 %v4985_v21  ;;  %2266 = vmatpush1.bf16.msra.mxu1 %v4986_v20 }
 0x7e0   :  { %2267 = vmatprep.subr.bf16.mxu1 %v4987_v56 }
 0x7e2   :  { %2125 = vmatpush1.bf16.msra.mxu0 %v4988_v27 }
 0x7e3   :  { %2278 = vmatprep.subr.bf16.mxu0 %v2921_v3  ;;  %2268 = vmatpush1.bf16.msra.mxu1 %v4989_v33 }
 0x7e4   :  { %2319 = vmatprep.subr.bf16.mxu1 %v4990_v8 }
 0x7e5   :  { %2127 = vmatmul.mubr.bf16.vlgmr.msra.gmra.mrb[40].mxu0 %v4285_v41  ;;  %v2932_v41 = vld [vmem:[#allocation6 + $0xf8] ss:$24 sps:$4 sm:$0xff]  }
 0x7e6   :  { %2279 = vmatpush1.bf16.msra.mxu0 %v2922_v61 }
 0x7e7   :  { %2280 = vmatprep.subr.bf16.mxu0 %v2923_v37 }
 0x7ea   :  { %2281 = vmatpush1.bf16.msra.mxu0 %v2924_v9 }
 0x7eb   :  { %2282 = vmatprep.subr.bf16.mxu0 %v2925_v7 }
 0x7ee   :  { %2283 = vmatpush1.bf16.msra.mxu0 %v2926_v22 }
 0x7ef   :  { %2284 = vmatprep.subr.bf16.mxu0 %v2927_v18 }
 0x7f2   :  { %2285 = vmatpush1.bf16.msra.mxu0 %v2928_v5  ;;  %v1996_v5 = vld [vmem:[#allocation3 + $0x6] ss:$8 sm:$0xf] }
 0x7f3   :  { %2286 = vmatprep.subr.bf16.mxu0 %v2929_v47  ;;  %v1997_v47 = vld [vmem:[#allocation3 + $0x6] ss:$8 sm:$0x30] }
 0x7f6   :  { %2287 = vmatpush1.bf16.msra.mxu0 %v2930_v46 }
 0x7f7   :  { %2288 = vmatprep.subr.bf16.mxu0 %v2931_v34  ;;  %v1998_v34 = vor.u32 %v1997_v47, %v1996_v5 }
 0x7fa   :  { %2289 = vmatpush1.bf16.msra.mxu0 %v2932_v41 }
 0x7fb   :  { %2290 = vmatprep.subr.bf16.mxu0 %v2933_v55 }
 0x7fe   :  { %2291 = vmatpush1.bf16.msra.mxu0 %v2934_v16 }
 0x7ff   :  { %2292 = vmatprep.subr.bf16.mxu0 %v2935_v12  ;;  %v2161_v12 = vrot.slane %v1998_v34, 2 }
 0x802   :  { %2293 = vmatpush1.bf16.msra.mxu0 %v2936_v4 }
 0x803   :  { %2294 = vmatprep.subr.bf16.mxu0 %v2937_v39 }
 0x806   :  { %2295 = vmatpush1.bf16.msra.mxu0 %v4991_v23 }
 0x807   :  { %2296 = vmatprep.subr.bf16.mxu0 %v4992_v35 }
 0x80a   :  { %2297 = vmatpush1.bf16.msra.mxu0 %v4993_v51 }
 0x80b   :  { %2298 = vmatprep.subr.bf16.mxu0 %v4994_v28 }
 0x80e   :  { %2299 = vmatpush1.bf16.msra.mxu0 %v4995_v49 }
 0x80f   :  { %2300 = vmatprep.subr.bf16.mxu0 %v4996_v43 }
 0x812   :  { %2301 = vmatpush1.bf16.msra.mxu0 %v4997_v36 }
 0x813   :  { %2302 = vmatprep.subr.bf16.mxu0 %v4998_v57 }
 0x816   :  { %2303 = vmatpush1.bf16.msra.mxu0 %v4999_v38 }
 0x817   :  { %2304 = vmatprep.subr.bf16.mxu0 %v5000_v42 }
 0x81a   :  { %2305 = vmatpush1.bf16.msra.mxu0 %v5001_v30 }
 0x81b   :  { %2306 = vmatprep.subr.bf16.mxu0 %v5002_v45 }
 0x81e   :  { %2307 = vmatpush1.bf16.msra.mxu0 %v5003_v13 }
 0x81f   :  { %2308 = vmatprep.subr.bf16.mxu0 %v5004_v26 }
 0x822   :  { %2309 = vmatpush1.bf16.msra.mxu0 %v5005_v31  ;;  %v2209_v31 = vrot.slane %v1998_v34, 4 }
 0x878   :  { %v2046_v20 = vpop.f32.mrb[36].mxu0  ;;  %v2087_v56 = vpop.f32.mrb[36].mxu1 }
 0x879   :  { %v2048_v3 = vpop.f32.mrb[37].mxu0  ;;  %v2089_v33 = vpop.f32.mrb[37].mxu1 }
 0x87a   :  { %v2137_v8 = vcombine.low %v2046_v20, %v2048_v3  ;;  %v2165_v61 = vcombine.low %v2087_v56, %v2089_v33  ;;  %v2050_v37 = vpop.f32.mrb[38].mxu0  ;;  %v2091_v9 = vpop.f32.mrb[38].mxu1 }
 0x87b   :  { %v2051_v7 = vpop.f32.mrb[39].mxu0  ;;  %v2092_v22 = vpop.f32.mrb[39].mxu1 }
 0x87c   :  { %v2144_v18 = vrot.slane %v2137_v8, %v3470_v29  ;;  %v2172_v55 = vrot.slane %v2165_v61, %v3470_v29 }
 0x87e   :  { %v2151_v46 = vrot.slane %v2144_v18, %v3470_v29  ;;  %v2179_v4 = vrot.slane %v2172_v55, %v3470_v29  ;;  %v2942_v55 = vld [vmem:[#allocation6 + $0x70] ss:$24 sps:$4 sm:$0xff]  }
 0x880   :  { %v2153_v41 = vadd.f32 %v2151_v46, %v1998_v34  ;;  %v2181_v39 = vadd.f32 %v2179_v4, %v2161_v12  ;;  %v2938_v46 = vld [vmem:[#allocation6 + $0x10] ss:$24 sps:$4 sm:$0xff]   ;;  %v2940_v34 = vld [vmem:[#allocation6 + $0x40] ss:$24 sps:$4 sm:$0xff]   ;;  %v2947_v4 = vld [vmem:[#allocation6 + $0x104] ss:$24 sps:$4 sm:$0xff]  }
 0x881   :  { %v2946_v12 = vld [vmem:[#allocation6 + $0xd0] ss:$24 sps:$4 sm:$0xff]  }
 0x882   :  { %v2570_v16 = vmul.f32 -1.442695, %v2153_v41  ;;  %v2571_v23 = vmul.f32 -1.442695, %v2181_v39  ;;  %v2941_v41 = vld [vmem:[#allocation6 + $0x74] ss:$24 sps:$4 sm:$0xff]  }
 0x884   :  { %2784 = vpow2.f32 %v2570_v16  ;;  %v2945_v16 = vld [vmem:[#allocation6 + $0xd4] ss:$24 sps:$4 sm:$0xff]  }
 0x885   :  { %2786 = vpow2.f32 %v2571_v23 }
 0x88e   :  { %v2785_v35 = vpop.eup %2784 }
 0x88f   :  { %v2157_v51 = vadd.f32 1.0, %v2785_v35  ;;  %v2787_v38 = vpop.eup %2786 }
 0x890   :  { %v2185_v45 = vadd.f32 1.0, %v2787_v38 }
 0x891   :  { %2788 = vrcp.f32 %v2157_v51 }
 0x892   :  { %2790 = vrcp.f32 %v2185_v45 }
 0x89b   :  { %v2789_v20 = vpop.eup %2788 }
 0x89c   :  { %v2791_v33 = vpop.eup %2790 }
 0x89d   :  { %v2213_v8 = vsub.f32 1.0, %v2791_v33  ;;  %v2215_v9 = vmul.f32 %v2791_v33, %v4276_v6  ;;  %v2939_v6 = vld [vmem:[#allocation6 + $0x44] ss:$24 sps:$4 sm:$0xff]  }
 0x8b8   :  { %v2128_v28 = vpop.f32.mrb[40].mxu0 }
 0x8b9   :  { %v2188_v49 = vadd.f32 %v2128_v28, %v4787_v52  ;;  %v2130_v43 = vpop.f32.mrb[41].mxu0 }
 0x8ba   :  { %v2189_v36 = vadd.f32 %v2130_v43, %v3483_v40  ;;  %v2132_v57 = vpop.f32.mrb[42].mxu0 }
 0x8bb   :  { %v2133_v42 = vpop.f32.mrb[43].mxu0 }
 0x8bc   :  { %v2192_v30 = vcombine.low %v2188_v49, %v2189_v36 }
 0x8be   :  { %v2199_v13 = vrot.slane %v2192_v30, %v3470_v29 }
 0x8c0   :  { %v2206_v26 = vrot.slane %v2199_v13, %v3470_v29 }
 0x8c2   :  { %v2208_v56 = vmul.f32 %v2789_v20, %v2206_v26 }
 0x8c4   :  { %v2211_v3 = vadd.f32 %v2209_v31, %v2208_v56 }
 0x8c6   :  { %2792 = vtanh.f32 %v2211_v3 }
 0x8d0   :  { %v2793_v61 = vpop.eup %2792 }
 0x8d1   :  { %v2214_v37 = vmul.f32 %v2793_v61, %v2213_v8 }
 0x8d3   :  { %v4357_v7 = vadd.f32 %v2215_v9, %v2214_v37 }
 0x8d5   :  { %2218 = vst.msk [vmem:[#allocation8 + $0x6] ss:$8 sm:$0x3] %vm3141_vm0, %v4357_v7  ;;  %v2232_v22 = vrot.slane %v4357_v7, %v4728_v62  ;;  %v2228_v18 = vrot.slane %v4357_v7, %v4726_v53  ;;  %v2943_v62 = vld [vmem:[#allocation6 + $0xa4] ss:$24 sps:$4 sm:$0xff]  }
 0x8d6   :  { %v2944_v53 = vld [vmem:[#allocation6 + $0xa0] ss:$24 sps:$4 sm:$0xff]  }
 0x8d7   :  { %v2236_v5 = vpack.c.bf16 %v2232_v22, %v2232_v22  ;;  %v2235_v47 = vpack.c.bf16 %v2228_v18, %v2228_v18 }
 0x8d9   :  { %2269 = vmatprep.mubr.bf16.mxu1 %v2236_v5  ;;  %2310 = vmatprep.mubr.bf16.mxu0 %v2236_v5 }
 0x8da   :  { %2270 = vmatmul.mubr.bf16.vlgmr.msra.gmra.mrb[40].mxu1 %v2235_v47  ;;  %2311 = vmatmul.mubr.bf16.vlgmr.msra.gmra.mrb[44].mxu0 %v2235_v47 }
 0x8db   :  { %2320 = vmatpush1.bf16.msra.mxu1 %v2938_v46  ;;  %2351 = vmatprep.mubr.bf16.mxu1 %v2236_v5 }
 0x8dc   :  { %2321 = vmatprep.subr.bf16.mxu1 %v2939_v6 }
 0x8df   :  { %2322 = vmatpush1.bf16.msra.mxu1 %v2940_v34 }
 0x8e0   :  { %2323 = vmatprep.subr.bf16.mxu1 %v2941_v41 }
 0x8e3   :  { %2324 = vmatpush1.bf16.msra.mxu1 %v2942_v55 }
 0x8e4   :  { %2325 = vmatprep.subr.bf16.mxu1 %v2943_v62 }
 0x8e7   :  { %2326 = vmatpush1.bf16.msra.mxu1 %v2944_v53 }
 0x8e8   :  { %2327 = vmatprep.subr.bf16.mxu1 %v2945_v16 }
 0x8eb   :  { %2328 = vmatpush1.bf16.msra.mxu1 %v2946_v12 }
 0x8ec   :  { %2329 = vmatprep.subr.bf16.mxu1 %v2947_v4 }
 0x8ef   :  { %2330 = vmatpush1.bf16.msra.mxu1 %v4030_v48 }
 0x8f0   :  { %2331 = vmatprep.subr.bf16.mxu1 %v4033_v25 }
 0x8f3   :  { %2332 = vmatpush1.bf16.msra.mxu1 %v4038_v54 }
 0x8f4   :  { %2333 = vmatprep.subr.bf16.mxu1 %v4041_v50 }
 0x8f7   :  { %2334 = vmatpush1.bf16.msra.mxu1 %v4046_v10 }
 0x8f8   :  { %2335 = vmatprep.subr.bf16.mxu1 %v4049_v63 }
 0x8fb   :  { %2336 = vmatpush1.bf16.msra.mxu1 %v4054_v14 }
 0x8fc   :  { %2337 = vmatprep.subr.bf16.mxu1 %v4057_v19 }
 0x8ff   :  { %2338 = vmatpush1.bf16.msra.mxu1 %v4062_v24 }
 0x900   :  { %2339 = vmatprep.subr.bf16.mxu1 %v4927_v32 }
 0x903   :  { %2340 = vmatpush1.bf16.msra.mxu1 %v4930_v15 }
 0x904   :  { %2341 = vmatprep.subr.bf16.mxu1 %v4931_v17  ;;  %v2221_v17 = vld [vmem:[#allocation3 + $0x7] ss:$8 sm:$0xf] }
 0x907   :  { %2342 = vmatpush1.bf16.msra.mxu1 %v4934_v58  ;;  %v2222_v58 = vld [vmem:[#allocation3 + $0x7] ss:$8 sm:$0x30] }
 0x908   :  { %2343 = vmatprep.subr.bf16.mxu1 %v4935_v44 }
 0x90b   :  { %2344 = vmatpush1.bf16.msra.mxu1 %v4938_v1  ;;  %v2223_v1 = vor.u32 %v2222_v58, %v2221_v17 }
 0x90c   :  { %2345 = vmatprep.subr.bf16.mxu1 %v4939_v2 }
 0x90d   :  { %v2434_v26 = vrot.slane %v2223_v1, 4 }
 0x90f   :  { %2346 = vmatpush1.bf16.msra.mxu1 %v4942_v59 }
 0x910   :  { %2347 = vmatprep.subr.bf16.mxu1 %v4943_v60 }
 0x913   :  { %2348 = vmatpush1.bf16.msra.mxu1 %v4946_v11  ;;  %v2386_v11 = vrot.slane %v2223_v1, 2 }
 0x914   :  { %2349 = vmatprep.subr.bf16.mxu1 %v4985_v21 }
 0x917   :  { %2350 = vmatpush1.bf16.msra.mxu1 %v4988_v27 }
 0x91a   :  { %2352 = vmatmul.mubr.bf16.vlgmr.msra.gmra.mrb[44].mxu1 %v2235_v47 }
 0x9ad   :  { %v2271_v48 = vpop.f32.mrb[40].mxu1  ;;  %v2312_v25 = vpop.f32.mrb[44].mxu0 }
 0x9ae   :  { %v2273_v54 = vpop.f32.mrb[41].mxu1  ;;  %v2314_v50 = vpop.f32.mrb[45].mxu0 }
 0x9af   :  { %v2362_v10 = vcombine.low %v2271_v48, %v2273_v54  ;;  %v2390_v63 = vcombine.low %v2312_v25, %v2314_v50  ;;  %v2275_v14 = vpop.f32.mrb[42].mxu1  ;;  %v2316_v19 = vpop.f32.mrb[46].mxu0 }
 0x9b0   :  { %v2276_v24 = vpop.f32.mrb[43].mxu1  ;;  %v2317_v32 = vpop.f32.mrb[47].mxu0 }
 0x9b1   :  { %v2369_v15 = vrot.slane %v2362_v10, %v3470_v29  ;;  %v2397_v59 = vrot.slane %v2390_v63, %v3470_v29 }
 0x9b3   :  { %v2376_v44 = vrot.slane %v2369_v15, %v3470_v29  ;;  %v2404_v21 = vrot.slane %v2397_v59, %v3470_v29 }
 0x9b5   :  { %v2378_v2 = vadd.f32 %v2376_v44, %v2223_v1  ;;  %v2406_v27 = vadd.f32 %v2404_v21, %v2386_v11 }
 0x9b7   :  { %v2572_v60 = vmul.f32 -1.442695, %v2378_v2  ;;  %v2573_v39 = vmul.f32 -1.442695, %v2406_v27 }
 0x9b9   :  { %2794 = vpow2.f32 %v2572_v60 }
 0x9ba   :  { %2796 = vpow2.f32 %v2573_v39 }
 0x9c3   :  { %v2795_v23 = vpop.eup %2794 }
 0x9c4   :  { %v2382_v35 = vadd.f32 1.0, %v2795_v23  ;;  %v2797_v57 = vpop.eup %2796 }
 0x9c5   :  { %v2410_v30 = vadd.f32 1.0, %v2797_v57 }
 0x9c6   :  { %2798 = vrcp.f32 %v2382_v35 }
 0x9c7   :  { %2800 = vrcp.f32 %v2410_v30 }
 0x9d0   :  { %v2799_v31 = vpop.eup %2798 }
 0x9d1   :  { %v2801_v3 = vpop.eup %2800 }
 0x9ed   :  { %v2353_v51 = vpop.f32.mrb[44].mxu1 }
 0x9ee   :  { %v2413_v28 = vadd.f32 %v2353_v51, %v4787_v52  ;;  %v2355_v49 = vpop.f32.mrb[45].mxu1  ;;  %v2438_v52 = vsub.f32 1.0, %v2801_v3 }
 0x9ef   :  { %v2414_v43 = vadd.f32 %v2355_v49, %v3483_v40  ;;  %v2357_v36 = vpop.f32.mrb[46].mxu1  ;;  %v2440_v40 = vmul.f32 %v2801_v3, %v4357_v7 }
 0x9f0   :  { %v2358_v38 = vpop.f32.mrb[47].mxu1 }
 0x9f1   :  { %v2417_v42 = vcombine.low %v2413_v28, %v2414_v43 }
 0x9f3   :  { %v2424_v45 = vrot.slane %v2417_v42, %v3470_v29 }
 0x9f5   :  { %v2431_v13 = vrot.slane %v2424_v45, %v3470_v29 }
 0x9f7   :  { %v2433_v20 = vmul.f32 %v2799_v31, %v2431_v13 }
 0x9f9   :  { %v2436_v56 = vadd.f32 %v2434_v26, %v2433_v20 }
 0x9fb   :  { %2802 = vtanh.f32 %v2436_v56 }
 0xa05   :  { %v2803_v33 = vpop.eup %2802 }
 0xa06   :  { %v2439_v8 = vmul.f32 %v2803_v33, %v2438_v52 }
 0xa08   :  { %v2441_v61 = vadd.f32 %v2440_v40, %v2439_v8 }
 0xa0a   :  { %2445 = vst.msk [vmem:[#allocation2] sm:$0x3] %vm3141_vm0, %v2441_v61  ;;  %2443 = vst.msk [vmem:[#allocation8 + $0x7] ss:$8 sm:$0x3] %vm3141_vm0, %v2441_v61 }
 0xa0b   :  { %3003 = shalt.err (!%p3000_p6)
}
 0xa0c   :  { %s3004_s20 = scalar_lea.hbm %s4416_s4, 256 }
 0xa0d   :  { %p3005_p7 = scmp.ne.s32.totalorder %s4416_s4, %s3004_s20  ;;  %p3008_p8 = scmp.lt.u32.totalorder %s3004_s20, %s4416_s4 }
 0xa0f   :  { %p3010_p9 = pnand %p3008_p8, %p3005_p7 }
 0xa11   :  { %3013 = shalt.err (!%p3010_p9)
}
 0xa12   :  { %2455 = dma.vmem_to_hbm [thread:$0]  %s2453_s16, 256, %s4416_s4, [#allocation5]  }
 0xa13   :  { %3018 = dma.done.wait [#allocation5], 256  }
 0xa14   :  { %3019 = vsyncadd [#allocation5], 4294967040 }
 0xa15   :  { %2459 = vsyncpa [#allocation4], 1 }
 0xa16   :  { %2460 = vsyncpa [#allocation7], 1 }
 0xa17   :  { %2461 = vsyncpa [#allocation5], 1 }

</bundles_post_ra>
